<compile_context>
chip_gen: v6e
topology: v6e:2x2x1
jax: 0.10.0
libtpu: 0.0.40
codegen_flags: <defaults>
</compile_context>

<pallas_src>
import jax
import jax.numpy as jnp
from jax import lax
from jax.experimental import pallas as pl
from jax.experimental.pallas import tpu as pltpu

H = 16
W = 16
K1 = 13              # conv1 kernel size
P1 = 6               # conv1 padding
C_IN = 3
C_MID = 32
C_OUT = 1
HP = H + 2 * P1      # 28 padded rows
WP = W + 2 * P1      # 28 padded cols
ROW = WP * C_IN      # 84 lanes per padded image row  (w'*3 + c)
NL = W * C_MID       # 512 lanes per activation row   (pw*32 + c)
NG = 5               # conv1 merged tap groups: ceil(13 / 3)
KTR = 3 * ROW        # 252 = K of each merged conv1 matmul
T2 = 256             # conv2 diagonal tile width (fits v6e/v7x MXU)


def _net_kernel(x_ref, w1m_ref, b1_ref, w2t_ref, b2_ref, w3b_ref, b3_ref,
                o_ref, acc_ref, a2_ref, upad_ref):
    # x_ref   : (B, 28, 252)  normalized zero-padded rows in row-triple layout,
    #                         lane = t*84 + w'*3 + c  (t = row offset 0..2)
    # w1m_ref : (5, 252, 512) merged banded conv1 weights (3 kh taps per slab)
    # b1_ref  : (1, 512)      conv1 bias tiled over pw
    # w2t_ref : (256, 256)    conv2 diagonal tile = kron(eye(8), w2)
    # b2_ref  : (1, 512)      conv2 bias tiled over pw
    # w3b_ref : (512, 48)     conv3 width/channel contraction [pw*32+c, dh*16+ow]
    # b3_ref  : (1,) SMEM     conv3 bias (scalar)
    # o_ref   : (B, 16, 16)
    # acc_ref : (B*16, 512)   VMEM scratch: conv1 accumulator / a1
    # a2_ref  : (B*16, 512)   VMEM scratch: conv2 output
    # upad_ref: (B, 18, 48)   VMEM scratch: zero-padded conv3 partial sums
    b = o_ref.shape[0]
    m = b * H

    # ---- conv1: 5 merged-tap banded matmuls, accumulated in VMEM scratch ----
    for g in range(NG):
        lhs = x_ref[:, 3 * g:3 * g + H, :].reshape(m, KTR)        # (m, 252)
        part = jnp.dot(lhs, w1m_ref[g], preferred_element_type=jnp.float32)
        if g == 0:
            acc_ref[...] = part
        else:
            acc_ref[...] += part
    # bias + ReLU in place -> a1
    acc_ref[...] = jnp.maximum(acc_ref[...] + b1_ref[...], 0.0)   # (m, 512)

    # ---- conv2 (1x1): two 256-wide diagonal-tile matmuls (exact) ----
    for t in range(NL // T2):
        lo = t * T2
        a2_ref[:, lo:lo + T2] = jnp.maximum(
            jnp.dot(acc_ref[:, lo:lo + T2], w2t_ref[...],
                    preferred_element_type=jnp.float32)
            + b2_ref[:, lo:lo + T2], 0.0)

    # ---- conv3 (3x3, 32->1): width+channel contraction on the MXU ... ----
    u = jnp.dot(a2_ref[...], w3b_ref[...],
                preferred_element_type=jnp.float32)               # (m, 48)

    # ... then combine the three dh taps via a zero-padded row scratch.
    # Only the two boundary rows need zeroing; rows 1..16 are overwritten.
    zrow = jnp.zeros((b, 1, 3 * W), jnp.float32)
    upad_ref[:, 0:1, :] = zrow
    upad_ref[:, H + 1:H + 2, :] = zrow
    upad_ref[:, 1:H + 1, :] = u.reshape(b, H, 3 * W)
    s = (upad_ref[:, 0:H, 0:W]
         + upad_ref[:, 1:H + 1, W:2 * W]
         + upad_ref[:, 2:H + 2, 2 * W:3 * W])                     # (b, 16, 16)

    # Output kept in the (B,16,16) layout (proven path, off the MXU-bound
    # critical path); the wrapper slices the batch padding away.
    o_ref[...] = jax.nn.sigmoid(s + b3_ref[0])


def init_params(key):
    """Deterministic synthetic parameters (shapes match the PyTorch module, HWIO)."""
    ks = jax.random.split(key, 5)
    w1 = jax.random.normal(ks[0], (K1, K1, C_IN, C_MID), jnp.float32) * 0.05
    b1 = jax.random.normal(ks[1], (C_MID,), jnp.float32) * 0.05
    w2 = jax.random.normal(ks[2], (1, 1, C_MID, C_MID), jnp.float32) * 0.10
    b2 = jax.random.normal(ks[3], (C_MID,), jnp.float32) * 0.05
    w3 = jax.random.normal(ks[4], (3, 3, C_MID, C_OUT), jnp.float32) * 0.10
    b3 = jnp.full((C_OUT,), -4.0, jnp.float32)   # torch.nn.init.constant_(conv3.bias, -4.0)
    return w1, b1, w2, b2, w3, b3


def _banded_conv1_weights(w1):
    # W1B[kh, w'*3+cin, pw*32+co] = w1[kh, w'-pw, cin, co] for 0 <= w'-pw < 13, else 0
    kw = jnp.arange(WP)[:, None] - jnp.arange(W)[None, :]          # (28 w', 16 pw)
    valid = ((kw >= 0) & (kw < K1)).astype(w1.dtype)
    w1g = w1[:, jnp.clip(kw, 0, K1 - 1), :, :]                     # (13, 28, 16, 3, 32)
    w1g = w1g * valid[None, :, :, None, None]
    return jnp.transpose(w1g, (0, 1, 3, 2, 4)).reshape(K1, ROW, NL)


def _banded_conv3_weights(w3):
    # W3B[pw*32+c, dh*16+ow] = w3[dh, pw-ow+1, c, 0] for 0 <= pw-ow+1 < 3, else 0
    dw = jnp.arange(W)[:, None] - jnp.arange(W)[None, :] + 1       # (16 pw, 16 ow)
    valid = ((dw >= 0) & (dw < 3)).astype(w3.dtype)
    w3sq = w3[:, :, :, 0]                                          # (3, 3, 32)
    w3g = w3sq[:, jnp.clip(dw, 0, 2), :]                           # (3, 16, 16, 32)
    w3g = w3g * valid[None, :, :, None]
    return jnp.transpose(w3g, (1, 3, 0, 2)).reshape(NL, 3 * W)     # (512, 48)


def net_forward(x, params):
    """x: (N, H, W, 3) float32 pixel values in [0, 255]."""
    w1, b1, w2, b2, w3, b3 = params
    n = x.shape[0]

    # Images per grid step: cap M = B*16 at 256 rows, but shrink B for small
    # batches so the "parallel" grid has >= 2 steps (v7x has 2 TensorCores).
    bimg = max(1, min(16, -(-n // 2)))
    n_pad = pl.cdiv(n, bimg) * bimg

    # Normalize, zero-pad (batch, +6/+8 rows, +6/+6 cols), flatten (W, C) into
    # 84 lanes, then build the row-triple layout: lane block t of padded row r
    # holds padded row r + t  (two extra zero rows cover r + 2 <= 29).
    xn = (x - 255.0 / 2.0) / 255.0
    xp = jnp.pad(xn, ((0, n_pad - n), (P1, P1 + 2), (P1, P1), (0, 0)))
    xrows = xp.reshape(n_pad, HP + 2, ROW)                         # (n_pad, 30, 84)
    xd = jnp.concatenate(
        [xrows[:, 0:HP], xrows[:, 1:HP + 1], xrows[:, 2:HP + 2]],
        axis=-1)                                                   # (n_pad, 28, 252)

    # Weight preprocessing (small, done once per call by XLA).
    w1b = _banded_conv1_weights(w1)                                # (13, 84, 512)
    w1m = jnp.concatenate(
        [w1b, jnp.zeros((NG * 3 - K1, ROW, NL), w1b.dtype)], axis=0
    ).reshape(NG, KTR, NL)                                         # (5, 252, 512)
    w2t = jnp.kron(jnp.eye(T2 // C_MID, dtype=w2.dtype),
                   w2.reshape(C_MID, C_MID))                       # (256, 256)
    w3b = _banded_conv3_weights(w3)                                # (512, 48)
    b1t = jnp.tile(b1, W).reshape(1, NL)
    b2t = jnp.tile(b2, W).reshape(1, NL)

    m = bimg * H
    out = pl.pallas_call(
        _net_kernel,
        out_shape=jax.ShapeDtypeStruct((n_pad, H, W), jnp.float32),
        grid_spec=pltpu.PrefetchScalarGridSpec(
            num_scalar_prefetch=0,
            grid=(n_pad // bimg,),
            in_specs=[
                pl.BlockSpec((bimg, HP, KTR), lambda i: (i, 0, 0)),
                pl.BlockSpec((NG, KTR, NL), lambda i: (0, 0, 0)),
                pl.BlockSpec((1, NL), lambda i: (0, 0)),
                pl.BlockSpec((T2, T2), lambda i: (0, 0)),
                pl.BlockSpec((1, NL), lambda i: (0, 0)),
                pl.BlockSpec((NL, 3 * W), lambda i: (0, 0)),
                pl.BlockSpec(memory_space=pltpu.MemorySpace.SMEM),
            ],
            out_specs=pl.BlockSpec((bimg, H, W), lambda i: (i, 0, 0)),
            scratch_shapes=[
                pltpu.VMEM((m, NL), jnp.float32),               # conv1 acc / a1
                pltpu.VMEM((m, NL), jnp.float32),               # a2
                pltpu.VMEM((bimg, H + 2, 3 * W), jnp.float32),  # conv3 row pad
            ],
        ),
        compiler_params=pltpu.CompilerParams(
            dimension_semantics=("parallel",)),
    )(xd, w1m, b1t, w2t, b2t, w3b, b3)

    # torch.squeeze at the end of the PyTorch forward
    return jnp.squeeze(out[:n])


def ref_forward(x, params):
    """Pure-JAX reference matching the PyTorch forward semantics."""
    w1, b1, w2, b2, w3, b3 = params
    dn = ('NHWC', 'HWIO', 'NHWC')
    y = (x - 255.0 / 2.0) / 255.0
    y = lax.conv_general_dilated(y, w1, (1, 1), [(P1, P1), (P1, P1)],
                                 dimension_numbers=dn) + b1
    y = jnp.maximum(y, 0.0)
    y = lax.conv_general_dilated(y, w2, (1, 1), [(0, 0), (0, 0)],
                                 dimension_numbers=dn) + b2
    y = jnp.maximum(y, 0.0)
    y = lax.conv_general_dilated(y, w3, (1, 1), [(1, 1), (1, 1)],
                                 dimension_numbers=dn) + b3
    y = jax.nn.sigmoid(y)
    return jnp.squeeze(y)


if __name__ == "__main__":
    key = jax.random.PRNGKey(0)
    kx, kp = jax.random.split(key)
    x = jax.random.uniform(kx, (2, H, W, C_IN), jnp.float32, 0.0, 255.0)
    params = init_params(kp)

    out = jax.jit(net_forward)(x, params)
    out = jax.block_until_ready(out)

    ref = ref_forward(x, params)
    assert out.shape == ref.shape == (2, H, W), (out.shape, ref.shape)
    max_err = float(jnp.max(jnp.abs(out - ref)))
    assert max_err < 2e-4, f"mismatch vs reference: {max_err}"

    print("KERNEL_OK")
</pallas_src>

<mosaic_0001>
module attributes {stable_mosaic.version = 11 : i64} {
  func.func @_net_kernel(%arg0: i32, %arg1: memref<1x28x252xf32, #tpu.memory_space<vmem>>, %arg2: memref<5x252x512xf32, #tpu.memory_space<vmem>>, %arg3: memref<1x512xf32, #tpu.memory_space<vmem>>, %arg4: memref<256x256xf32, #tpu.memory_space<vmem>>, %arg5: memref<1x512xf32, #tpu.memory_space<vmem>>, %arg6: memref<512x48xf32, #tpu.memory_space<vmem>>, %arg7: memref<1xf32, #tpu.memory_space<smem>>, %arg8: memref<1x16x16xf32, #tpu.memory_space<vmem>>, %arg9: memref<16x512xf32, #tpu.memory_space<vmem>>, %arg10: memref<16x512xf32, #tpu.memory_space<vmem>>, %arg11: memref<1x18x48xf32, #tpu.memory_space<vmem>>) attributes {dimension_semantics = [#tpu.dimension_semantics<parallel>], iteration_bounds = array<i64: 2>, scalar_prefetch = 0 : i64, scratch_operands = 3 : i64, tpu.core_type = #tpu.core_type<tc>, window_params = [{transform_indices = @transform_0, window_bounds = array<i64: 1, 28, 252>}, {pipeline_mode = #tpu.pipeline_mode<synchronous>, transform_indices = @transform_1, window_bounds = array<i64: 5, 252, 512>}, {pipeline_mode = #tpu.pipeline_mode<synchronous>, transform_indices = @transform_2, window_bounds = array<i64: 1, 512>}, {pipeline_mode = #tpu.pipeline_mode<synchronous>, transform_indices = @transform_3, window_bounds = array<i64: 256, 256>}, {pipeline_mode = #tpu.pipeline_mode<synchronous>, transform_indices = @transform_4, window_bounds = array<i64: 1, 512>}, {pipeline_mode = #tpu.pipeline_mode<synchronous>, transform_indices = @transform_5, window_bounds = array<i64: 512, 48>}, {transform_indices = @transform_6, window_bounds = array<i64: 1>}, {transform_indices = @transform_7, window_bounds = array<i64: 1, 16, 16>}]} {
    %c0 = arith.constant 0 : index
    %c0_0 = arith.constant 0 : index
    %c0_1 = arith.constant 0 : index
    %0 = vector.load %arg1[%c0, %c0_0, %c0_1] : memref<1x28x252xf32, #tpu.memory_space<vmem>>, vector<1x16x252xf32>
    %1 = vector.shape_cast %0 : vector<1x16x252xf32> to vector<16x252xf32>
    %c0_2 = arith.constant 0 : index
    %c0_3 = arith.constant 0 : index
    %c0_4 = arith.constant 0 : index
    %2 = vector.load %arg2[%c0_2, %c0_3, %c0_4] : memref<5x252x512xf32, #tpu.memory_space<vmem>>, vector<1x252x512xf32>
    %3 = vector.shape_cast %2 : vector<1x252x512xf32> to vector<252x512xf32>
    %cst = arith.constant dense<0.000000e+00> : vector<16x512xf32>
    %4 = tpu.matmul %1, %3, %cst {dimension_numbers = #tpu.dot_dimension_numbers<[1], [0], [0], [1], [0, 0, 1, 1], [], []>} : vector<16x252xf32>, vector<252x512xf32>, vector<16x512xf32> -> vector<16x512xf32>
    %c0_5 = arith.constant 0 : index
    %c0_6 = arith.constant 0 : index
    %5 = vector.load %arg9[%c0_5, %c0_6] : memref<16x512xf32, #tpu.memory_space<vmem>>, vector<16x512xf32>
    tpu.vector_store %arg9[%c0_5, %c0_6], %4 {strides = array<i32>} : memref<16x512xf32, #tpu.memory_space<vmem>>, vector<16x512xf32>,
    %c0_7 = arith.constant 0 : index
    %c3 = arith.constant 3 : index
    %c0_8 = arith.constant 0 : index
    %6 = vector.load %arg1[%c0_7, %c3, %c0_8] : memref<1x28x252xf32, #tpu.memory_space<vmem>>, vector<1x16x252xf32>
    %7 = vector.shape_cast %6 : vector<1x16x252xf32> to vector<16x252xf32>
    %c1 = arith.constant 1 : index
    %c0_9 = arith.constant 0 : index
    %c0_10 = arith.constant 0 : index
    %8 = vector.load %arg2[%c1, %c0_9, %c0_10] : memref<5x252x512xf32, #tpu.memory_space<vmem>>, vector<1x252x512xf32>
    %9 = vector.shape_cast %8 : vector<1x252x512xf32> to vector<252x512xf32>
    %cst_11 = arith.constant dense<0.000000e+00> : vector<16x512xf32>
    %10 = tpu.matmul %7, %9, %cst_11 {dimension_numbers = #tpu.dot_dimension_numbers<[1], [0], [0], [1], [0, 0, 1, 1], [], []>} : vector<16x252xf32>, vector<252x512xf32>, vector<16x512xf32> -> vector<16x512xf32>
    %c0_12 = arith.constant 0 : index
    %c0_13 = arith.constant 0 : index
    %11 = vector.load %arg9[%c0_12, %c0_13] : memref<16x512xf32, #tpu.memory_space<vmem>>, vector<16x512xf32>
    %12 = arith.addf %11, %10 : vector<16x512xf32>
    %c0_14 = arith.constant 0 : index
    %c0_15 = arith.constant 0 : index
    %13 = vector.load %arg9[%c0_14, %c0_15] : memref<16x512xf32, #tpu.memory_space<vmem>>, vector<16x512xf32>
    tpu.vector_store %arg9[%c0_14, %c0_15], %12 {strides = array<i32>} : memref<16x512xf32, #tpu.memory_space<vmem>>, vector<16x512xf32>,
    %c0_16 = arith.constant 0 : index
    %c6 = arith.constant 6 : index
    %c0_17 = arith.constant 0 : index
    %14 = vector.load %arg1[%c0_16, %c6, %c0_17] : memref<1x28x252xf32, #tpu.memory_space<vmem>>, vector<1x16x252xf32>
    %15 = vector.shape_cast %14 : vector<1x16x252xf32> to vector<16x252xf32>
    %c2 = arith.constant 2 : index
    %c0_18 = arith.constant 0 : index
    %c0_19 = arith.constant 0 : index
    %16 = vector.load %arg2[%c2, %c0_18, %c0_19] : memref<5x252x512xf32, #tpu.memory_space<vmem>>, vector<1x252x512xf32>
    %17 = vector.shape_cast %16 : vector<1x252x512xf32> to vector<252x512xf32>
    %cst_20 = arith.constant dense<0.000000e+00> : vector<16x512xf32>
    %18 = tpu.matmul %15, %17, %cst_20 {dimension_numbers = #tpu.dot_dimension_numbers<[1], [0], [0], [1], [0, 0, 1, 1], [], []>} : vector<16x252xf32>, vector<252x512xf32>, vector<16x512xf32> -> vector<16x512xf32>
    %c0_21 = arith.constant 0 : index
    %c0_22 = arith.constant 0 : index
    %19 = vector.load %arg9[%c0_21, %c0_22] : memref<16x512xf32, #tpu.memory_space<vmem>>, vector<16x512xf32>
    %20 = arith.addf %19, %18 : vector<16x512xf32>
    %c0_23 = arith.constant 0 : index
    %c0_24 = arith.constant 0 : index
    %21 = vector.load %arg9[%c0_23, %c0_24] : memref<16x512xf32, #tpu.memory_space<vmem>>, vector<16x512xf32>
    tpu.vector_store %arg9[%c0_23, %c0_24], %20 {strides = array<i32>} : memref<16x512xf32, #tpu.memory_space<vmem>>, vector<16x512xf32>,
    %c0_25 = arith.constant 0 : index
    %c9 = arith.constant 9 : index
    %c0_26 = arith.constant 0 : index
    %22 = vector.load %arg1[%c0_25, %c9, %c0_26] : memref<1x28x252xf32, #tpu.memory_space<vmem>>, vector<1x16x252xf32>
    %23 = vector.shape_cast %22 : vector<1x16x252xf32> to vector<16x252xf32>
    %c3_27 = arith.constant 3 : index
    %c0_28 = arith.constant 0 : index
    %c0_29 = arith.constant 0 : index
    %24 = vector.load %arg2[%c3_27, %c0_28, %c0_29] : memref<5x252x512xf32, #tpu.memory_space<vmem>>, vector<1x252x512xf32>
    %25 = vector.shape_cast %24 : vector<1x252x512xf32> to vector<252x512xf32>
    %cst_30 = arith.constant dense<0.000000e+00> : vector<16x512xf32>
    %26 = tpu.matmul %23, %25, %cst_30 {dimension_numbers = #tpu.dot_dimension_numbers<[1], [0], [0], [1], [0, 0, 1, 1], [], []>} : vector<16x252xf32>, vector<252x512xf32>, vector<16x512xf32> -> vector<16x512xf32>
    %c0_31 = arith.constant 0 : index
    %c0_32 = arith.constant 0 : index
    %27 = vector.load %arg9[%c0_31, %c0_32] : memref<16x512xf32, #tpu.memory_space<vmem>>, vector<16x512xf32>
    %28 = arith.addf %27, %26 : vector<16x512xf32>
    %c0_33 = arith.constant 0 : index
    %c0_34 = arith.constant 0 : index
    %29 = vector.load %arg9[%c0_33, %c0_34] : memref<16x512xf32, #tpu.memory_space<vmem>>, vector<16x512xf32>
    tpu.vector_store %arg9[%c0_33, %c0_34], %28 {strides = array<i32>} : memref<16x512xf32, #tpu.memory_space<vmem>>, vector<16x512xf32>,
    %c0_35 = arith.constant 0 : index
    %c12 = arith.constant 12 : index
    %c0_36 = arith.constant 0 : index
    %30 = vector.load %arg1[%c0_35, %c12, %c0_36] : memref<1x28x252xf32, #tpu.memory_space<vmem>>, vector<1x16x252xf32>
    %31 = vector.shape_cast %30 : vector<1x16x252xf32> to vector<16x252xf32>
    %c4 = arith.constant 4 : index
    %c0_37 = arith.constant 0 : index
    %c0_38 = arith.constant 0 : index
    %32 = vector.load %arg2[%c4, %c0_37, %c0_38] : memref<5x252x512xf32, #tpu.memory_space<vmem>>, vector<1x252x512xf32>
    %33 = vector.shape_cast %32 : vector<1x252x512xf32> to vector<252x512xf32>
    %cst_39 = arith.constant dense<0.000000e+00> : vector<16x512xf32>
    %34 = tpu.matmul %31, %33, %cst_39 {dimension_numbers = #tpu.dot_dimension_numbers<[1], [0], [0], [1], [0, 0, 1, 1], [], []>} : vector<16x252xf32>, vector<252x512xf32>, vector<16x512xf32> -> vector<16x512xf32>
    %c0_40 = arith.constant 0 : index
    %c0_41 = arith.constant 0 : index
    %35 = vector.load %arg9[%c0_40, %c0_41] : memref<16x512xf32, #tpu.memory_space<vmem>>, vector<16x512xf32>
    %36 = arith.addf %35, %34 : vector<16x512xf32>
    %c0_42 = arith.constant 0 : index
    %c0_43 = arith.constant 0 : index
    %37 = vector.load %arg9[%c0_42, %c0_43] : memref<16x512xf32, #tpu.memory_space<vmem>>, vector<16x512xf32>
    tpu.vector_store %arg9[%c0_42, %c0_43], %36 {strides = array<i32>} : memref<16x512xf32, #tpu.memory_space<vmem>>, vector<16x512xf32>,
    %c0_44 = arith.constant 0 : index
    %c0_45 = arith.constant 0 : index
    %38 = vector.load %arg9[%c0_44, %c0_45] : memref<16x512xf32, #tpu.memory_space<vmem>>, vector<16x512xf32>
    %c0_46 = arith.constant 0 : index
    %c0_47 = arith.constant 0 : index
    %39 = vector.load %arg3[%c0_46, %c0_47] : memref<1x512xf32, #tpu.memory_space<vmem>>, vector<1x512xf32>
    %40 = vector.broadcast %39 : vector<1x512xf32> to vector<16x512xf32>
    %41 = arith.addf %38, %40 : vector<16x512xf32>
    %cst_48 = arith.constant 0.000000e+00 : f32
    %42 = vector.broadcast %cst_48 : f32 to vector<16x512xf32>
    %43 = arith.maximumf %41, %42 : vector<16x512xf32>
    %c0_49 = arith.constant 0 : index
    %c0_50 = arith.constant 0 : index
    %44 = vector.load %arg9[%c0_49, %c0_50] : memref<16x512xf32, #tpu.memory_space<vmem>>, vector<16x512xf32>
    tpu.vector_store %arg9[%c0_49, %c0_50], %43 {strides = array<i32>} : memref<16x512xf32, #tpu.memory_space<vmem>>, vector<16x512xf32>,
    %c0_51 = arith.constant 0 : index
    %c0_52 = arith.constant 0 : index
    %45 = vector.load %arg9[%c0_51, %c0_52] : memref<16x512xf32, #tpu.memory_space<vmem>>, vector<16x256xf32>
    %c0_53 = arith.constant 0 : index
    %c0_54 = arith.constant 0 : index
    %46 = vector.load %arg4[%c0_53, %c0_54] : memref<256x256xf32, #tpu.memory_space<vmem>>, vector<256x256xf32>
    %cst_55 = arith.constant dense<0.000000e+00> : vector<16x256xf32>
    %47 = tpu.matmul %45, %46, %cst_55 {dimension_numbers = #tpu.dot_dimension_numbers<[1], [0], [0], [1], [0, 0, 1, 1], [], []>} : vector<16x256xf32>, vector<256x256xf32>, vector<16x256xf32> -> vector<16x256xf32>
    %c0_56 = arith.constant 0 : index
    %c0_57 = arith.constant 0 : index
    %48 = vector.load %arg5[%c0_56, %c0_57] : memref<1x512xf32, #tpu.memory_space<vmem>>, vector<1x256xf32>
    %49 = vector.broadcast %48 : vector<1x256xf32> to vector<16x256xf32>
    %50 = arith.addf %47, %49 : vector<16x256xf32>
    %cst_58 = arith.constant 0.000000e+00 : f32
    %51 = vector.broadcast %cst_58 : f32 to vector<16x256xf32>
    %52 = arith.maximumf %50, %51 : vector<16x256xf32>
    %c0_59 = arith.constant 0 : index
    %c0_60 = arith.constant 0 : index
    %53 = vector.load %arg10[%c0_59, %c0_60] : memref<16x512xf32, #tpu.memory_space<vmem>>, vector<16x256xf32>
    tpu.vector_store %arg10[%c0_59, %c0_60], %52 {strides = array<i32>} : memref<16x512xf32, #tpu.memory_space<vmem>>, vector<16x256xf32>,
    %c0_61 = arith.constant 0 : index
    %c256 = arith.constant 256 : index
    %54 = vector.load %arg9[%c0_61, %c256] : memref<16x512xf32, #tpu.memory_space<vmem>>, vector<16x256xf32>
    %c0_62 = arith.constant 0 : index
    %c0_63 = arith.constant 0 : index
    %55 = vector.load %arg4[%c0_62, %c0_63] : memref<256x256xf32, #tpu.memory_space<vmem>>, vector<256x256xf32>
    %cst_64 = arith.constant dense<0.000000e+00> : vector<16x256xf32>
    %56 = tpu.matmul %54, %55, %cst_64 {dimension_numbers = #tpu.dot_dimension_numbers<[1], [0], [0], [1], [0, 0, 1, 1], [], []>} : vector<16x256xf32>, vector<256x256xf32>, vector<16x256xf32> -> vector<16x256xf32>
    %c0_65 = arith.constant 0 : index
    %c256_66 = arith.constant 256 : index
    %57 = vector.load %arg5[%c0_65, %c256_66] : memref<1x512xf32, #tpu.memory_space<vmem>>, vector<1x256xf32>
    %58 = vector.broadcast %57 : vector<1x256xf32> to vector<16x256xf32>
    %59 = arith.addf %56, %58 : vector<16x256xf32>
    %cst_67 = arith.constant 0.000000e+00 : f32
    %60 = vector.broadcast %cst_67 : f32 to vector<16x256xf32>
    %61 = arith.maximumf %59, %60 : vector<16x256xf32>
    %c0_68 = arith.constant 0 : index
    %c256_69 = arith.constant 256 : index
    %62 = vector.load %arg10[%c0_68, %c256_69] : memref<16x512xf32, #tpu.memory_space<vmem>>, vector<16x256xf32>
    tpu.vector_store %arg10[%c0_68, %c256_69], %61 {strides = array<i32>} : memref<16x512xf32, #tpu.memory_space<vmem>>, vector<16x256xf32>,
    %c0_70 = arith.constant 0 : index
    %c0_71 = arith.constant 0 : index
    %63 = vector.load %arg10[%c0_70, %c0_71] : memref<16x512xf32, #tpu.memory_space<vmem>>, vector<16x512xf32>
    %c0_72 = arith.constant 0 : index
    %c0_73 = arith.constant 0 : index
    %64 = vector.load %arg6[%c0_72, %c0_73] : memref<512x48xf32, #tpu.memory_space<vmem>>, vector<512x48xf32>
    %cst_74 = arith.constant dense<0.000000e+00> : vector<16x48xf32>
    %65 = tpu.matmul %63, %64, %cst_74 {dimension_numbers = #tpu.dot_dimension_numbers<[1], [0], [0], [1], [0, 0, 1, 1], [], []>} : vector<16x512xf32>, vector<512x48xf32>, vector<16x48xf32> -> vector<16x48xf32>
    %cst_75 = arith.constant 0.000000e+00 : f32
    %66 = vector.broadcast %cst_75 : f32 to vector<1x1x48xf32>
    %c0_76 = arith.constant 0 : index
    %c0_77 = arith.constant 0 : index
    %c0_78 = arith.constant 0 : index
    %67 = vector.load %arg11[%c0_76, %c0_77, %c0_78] : memref<1x18x48xf32, #tpu.memory_space<vmem>>, vector<1x1x48xf32>
    tpu.vector_store %arg11[%c0_76, %c0_77, %c0_78], %66 {strides = array<i32>} : memref<1x18x48xf32, #tpu.memory_space<vmem>>, vector<1x1x48xf32>,
    %c0_79 = arith.constant 0 : index
    %c17 = arith.constant 17 : index
    %c0_80 = arith.constant 0 : index
    %68 = vector.load %arg11[%c0_79, %c17, %c0_80] : memref<1x18x48xf32, #tpu.memory_space<vmem>>, vector<1x1x48xf32>
    tpu.vector_store %arg11[%c0_79, %c17, %c0_80], %66 {strides = array<i32>} : memref<1x18x48xf32, #tpu.memory_space<vmem>>, vector<1x1x48xf32>,
    %69 = vector.shape_cast %65 : vector<16x48xf32> to vector<1x16x48xf32>
    %c0_81 = arith.constant 0 : index
    %c1_82 = arith.constant 1 : index
    %c0_83 = arith.constant 0 : index
    %70 = vector.load %arg11[%c0_81, %c1_82, %c0_83] : memref<1x18x48xf32, #tpu.memory_space<vmem>>, vector<1x16x48xf32>
    tpu.vector_store %arg11[%c0_81, %c1_82, %c0_83], %69 {strides = array<i32>} : memref<1x18x48xf32, #tpu.memory_space<vmem>>, vector<1x16x48xf32>,
    %c0_84 = arith.constant 0 : index
    %c0_85 = arith.constant 0 : index
    %c0_86 = arith.constant 0 : index
    %71 = vector.load %arg11[%c0_84, %c0_85, %c0_86] : memref<1x18x48xf32, #tpu.memory_space<vmem>>, vector<1x16x16xf32>
    %c0_87 = arith.constant 0 : index
    %c1_88 = arith.constant 1 : index
    %c16 = arith.constant 16 : index
    %72 = vector.load %arg11[%c0_87, %c1_88, %c16] : memref<1x18x48xf32, #tpu.memory_space<vmem>>, vector<1x16x16xf32>
    %73 = arith.addf %71, %72 : vector<1x16x16xf32>
    %c0_89 = arith.constant 0 : index
    %c2_90 = arith.constant 2 : index
    %c32 = arith.constant 32 : index
    %74 = vector.load %arg11[%c0_89, %c2_90, %c32] : memref<1x18x48xf32, #tpu.memory_space<vmem>>, vector<1x16x16xf32>
    %75 = arith.addf %73, %74 : vector<1x16x16xf32>
    %c0_91 = arith.constant 0 : index
    %76 = memref.load %arg7[%c0_91] : memref<1xf32, #tpu.memory_space<smem>>
    %77 = vector.broadcast %76 : f32 to vector<1x16x16xf32>
    %78 = arith.addf %75, %77 : vector<1x16x16xf32>
    %79 = arith.negf %78 : vector<1x16x16xf32>
    %80 = math.exp %79 : vector<1x16x16xf32>
    %cst_92 = arith.constant 1.000000e+00 : f32
    %81 = vector.broadcast %cst_92 : f32 to vector<1x16x16xf32>
    %82 = arith.addf %81, %80 : vector<1x16x16xf32>
    %83 = arith.divf %81, %82 : vector<1x16x16xf32>
    %c0_93 = arith.constant 0 : index
    %c0_94 = arith.constant 0 : index
    %c0_95 = arith.constant 0 : index
    %84 = vector.load %arg8[%c0_93, %c0_94, %c0_95] : memref<1x16x16xf32, #tpu.memory_space<vmem>>, vector<1x16x16xf32>
    tpu.vector_store %arg8[%c0_93, %c0_94, %c0_95], %83 {strides = array<i32>} : memref<1x16x16xf32, #tpu.memory_space<vmem>>, vector<1x16x16xf32>,
    return
  }
  func.func @transform_0(%arg0: i32) -> (i32, i32, i32) {
    %c0_i32 = arith.constant 0 : i32
    %c0_i32_0 = arith.constant 0 : i32
    %c0_i32_1 = arith.constant 0 : i32
    return %arg0, %c0_i32, %c0_i32_0 : i32, i32, i32
  }
  func.func @transform_1(%arg0: i32) -> (i32, i32, i32) {
    %c0_i32 = arith.constant 0 : i32
    %c0_i32_0 = arith.constant 0 : i32
    %c0_i32_1 = arith.constant 0 : i32
    %c0_i32_2 = arith.constant 0 : i32
    return %c0_i32, %c0_i32_0, %c0_i32_1 : i32, i32, i32
  }
  func.func @transform_2(%arg0: i32) -> (i32, i32) {
    %c0_i32 = arith.constant 0 : i32
    %c0_i32_0 = arith.constant 0 : i32
    %c0_i32_1 = arith.constant 0 : i32
    return %c0_i32, %c0_i32_0 : i32, i32
  }
  func.func @transform_3(%arg0: i32) -> (i32, i32) {
    %c0_i32 = arith.constant 0 : i32
    %c0_i32_0 = arith.constant 0 : i32
    %c0_i32_1 = arith.constant 0 : i32
    return %c0_i32, %c0_i32_0 : i32, i32
  }
  func.func @transform_4(%arg0: i32) -> (i32, i32) {
    %c0_i32 = arith.constant 0 : i32
    %c0_i32_0 = arith.constant 0 : i32
    %c0_i32_1 = arith.constant 0 : i32
    return %c0_i32, %c0_i32_0 : i32, i32
  }
  func.func @transform_5(%arg0: i32) -> (i32, i32) {
    %c0_i32 = arith.constant 0 : i32
    %c0_i32_0 = arith.constant 0 : i32
    %c0_i32_1 = arith.constant 0 : i32
    return %c0_i32, %c0_i32_0 : i32, i32
  }
  func.func @transform_6(%arg0: i32) -> i32 {
    %c0_i32 = arith.constant 0 : i32
    %c0_i32_0 = arith.constant 0 : i32
    return %c0_i32 : i32
  }
  func.func @transform_7(%arg0: i32) -> (i32, i32, i32) {
    %c0_i32 = arith.constant 0 : i32
    %c0_i32_0 = arith.constant 0 : i32
    %c0_i32_1 = arith.constant 0 : i32
    return %arg0, %c0_i32, %c0_i32_0 : i32, i32, i32
  }
}

</mosaic_0001>

<bundles_post_ra>
// kernel: tile.13
= control target key start
LH: loop header
LB: loop body
LE: loop exit
PB: predicated region body
PF: predicated region fallthrough
CT: control target
= control target key end

     0   :  { %s28_s0 = inlined_call_operand.vmem [shape: f32[32], index: 0, kind: input, shape index: {}]   ;;  %s29_s1 = inlined_call_operand.vmem [shape: f32[16,32], index: 1, kind: output, shape index: {}]  }
   0x1   :  { %v4_v0 = vld [vmem:[%s28_s0] ss:$0 sm:$0xff] }
   0x2   :  { %5 = vst [vmem:[%s29_s1] sm:$0xff] %v4_v0  ;;  %8 = vst [vmem:[%s29_s1 + $0x8] sm:$0xff] %v4_v0 }

// kernel: tile.14
= control target key start
LH: loop header
LB: loop body
LE: loop exit
PB: predicated region body
PF: predicated region fallthrough
CT: control target
= control target key end

     0   :  { %s62_s8 = smov 96   ;;  %vm3_vm0 = vcmask 261120   ;;  %s64_s15 = smov 64   ;;  %vm9_vm1 = vcmask 1048320   ;;  %vm15_vm2 = vcmask 785920   ;;  %vm21_vm3 = vcmask 523520   ;;  %s99_s0 = inlined_call_operand.vmem [shape: f32[16,32], index: 0, kind: input, shape index: {}]   ;;  %s100_s1 = inlined_call_operand.vmem [shape: f32[1,512], index: 1, kind: output, shape index: {}]  }
   0x1   :  { %v53_v0 = vld [vmem:[%s99_s0 + $0x3] ss:$4 sm:$0xf]   ;;  %v54_v1 = vld [vmem:[%s99_s0 + $0x2] ss:$4 sm:$0xf]  }
   0x2   :  { %7 = vrot.lane.b32.xlu0 %v53_v0, %s62_s8  ;;  %v55_v2 = vld [vmem:[%s99_s0 + $0x1] ss:$4 sm:$0xf]   ;;  %v2_v3 = vld [vmem:[%s99_s0] ss:$4 sm:$0xf]  }
   0x3   :  { %s63_s0 = smov 32   ;;  %4 = vst.msk [vmem:[#allocation0] ss:$8 sm:$0xf] %vm3_vm0, %v2_v3  }
   0x4   :  { %19 = vrot.lane.b32.xlu1 %v55_v2, %s63_s0 }
   0x6   :  { %13 = vrot.lane.b32.xlu0 %v54_v1, %s64_s15 }
  0x74   :  { %v8_v4 = vpop.permute.xlu0 %7  }
  0x75   :  { %10 = vst.msk [vmem:[#allocation0] ss:$8 sm:$0xf] %vm9_vm1, %v8_v4  }
  0x76   :  { %v20_v5 = vpop.permute.xlu1 %19  }
  0x78   :  { %v14_v6 = vpop.permute.xlu0 %13  }
  0x79   :  { %16 = vst.msk [vmem:[#allocation0] ss:$8 sm:$0xf] %vm15_vm2, %v14_v6  }
  0x7a   :  { %22 = vst.msk [vmem:[#allocation0] ss:$8 sm:$0xf] %vm21_vm3, %v20_v5  }
  0x81   :  { %v27_v7 = vld [vmem:[#allocation0] sm:$0x1]  ;;  %v32_v8 = vld [vmem:[#allocation0 + $0x8] sm:$0x1]  ;;  %v38_v9 = vld [vmem:[#allocation0 + $0x10] sm:$0x1] }
  0x82   :  { %30 = vst [vmem:[%s100_s1] sm:$0x1] %v27_v7  ;;  %56 = vst [vmem:[%s100_s1 + $0x1] sm:$0x1] %v32_v8  ;;  %v45_v10 = vld [vmem:[#allocation0 + $0x18] sm:$0x1] }
  0x83   :  { %57 = vst [vmem:[%s100_s1 + $0x2] sm:$0x1] %v38_v9  ;;  %58 = vst [vmem:[%s100_s1 + $0x3] sm:$0x1] %v45_v10 }

// kernel: net_forward.1
= control target key start
LH: loop header
LB: loop body
LE: loop exit
PB: predicated region body
PF: predicated region fallthrough
CT: control target
= control target key end

     0   :  { %s6053_s0 = inlined_call_operand.vmem [shape: f32[2,28,252], index: 0, kind: input, shape index: {}]   ;;  %s6054_s1 = inlined_call_operand.vmem [shape: f32[5,252,512], index: 1, kind: input, shape index: {}]   ;;  %s6055_s2 = inlined_call_operand.vmem [shape: f32[1,512], index: 2, kind: input, shape index: {}]   ;;  %s6056_s3 = inlined_call_operand.vmem [shape: f32[256,256], index: 3, kind: input, shape index: {}]   ;;  %s6057_s4 = inlined_call_operand.vmem [shape: f32[1,512], index: 4, kind: input, shape index: {}]   ;;  %s6058_s5 = inlined_call_operand.vmem [shape: f32[512,48], index: 5, kind: input, shape index: {}]   ;;  %s6059_s6 = inlined_call_operand.<no memory space> [shape: f32[1], index: 6, kind: input, shape index: {}]   ;;  %s6060_s7 = inlined_call_operand.hbm [shape: f32[2,16,16], index: 7, kind: output, shape index: {}]  }
   0x1   :  { %12 = sst [smem:[#allocation5]] %s6059_s6 }
   0x2   :  { %13 = vsyncpa [#allocation7], 0 }
   0x3   :  { %15 = vsyncpa [#allocation7 + $0x1], 0  ;;  %s3523_s26 = smov 0   ;;  %s3525_s27 = smov 0  }
   0x4   :  { %s3527_s28 = smov 0   ;;  %s3529_s29 = smov 0  }
   0x5 LB: > { %s3544_s6 = sadd.s32 4294967295, %s3472_s29   ;;  %s2716_s30 = sadd.s32 4294967294, %s3472_s29   ;;  %s3472_s29 = sphi %s3529_s29, %s6066_s29   ;;  %s3468_s28 = sphi %s3527_s28, %s6065_s28   ;;  %s3464_s27 = sphi %s3525_s27, %s6064_s27   ;;  %s3460_s26 = sphi %s3523_s26, %s6063_s26  }
   0x6   : > { %s3548_s8 = sadd.s32 1, %s3472_s29   ;;  %s180_s9 = sadd.s32 1, %s3468_s28 }
   0x7   : > { %s177_s10 = ssub.s32 %s3472_s29, %s3548_s8  ;;  %p190_p0 = scmp.ne.s32.totalorder %s3468_s28, %s3464_s27 }
   0x8   : > { %p178_p1 = scmp.eq.s32.totalorder %s177_s10, 0  ;;  %p191_p2 = scmp.eq.s32.totalorder %s3544_s6, 1 }
   0x9   : > { %p196_p3 = scmp.ne.s32.totalorder %s3464_s27, %s3460_s26  ;;  %p197_p4 = scmp.eq.s32.totalorder %s2716_s30, 1 }
   0xa   : > { %s3559_s11 = scalar_select %p178_p1, %s3468_s28, %s180_s9  }
   0xb   : > { %p3561_p5 = por %p191_p2, %p190_p0  ;;  %p3565_p6 = por %p197_p4, %p196_p3 }
   0xc   : > { %p2719_p7 = scmp.ge.s32.totalorder %s3472_s29, 1  ;;  %p241_p8 = scmp.lt.s32.totalorder %s3472_s29, 3 }
   0xe   : > { %p242_p9 = pnand %p2719_p7, %p241_p8 }
   0xf   : > { %p273_p10 = scmp.lt.s32.totalorder (!%p242_p9), %s3544_s6, 1  ;;  %s3476_s16 = smov (!%p242_p9), 96  }
  0x10   : > { %245 = sbr.rel (%p242_p9) target bundleno = 1141 (0x475), region = 48  ;;  %s270_s17 = sand.u32 (!%p242_p9), 1, %s3464_s27  }
  0x11   : > { %s2720_s18 = sshll.u32 (!%p242_p9), %s270_s17, 4  ;;  %s3283_s19 = sshll.u32 (!%p242_p9), %s3544_s6, 8 }
  0x12   : > { %s272_s21 = scalar_lea.vmem (!%p242_p9), [#allocation6], %s2720_s18  ;;  %s6009_s30 = scalar_lea.hbm (!%p242_p9), %s6060_s7, %s3283_s19 }
  0x13   : > { %s2654_s22 = sshll.u32 (!%p242_p9), %s272_s21, 4  ;;  %s6013_s9 = scalar_lea.sflag (!%p242_p9), [#allocation7], %s270_s17  ;;  %s6011_s22 = int_to_ptr.vmem [resolvable:$true] %s2654_s22 }
  0x14   : > { %s3412_s10 = scalar_lea.vmem (!%p242_p9), %s6011_s22, 256 }
  0x15   : > { %v343_v0 = vld [vmem:[%s6054_s1 + $0x1e8] sm:$0xff]  ;;  %v345_v1 = vld [vmem:[%s6054_s1 + $0x1f8] sm:$0xff]  ;;  %v342_v2 = vld [vmem:[%s6054_s1 + $0x1e0] sm:$0xff]  ;;  %vm417_vm0 = vcmask 1043456   ;;  %s3903_s20 = scalar_select %p273_p10, %s3544_s6, 1  ;;  %vm410_vm1 = vcmask 1014784  }
  0x16   : > { %430 = vmatprep.subr.mxu0 %v343_v0  ;;  %507 = vmatprep.subr.mxu1 %v345_v1  ;;  %v344_v3 = vld [vmem:[%s6054_s1 + $0x1f0] sm:$0xff]  ;;  %v339_v4 = vld [vmem:[%s6054_s1 + $0x1c8] sm:$0xff]  ;;  %v341_v5 = vld [vmem:[%s6054_s1 + $0x1d8] sm:$0xff]  ;;  %vm733_vm2 = vcmask 1044480   ;;  %vm1081_vm3 = vcmask 1041408   ;;  %vm1429_vm4 = vcmask 1046528   ;;  %p3413_p11 = scmp.ne.s32.totalorder %s6011_s22, %s3412_s10 }
  0x17   : > { %431 = vmatpush1.msra.mxu0 %v342_v2  ;;  %508 = vmatpush1.msra.mxu1 %v344_v3  ;;  %v338_v6 = vld [vmem:[%s6054_s1 + $0x1c0] sm:$0xff]  ;;  %v340_v7 = vld [vmem:[%s6054_s1 + $0x1d0] sm:$0xff]  ;;  %v335_v8 = vld [vmem:[%s6054_s1 + $0x1a8] sm:$0xff]  ;;  %s3282_s23 = sshll.u32 %s3903_s20, 6  ;;  %vm2589_vm5 = vcmask 385024   ;;  %vm2592_vm6 = vcmask 392192  }
  0x18   : > { %432 = vmatprep.subr.mxu0 %v339_v4  ;;  %509 = vmatprep.subr.mxu1 %v341_v5  ;;  %v337_v9 = vld [vmem:[%s6054_s1 + $0x1b8] sm:$0xff]  ;;  %v334_v10 = vld [vmem:[%s6054_s1 + $0x1a0] sm:$0xff]  ;;  %v336_v11 = vld [vmem:[%s6054_s1 + $0x1b0] sm:$0xff]  ;;  %s3951_s24 = scalar_lea.vmem %s6053_s0, %s3282_s23  ;;  %s3475_s23 = smov 112   ;;  %vm2637_vm7 = vcmask 130048  }
  0x19   : > { %433 = vmatpush1.msra.mxu0 %v338_v6  ;;  %510 = vmatpush1.msra.mxu1 %v340_v7  ;;  %v331_v12 = vld [vmem:[%s6054_s1 + $0x188] sm:$0xff]  ;;  %v333_v13 = vld [vmem:[%s6054_s1 + $0x198] sm:$0xff]  ;;  %v330_v14 = vld [vmem:[%s6054_s1 + $0x180] sm:$0xff]  ;;  %s2621_s20 = sld [smem:[#allocation5]]  ;;  %p3414_p12 = pnand %p3413_p11, %p3561_p5 }
  0x1a   : > { %434 = vmatprep.subr.mxu0 %v335_v8  ;;  %511 = vmatprep.subr.mxu1 %v337_v9  ;;  %v332_v15 = vld [vmem:[%s6054_s1 + $0x190] sm:$0xff]  ;;  %v327_v16 = vld [vmem:[%s6054_s1 + $0x168] sm:$0xff]  ;;  %v329_v17 = vld [vmem:[%s6054_s1 + $0x178] sm:$0xff]  ;;  %s3477_s6 = smov [#allocation6]  }
  0x1b   : > { %435 = vmatpush1.msra.mxu0 %v334_v10  ;;  %512 = vmatpush1.msra.mxu1 %v336_v11  ;;  %v326_v18 = vld [vmem:[%s6054_s1 + $0x160] sm:$0xff]  ;;  %v328_v19 = vld [vmem:[%s6054_s1 + $0x170] sm:$0xff]  ;;  %v323_v20 = vld [vmem:[%s6054_s1 + $0x148] sm:$0xff]  ;;  %p3415_p13 = pneg %p3414_p12  ;;  %s3416_s14 = sshll.u32 %s3477_s6, 4  ;;  %s3417_s14 = int_to_ptr.vmem [resolvable:$false] %s3416_s14 }
  0x1c   : > { %436 = vmatprep.subr.mxu0 %v331_v12  ;;  %513 = vmatprep.subr.mxu1 %v333_v13  ;;  %v325_v21 = vld [vmem:[%s6054_s1 + $0x158] sm:$0xff]  ;;  %v322_v22 = vld [vmem:[%s6054_s1 + $0x140] sm:$0xff]  ;;  %v324_v23 = vld [vmem:[%s6054_s1 + $0x150] sm:$0xff]  ;;  %s3418_s15 = scalar_lea.vmem %s3417_s14, 512  ;;  %p3419_p0 = scmp.lt.s32.totalorder %s6011_s22, %s3417_s14 }
  0x1d   : > { %437 = vmatpush1.msra.mxu0 %v330_v14  ;;  %514 = vmatpush1.msra.mxu1 %v332_v15  ;;  %v319_v24 = vld [vmem:[%s6054_s1 + $0x128] sm:$0xff]  ;;  %v321_v25 = vld [vmem:[%s6054_s1 + $0x138] sm:$0xff]  ;;  %v318_v26 = vld [vmem:[%s6054_s1 + $0x120] sm:$0xff]  ;;  %p3420_p1 = scmp.lt.s32.totalorder %s3418_s15, %s3412_s10 }
  0x1e   : > { %438 = vmatprep.subr.mxu0 %v327_v16  ;;  %515 = vmatprep.subr.mxu1 %v329_v17  ;;  %v320_v27 = vld [vmem:[%s6054_s1 + $0x130] sm:$0xff]  ;;  %v315_v28 = vld [vmem:[%s6054_s1 + $0x108] sm:$0xff]  ;;  %v317_v29 = vld [vmem:[%s6054_s1 + $0x118] sm:$0xff] }
  0x1f   : > { %439 = vmatpush1.msra.mxu0 %v326_v18  ;;  %516 = vmatpush1.msra.mxu1 %v328_v19  ;;  %v314_v30 = vld [vmem:[%s6054_s1 + $0x100] sm:$0xff]  ;;  %v316_v31 = vld [vmem:[%s6054_s1 + $0x110] sm:$0xff]  ;;  %v311_v32 = vld [vmem:[%s6054_s1 + $0xe8] sm:$0xff]  ;;  %p3421_p2 = por %p3420_p1, %p3419_p0 }
  0x20   : > { %440 = vmatprep.subr.mxu0 %v323_v20  ;;  %517 = vmatprep.subr.mxu1 %v325_v21  ;;  %v313_v33 = vld [vmem:[%s6054_s1 + $0xf8] sm:$0xff]  ;;  %v310_v34 = vld [vmem:[%s6054_s1 + $0xe0] sm:$0xff]  ;;  %v312_v35 = vld [vmem:[%s6054_s1 + $0xf0] sm:$0xff] }
  0x21   : > { %441 = vmatpush1.msra.mxu0 %v322_v22  ;;  %518 = vmatpush1.msra.mxu1 %v324_v23  ;;  %v307_v36 = vld [vmem:[%s6054_s1 + $0xc8] sm:$0xff]  ;;  %v309_v37 = vld [vmem:[%s6054_s1 + $0xd8] sm:$0xff]  ;;  %v306_v38 = vld [vmem:[%s6054_s1 + $0xc0] sm:$0xff]  ;;  %p3422_p3 = pnand %p3421_p2, %p3415_p13 }
  0x22   : > { %442 = vmatprep.subr.mxu0 %v319_v24  ;;  %519 = vmatprep.subr.mxu1 %v321_v25  ;;  %v308_v39 = vld [vmem:[%s6054_s1 + $0xd0] sm:$0xff]  ;;  %v303_v40 = vld [vmem:[%s6054_s1 + $0xa8] sm:$0xff]  ;;  %v305_v41 = vld [vmem:[%s6054_s1 + $0xb8] sm:$0xff] }
  0x23   : > { %443 = vmatpush1.msra.mxu0 %v318_v26  ;;  %520 = vmatpush1.msra.mxu1 %v320_v27  ;;  %v302_v42 = vld [vmem:[%s6054_s1 + $0xa0] sm:$0xff]  ;;  %v304_v43 = vld [vmem:[%s6054_s1 + $0xb0] sm:$0xff]  ;;  %v299_v44 = vld [vmem:[%s6054_s1 + $0x88] sm:$0xff] }
  0x24   : > { %444 = vmatprep.subr.mxu0 %v315_v28  ;;  %521 = vmatprep.subr.mxu1 %v317_v29  ;;  %v301_v45 = vld [vmem:[%s6054_s1 + $0x98] sm:$0xff]  ;;  %v298_v46 = vld [vmem:[%s6054_s1 + $0x80] sm:$0xff]  ;;  %v300_v47 = vld [vmem:[%s6054_s1 + $0x90] sm:$0xff] }
  0x25   : > { %445 = vmatpush1.msra.mxu0 %v314_v30  ;;  %522 = vmatpush1.msra.mxu1 %v316_v31  ;;  %v295_v48 = vld [vmem:[%s6054_s1 + $0x68] sm:$0xff]  ;;  %v297_v49 = vld [vmem:[%s6054_s1 + $0x78] sm:$0xff]  ;;  %v294_v50 = vld [vmem:[%s6054_s1 + $0x60] sm:$0xff] }
  0x26   : > { %446 = vmatprep.subr.mxu0 %v311_v32  ;;  %523 = vmatprep.subr.mxu1 %v313_v33  ;;  %v296_v51 = vld [vmem:[%s6054_s1 + $0x70] sm:$0xff]  ;;  %v291_v52 = vld [vmem:[%s6054_s1 + $0x48] sm:$0xff]  ;;  %v293_v53 = vld [vmem:[%s6054_s1 + $0x58] sm:$0xff] }
  0x27   : > { %447 = vmatpush1.msra.mxu0 %v310_v34  ;;  %524 = vmatpush1.msra.mxu1 %v312_v35  ;;  %v290_v54 = vld [vmem:[%s6054_s1 + $0x40] sm:$0xff]  ;;  %v292_v55 = vld [vmem:[%s6054_s1 + $0x50] sm:$0xff]  ;;  %v287_v56 = vld [vmem:[%s6054_s1 + $0x28] sm:$0xff] }
  0x28   : > { %448 = vmatprep.subr.mxu0 %v307_v36  ;;  %525 = vmatprep.subr.mxu1 %v309_v37  ;;  %v289_v57 = vld [vmem:[%s6054_s1 + $0x38] sm:$0xff]  ;;  %v286_v58 = vld [vmem:[%s6054_s1 + $0x20] sm:$0xff]  ;;  %v288_v59 = vld [vmem:[%s6054_s1 + $0x30] sm:$0xff] }
  0x29   : > { %449 = vmatpush1.msra.mxu0 %v306_v38  ;;  %526 = vmatpush1.msra.mxu1 %v308_v39  ;;  %v283_v60 = vld [vmem:[%s6054_s1 + $0x8] sm:$0xff]  ;;  %v285_v61 = vld [vmem:[%s6054_s1 + $0x18] sm:$0xff]  ;;  %v282_v62 = vld [vmem:[%s6054_s1] sm:$0xff] }
  0x2a   : > { %450 = vmatprep.subr.mxu0 %v303_v40  ;;  %527 = vmatprep.subr.mxu1 %v305_v41  ;;  %v284_v63 = vld [vmem:[%s6054_s1 + $0x10] sm:$0xff]  ;;  %v407_v0 = vld [vmem:[%s6054_s1 + $0x3e8] sm:$0xf]  ;;  %v409_v1 = vld [vmem:[%s6054_s1 + $0x3f8] sm:$0xf] }
  0x2b   : > { %451 = vmatpush1.msra.mxu0 %v302_v42  ;;  %528 = vmatpush1.msra.mxu1 %v304_v43  ;;  %v406_v2 = vld [vmem:[%s6054_s1 + $0x3e0] sm:$0xf]  ;;  %v408_v3 = vld [vmem:[%s6054_s1 + $0x3f0] sm:$0xf]  ;;  %v403_v4 = vld [vmem:[%s6054_s1 + $0x3c8] sm:$0xff] }
  0x2c   : > { %452 = vmatprep.subr.mxu0 %v299_v44  ;;  %529 = vmatprep.subr.mxu1 %v301_v45  ;;  %v405_v5 = vld [vmem:[%s6054_s1 + $0x3d8] sm:$0xff]  ;;  %v402_v6 = vld [vmem:[%s6054_s1 + $0x3c0] sm:$0xff]  ;;  %v404_v7 = vld [vmem:[%s6054_s1 + $0x3d0] sm:$0xff] }
  0x2d   : > { %453 = vmatpush1.msra.mxu0 %v298_v46  ;;  %530 = vmatpush1.msra.mxu1 %v300_v47  ;;  %v399_v8 = vld [vmem:[%s6054_s1 + $0x3a8] sm:$0xff]  ;;  %v401_v9 = vld [vmem:[%s6054_s1 + $0x3b8] sm:$0xff]  ;;  %v398_v10 = vld [vmem:[%s6054_s1 + $0x3a0] sm:$0xff] }
  0x2e   : > { %454 = vmatprep.subr.mxu0 %v295_v48  ;;  %531 = vmatprep.subr.mxu1 %v297_v49  ;;  %v400_v11 = vld [vmem:[%s6054_s1 + $0x3b0] sm:$0xff]  ;;  %v395_v12 = vld [vmem:[%s6054_s1 + $0x388] sm:$0xff]  ;;  %v397_v13 = vld [vmem:[%s6054_s1 + $0x398] sm:$0xff] }
  0x2f   : > { %455 = vmatpush1.msra.mxu0 %v294_v50  ;;  %532 = vmatpush1.msra.mxu1 %v296_v51  ;;  %v394_v14 = vld [vmem:[%s6054_s1 + $0x380] sm:$0xff]  ;;  %v396_v15 = vld [vmem:[%s6054_s1 + $0x390] sm:$0xff]  ;;  %v391_v16 = vld [vmem:[%s6054_s1 + $0x368] sm:$0xff] }
  0x30   : > { %456 = vmatprep.subr.mxu0 %v291_v52  ;;  %533 = vmatprep.subr.mxu1 %v293_v53  ;;  %v393_v17 = vld [vmem:[%s6054_s1 + $0x378] sm:$0xff]  ;;  %v390_v18 = vld [vmem:[%s6054_s1 + $0x360] sm:$0xff]  ;;  %v392_v19 = vld [vmem:[%s6054_s1 + $0x370] sm:$0xff] }
  0x31   : > { %457 = vmatpush1.msra.mxu0 %v290_v54  ;;  %534 = vmatpush1.msra.mxu1 %v292_v55  ;;  %v387_v20 = vld [vmem:[%s6054_s1 + $0x348] sm:$0xff]  ;;  %v389_v21 = vld [vmem:[%s6054_s1 + $0x358] sm:$0xff]  ;;  %v386_v22 = vld [vmem:[%s6054_s1 + $0x340] sm:$0xff] }
  0x32   : > { %458 = vmatprep.subr.mxu0 %v287_v56  ;;  %535 = vmatprep.subr.mxu1 %v289_v57  ;;  %v388_v23 = vld [vmem:[%s6054_s1 + $0x350] sm:$0xff]  ;;  %v383_v24 = vld [vmem:[%s6054_s1 + $0x328] sm:$0xff]  ;;  %v385_v25 = vld [vmem:[%s6054_s1 + $0x338] sm:$0xff] }
  0x33   : > { %459 = vmatpush1.msra.mxu0 %v286_v58  ;;  %536 = vmatpush1.msra.mxu1 %v288_v59  ;;  %v382_v26 = vld [vmem:[%s6054_s1 + $0x320] sm:$0xff]  ;;  %v384_v27 = vld [vmem:[%s6054_s1 + $0x330] sm:$0xff]  ;;  %v379_v28 = vld [vmem:[%s6054_s1 + $0x308] sm:$0xff] }
  0x34   : > { %460 = vmatprep.subr.mxu0 %v283_v60  ;;  %537 = vmatprep.subr.mxu1 %v285_v61  ;;  %v381_v29 = vld [vmem:[%s6054_s1 + $0x318] sm:$0xff]  ;;  %v378_v30 = vld [vmem:[%s6054_s1 + $0x300] sm:$0xff]  ;;  %v380_v31 = vld [vmem:[%s6054_s1 + $0x310] sm:$0xff] }
  0x35   : > { %461 = vmatpush1.msra.mxu0 %v282_v62  ;;  %538 = vmatpush1.msra.mxu1 %v284_v63  ;;  %v375_v32 = vld [vmem:[%s6054_s1 + $0x2e8] sm:$0xff]  ;;  %v377_v33 = vld [vmem:[%s6054_s1 + $0x2f8] sm:$0xff]  ;;  %v374_v34 = vld [vmem:[%s6054_s1 + $0x2e0] sm:$0xff] }
  0x36   : > { %2723 = vmatprep.subr.msk.mxu0 %vm417_vm0, %v407_v0  ;;  %2727 = vmatprep.subr.msk.mxu1 %vm417_vm0, %v409_v1  ;;  %v376_v35 = vld [vmem:[%s6054_s1 + $0x2f0] sm:$0xff]  ;;  %v371_v36 = vld [vmem:[%s6054_s1 + $0x2c8] sm:$0xff]  ;;  %v373_v37 = vld [vmem:[%s6054_s1 + $0x2d8] sm:$0xff] }
  0x37   : > { %2724 = vmatpush2.msk.msra.mxu0 %vm417_vm0, %v406_v2  ;;  %2728 = vmatpush2.msk.msra.mxu1 %vm417_vm0, %v408_v3  ;;  %v370_v38 = vld [vmem:[%s6054_s1 + $0x2c0] sm:$0xff]  ;;  %v372_v39 = vld [vmem:[%s6054_s1 + $0x2d0] sm:$0xff]  ;;  %v367_v40 = vld [vmem:[%s6054_s1 + $0x2a8] sm:$0xff] }
  0x38   : > { %464 = vmatprep.subr.mxu0 %v403_v4  ;;  %541 = vmatprep.subr.mxu1 %v405_v5  ;;  %v369_v41 = vld [vmem:[%s6054_s1 + $0x2b8] sm:$0xff]  ;;  %v366_v42 = vld [vmem:[%s6054_s1 + $0x2a0] sm:$0xff]  ;;  %v368_v43 = vld [vmem:[%s6054_s1 + $0x2b0] sm:$0xff] }
  0x39   : > { %465 = vmatpush2.msra.mxu0 %v402_v6  ;;  %542 = vmatpush2.msra.mxu1 %v404_v7  ;;  %v363_v44 = vld [vmem:[%s6054_s1 + $0x288] sm:$0xff]  ;;  %v365_v45 = vld [vmem:[%s6054_s1 + $0x298] sm:$0xff]  ;;  %v362_v46 = vld [vmem:[%s6054_s1 + $0x280] sm:$0xff] }
  0x3a   : > { %466 = vmatprep.subr.mxu0 %v399_v8  ;;  %543 = vmatprep.subr.mxu1 %v401_v9  ;;  %v364_v47 = vld [vmem:[%s6054_s1 + $0x290] sm:$0xff]  ;;  %v359_v48 = vld [vmem:[%s6054_s1 + $0x268] sm:$0xff]  ;;  %v361_v49 = vld [vmem:[%s6054_s1 + $0x278] sm:$0xff] }
  0x3b   : > { %467 = vmatpush2.msra.mxu0 %v398_v10  ;;  %544 = vmatpush2.msra.mxu1 %v400_v11  ;;  %v358_v50 = vld [vmem:[%s6054_s1 + $0x260] sm:$0xff]  ;;  %v360_v51 = vld [vmem:[%s6054_s1 + $0x270] sm:$0xff]  ;;  %v355_v52 = vld [vmem:[%s6054_s1 + $0x248] sm:$0xff] }
  0x3c   : > { %468 = vmatprep.subr.mxu0 %v395_v12  ;;  %545 = vmatprep.subr.mxu1 %v397_v13  ;;  %v357_v53 = vld [vmem:[%s6054_s1 + $0x258] sm:$0xff]  ;;  %v354_v54 = vld [vmem:[%s6054_s1 + $0x240] sm:$0xff]  ;;  %v356_v55 = vld [vmem:[%s6054_s1 + $0x250] sm:$0xff] }
  0x3d   : > { %469 = vmatpush2.msra.mxu0 %v394_v14  ;;  %546 = vmatpush2.msra.mxu1 %v396_v15  ;;  %v351_v56 = vld [vmem:[%s6054_s1 + $0x228] sm:$0xff]  ;;  %v353_v57 = vld [vmem:[%s6054_s1 + $0x238] sm:$0xff]  ;;  %v350_v58 = vld [vmem:[%s6054_s1 + $0x220] sm:$0xff] }
  0x3e   : > { %470 = vmatprep.subr.mxu0 %v391_v16  ;;  %547 = vmatprep.subr.mxu1 %v393_v17  ;;  %v352_v59 = vld [vmem:[%s6054_s1 + $0x230] sm:$0xff]  ;;  %v347_v60 = vld [vmem:[%s6054_s1 + $0x208] sm:$0xff]  ;;  %v349_v61 = vld [vmem:[%s6054_s1 + $0x218] sm:$0xff] }
  0x3f   : > { %471 = vmatpush2.msra.mxu0 %v390_v18  ;;  %548 = vmatpush2.msra.mxu1 %v392_v19  ;;  %v346_v62 = vld [vmem:[%s6054_s1 + $0x200] sm:$0xff]  ;;  %v279_v63 = vld [vmem:[%s3951_s24 + $0x8] sm:$0xff]  ;;  %v348_v0 = vld [vmem:[%s6054_s1 + $0x210] sm:$0xff] }
  0x40   : > { %472 = vmatprep.subr.mxu0 %v387_v20  ;;  %549 = vmatprep.subr.mxu1 %v389_v21  ;;  %v278_v1 = vld [vmem:[%s3951_s24] sm:$0xff]  ;;  %v2792_v2 = vld [vmem:[%s6054_s1 + $0x5e8] sm:$0xff]  ;;  %v2794_v3 = vld [vmem:[%s6054_s1 + $0x5f8] sm:$0xff] }
  0x41   : > { %473 = vmatpush2.msra.mxu0 %v386_v22  ;;  %550 = vmatpush2.msra.mxu1 %v388_v23  ;;  %v2791_v4 = vld [vmem:[%s6054_s1 + $0x5e0] sm:$0xff]  ;;  %v2793_v5 = vld [vmem:[%s6054_s1 + $0x5f0] sm:$0xff]  ;;  %v2788_v6 = vld [vmem:[%s6054_s1 + $0x5c8] sm:$0xff] }
  0x42   : > { %474 = vmatprep.subr.mxu0 %v383_v24  ;;  %551 = vmatprep.subr.mxu1 %v385_v25  ;;  %v2790_v7 = vld [vmem:[%s6054_s1 + $0x5d8] sm:$0xff]  ;;  %v2787_v8 = vld [vmem:[%s6054_s1 + $0x5c0] sm:$0xff]  ;;  %v2789_v9 = vld [vmem:[%s6054_s1 + $0x5d0] sm:$0xff] }
  0x43   : > { %475 = vmatpush2.msra.mxu0 %v382_v26  ;;  %552 = vmatpush2.msra.mxu1 %v384_v27  ;;  %v2784_v10 = vld [vmem:[%s6054_s1 + $0x5a8] sm:$0xff]  ;;  %v2786_v11 = vld [vmem:[%s6054_s1 + $0x5b8] sm:$0xff]  ;;  %v2783_v12 = vld [vmem:[%s6054_s1 + $0x5a0] sm:$0xff] }
  0x44   : > { %476 = vmatprep.subr.mxu0 %v379_v28  ;;  %553 = vmatprep.subr.mxu1 %v381_v29  ;;  %v2785_v13 = vld [vmem:[%s6054_s1 + $0x5b0] sm:$0xff]  ;;  %v2780_v14 = vld [vmem:[%s6054_s1 + $0x588] sm:$0xff]  ;;  %v2782_v15 = vld [vmem:[%s6054_s1 + $0x598] sm:$0xff] }
  0x45   : > { %477 = vmatpush2.msra.mxu0 %v378_v30  ;;  %554 = vmatpush2.msra.mxu1 %v380_v31  ;;  %v2779_v16 = vld [vmem:[%s6054_s1 + $0x580] sm:$0xff]  ;;  %v2781_v17 = vld [vmem:[%s6054_s1 + $0x590] sm:$0xff]  ;;  %v2776_v18 = vld [vmem:[%s6054_s1 + $0x568] sm:$0xff] }
  0x46   : > { %478 = vmatprep.subr.mxu0 %v375_v32  ;;  %555 = vmatprep.subr.mxu1 %v377_v33  ;;  %v2778_v19 = vld [vmem:[%s6054_s1 + $0x578] sm:$0xff]  ;;  %v2775_v20 = vld [vmem:[%s6054_s1 + $0x560] sm:$0xff]  ;;  %v2777_v21 = vld [vmem:[%s6054_s1 + $0x570] sm:$0xff] }
  0x47   : > { %479 = vmatpush2.msra.mxu0 %v374_v34  ;;  %556 = vmatpush2.msra.mxu1 %v376_v35  ;;  %v2772_v22 = vld [vmem:[%s6054_s1 + $0x548] sm:$0xff]  ;;  %v2774_v23 = vld [vmem:[%s6054_s1 + $0x558] sm:$0xff]  ;;  %v2771_v24 = vld [vmem:[%s6054_s1 + $0x540] sm:$0xff] }
  0x48   : > { %480 = vmatprep.subr.mxu0 %v371_v36  ;;  %557 = vmatprep.subr.mxu1 %v373_v37  ;;  %v2773_v25 = vld [vmem:[%s6054_s1 + $0x550] sm:$0xff]  ;;  %v2768_v26 = vld [vmem:[%s6054_s1 + $0x528] sm:$0xff]  ;;  %v2770_v27 = vld [vmem:[%s6054_s1 + $0x538] sm:$0xff] }
  0x49   : > { %481 = vmatpush2.msra.mxu0 %v370_v38  ;;  %558 = vmatpush2.msra.mxu1 %v372_v39  ;;  %v2767_v28 = vld [vmem:[%s6054_s1 + $0x520] sm:$0xff]  ;;  %v2769_v29 = vld [vmem:[%s6054_s1 + $0x530] sm:$0xff]  ;;  %v2764_v30 = vld [vmem:[%s6054_s1 + $0x508] sm:$0xff] }
  0x4a   : > { %482 = vmatprep.subr.mxu0 %v367_v40  ;;  %559 = vmatprep.subr.mxu1 %v369_v41  ;;  %v2766_v31 = vld [vmem:[%s6054_s1 + $0x518] sm:$0xff]  ;;  %v2763_v32 = vld [vmem:[%s6054_s1 + $0x500] sm:$0xff]  ;;  %v2765_v33 = vld [vmem:[%s6054_s1 + $0x510] sm:$0xff] }
  0x4b   : > { %483 = vmatpush2.msra.mxu0 %v366_v42  ;;  %560 = vmatpush2.msra.mxu1 %v368_v43  ;;  %v2760_v34 = vld [vmem:[%s6054_s1 + $0x4e8] sm:$0xff]  ;;  %v2762_v35 = vld [vmem:[%s6054_s1 + $0x4f8] sm:$0xff]  ;;  %v2759_v36 = vld [vmem:[%s6054_s1 + $0x4e0] sm:$0xff] }
  0x4c   : > { %484 = vmatprep.subr.mxu0 %v363_v44  ;;  %561 = vmatprep.subr.mxu1 %v365_v45  ;;  %v2761_v37 = vld [vmem:[%s6054_s1 + $0x4f0] sm:$0xff]  ;;  %v2756_v38 = vld [vmem:[%s6054_s1 + $0x4c8] sm:$0xff]  ;;  %v2758_v39 = vld [vmem:[%s6054_s1 + $0x4d8] sm:$0xff] }
  0x4d   : > { %485 = vmatpush2.msra.mxu0 %v362_v46  ;;  %562 = vmatpush2.msra.mxu1 %v364_v47  ;;  %v2755_v40 = vld [vmem:[%s6054_s1 + $0x4c0] sm:$0xff]  ;;  %v2757_v41 = vld [vmem:[%s6054_s1 + $0x4d0] sm:$0xff]  ;;  %v2752_v42 = vld [vmem:[%s6054_s1 + $0x4a8] sm:$0xff] }
  0x4e   : > { %486 = vmatprep.subr.mxu0 %v359_v48  ;;  %563 = vmatprep.subr.mxu1 %v361_v49  ;;  %v2754_v43 = vld [vmem:[%s6054_s1 + $0x4b8] sm:$0xff]  ;;  %v2751_v44 = vld [vmem:[%s6054_s1 + $0x4a0] sm:$0xff]  ;;  %v2753_v45 = vld [vmem:[%s6054_s1 + $0x4b0] sm:$0xff] }
  0x4f   : > { %487 = vmatpush2.msra.mxu0 %v358_v50  ;;  %564 = vmatpush2.msra.mxu1 %v360_v51  ;;  %v2748_v46 = vld [vmem:[%s6054_s1 + $0x488] sm:$0xff]  ;;  %v2750_v47 = vld [vmem:[%s6054_s1 + $0x498] sm:$0xff]  ;;  %v2747_v48 = vld [vmem:[%s6054_s1 + $0x480] sm:$0xff] }
  0x50   : > { %488 = vmatprep.subr.mxu0 %v355_v52  ;;  %565 = vmatprep.subr.mxu1 %v357_v53  ;;  %v2749_v49 = vld [vmem:[%s6054_s1 + $0x490] sm:$0xff]  ;;  %v2744_v50 = vld [vmem:[%s6054_s1 + $0x468] sm:$0xff]  ;;  %v2746_v51 = vld [vmem:[%s6054_s1 + $0x478] sm:$0xff] }
  0x51   : > { %489 = vmatpush2.msra.mxu0 %v354_v54  ;;  %566 = vmatpush2.msra.mxu1 %v356_v55  ;;  %v2743_v52 = vld [vmem:[%s6054_s1 + $0x460] sm:$0xff]  ;;  %v2745_v53 = vld [vmem:[%s6054_s1 + $0x470] sm:$0xff]  ;;  %v2740_v54 = vld [vmem:[%s6054_s1 + $0x448] sm:$0xff] }
  0x52   : > { %490 = vmatprep.subr.mxu0 %v351_v56  ;;  %567 = vmatprep.subr.mxu1 %v353_v57  ;;  %v2742_v55 = vld [vmem:[%s6054_s1 + $0x458] sm:$0xff]  ;;  %v2739_v56 = vld [vmem:[%s6054_s1 + $0x440] sm:$0xff]  ;;  %v2741_v57 = vld [vmem:[%s6054_s1 + $0x450] sm:$0xff] }
  0x53   : > { %491 = vmatpush2.msra.mxu0 %v350_v58  ;;  %568 = vmatpush2.msra.mxu1 %v352_v59  ;;  %v2736_v58 = vld [vmem:[%s6054_s1 + $0x428] sm:$0xff]  ;;  %v2738_v59 = vld [vmem:[%s6054_s1 + $0x438] sm:$0xff] }
  0x54   : > { %492 = vmatprep.subr.mxu0 %v347_v60  ;;  %569 = vmatprep.subr.mxu1 %v349_v61  ;;  %v2735_v60 = vld [vmem:[%s6054_s1 + $0x420] sm:$0xff]  ;;  %v2737_v61 = vld [vmem:[%s6054_s1 + $0x430] sm:$0xff] }
  0x55   : > { %493 = vmatpush2.msra.mxu0 %v346_v62  ;;  %2725 = vmatprep.mubr.msk.f32.mxu0 %vm410_vm1, %v279_v63  ;;  %v2732_v62 = vld [vmem:[%s6054_s1 + $0x408] sm:$0xff] }
  0x56   : > { %570 = vmatpush2.msra.mxu1 %v348_v0  ;;  %2729 = vmatprep.mubr.msk.f32.mxu1 %vm410_vm1, %v279_v63  ;;  %v2734_v63 = vld [vmem:[%s6054_s1 + $0x418] sm:$0xff]  ;;  %v2731_v0 = vld [vmem:[%s6054_s1 + $0x400] sm:$0xff] }
  0x57   : > { %495 = vmatmul.mubr.f32.vlgmr.msra.gmra.mxu0 %v278_v1  ;;  %572 = vmatmul.mubr.f32.vlgmr.msra.gmra.mxu1 %v278_v1  ;;  %v2733_v1 = vld [vmem:[%s6054_s1 + $0x410] sm:$0xff] }
  0x58   : > { %762 = vmatprep.subr.mxu0 %v2792_v2  ;;  %839 = vmatprep.subr.mxu1 %v2794_v3  ;;  %v2856_v2 = vld [vmem:[%s6054_s1 + $0x7e8] sm:$0xf]  ;;  %v2858_v3 = vld [vmem:[%s6054_s1 + $0x7f8] sm:$0xf] }
  0x59   : > { %763 = vmatpush1.msra.mxu0 %v2791_v4  ;;  %840 = vmatpush1.msra.mxu1 %v2793_v5  ;;  %v2855_v4 = vld [vmem:[%s6054_s1 + $0x7e0] sm:$0xf]  ;;  %v2857_v5 = vld [vmem:[%s6054_s1 + $0x7f0] sm:$0xf] }
  0x5a   : > { %764 = vmatprep.subr.mxu0 %v2788_v6  ;;  %841 = vmatprep.subr.mxu1 %v2790_v7  ;;  %v2852_v6 = vld [vmem:[%s6054_s1 + $0x7c8] sm:$0xff]  ;;  %v2854_v7 = vld [vmem:[%s6054_s1 + $0x7d8] sm:$0xff] }
  0x5b   : > { %765 = vmatpush1.msra.mxu0 %v2787_v8  ;;  %842 = vmatpush1.msra.mxu1 %v2789_v9  ;;  %v2851_v8 = vld [vmem:[%s6054_s1 + $0x7c0] sm:$0xff]  ;;  %v2853_v9 = vld [vmem:[%s6054_s1 + $0x7d0] sm:$0xff] }
  0x5c   : > { %766 = vmatprep.subr.mxu0 %v2784_v10  ;;  %843 = vmatprep.subr.mxu1 %v2786_v11  ;;  %v2848_v10 = vld [vmem:[%s6054_s1 + $0x7a8] sm:$0xff]  ;;  %v2850_v11 = vld [vmem:[%s6054_s1 + $0x7b8] sm:$0xff] }
  0x5d   : > { %767 = vmatpush1.msra.mxu0 %v2783_v12  ;;  %844 = vmatpush1.msra.mxu1 %v2785_v13  ;;  %v2847_v12 = vld [vmem:[%s6054_s1 + $0x7a0] sm:$0xff]  ;;  %v2849_v13 = vld [vmem:[%s6054_s1 + $0x7b0] sm:$0xff] }
  0x5e   : > { %768 = vmatprep.subr.mxu0 %v2780_v14  ;;  %845 = vmatprep.subr.mxu1 %v2782_v15  ;;  %v2844_v14 = vld [vmem:[%s6054_s1 + $0x788] sm:$0xff]  ;;  %v2846_v15 = vld [vmem:[%s6054_s1 + $0x798] sm:$0xff] }
  0x5f   : > { %769 = vmatpush1.msra.mxu0 %v2779_v16  ;;  %846 = vmatpush1.msra.mxu1 %v2781_v17  ;;  %v2843_v16 = vld [vmem:[%s6054_s1 + $0x780] sm:$0xff]  ;;  %v2845_v17 = vld [vmem:[%s6054_s1 + $0x790] sm:$0xff] }
  0x60   : > { %770 = vmatprep.subr.mxu0 %v2776_v18  ;;  %847 = vmatprep.subr.mxu1 %v2778_v19  ;;  %v2840_v18 = vld [vmem:[%s6054_s1 + $0x768] sm:$0xff]  ;;  %v2842_v19 = vld [vmem:[%s6054_s1 + $0x778] sm:$0xff] }
  0x61   : > { %771 = vmatpush1.msra.mxu0 %v2775_v20  ;;  %848 = vmatpush1.msra.mxu1 %v2777_v21  ;;  %v2839_v20 = vld [vmem:[%s6054_s1 + $0x760] sm:$0xff]  ;;  %v2841_v21 = vld [vmem:[%s6054_s1 + $0x770] sm:$0xff] }
  0x62   : > { %772 = vmatprep.subr.mxu0 %v2772_v22  ;;  %849 = vmatprep.subr.mxu1 %v2774_v23  ;;  %v2836_v22 = vld [vmem:[%s6054_s1 + $0x748] sm:$0xff]  ;;  %v2838_v23 = vld [vmem:[%s6054_s1 + $0x758] sm:$0xff] }
  0x63   : > { %773 = vmatpush1.msra.mxu0 %v2771_v24  ;;  %850 = vmatpush1.msra.mxu1 %v2773_v25  ;;  %v2835_v24 = vld [vmem:[%s6054_s1 + $0x740] sm:$0xff]  ;;  %v2837_v25 = vld [vmem:[%s6054_s1 + $0x750] sm:$0xff] }
  0x64   : > { %774 = vmatprep.subr.mxu0 %v2768_v26  ;;  %851 = vmatprep.subr.mxu1 %v2770_v27  ;;  %v2832_v26 = vld [vmem:[%s6054_s1 + $0x728] sm:$0xff]  ;;  %v2834_v27 = vld [vmem:[%s6054_s1 + $0x738] sm:$0xff] }
  0x65   : > { %775 = vmatpush1.msra.mxu0 %v2767_v28  ;;  %852 = vmatpush1.msra.mxu1 %v2769_v29  ;;  %v2831_v28 = vld [vmem:[%s6054_s1 + $0x720] sm:$0xff]  ;;  %v2833_v29 = vld [vmem:[%s6054_s1 + $0x730] sm:$0xff] }
  0x66   : > { %776 = vmatprep.subr.mxu0 %v2764_v30  ;;  %853 = vmatprep.subr.mxu1 %v2766_v31  ;;  %v2828_v30 = vld [vmem:[%s6054_s1 + $0x708] sm:$0xff]  ;;  %v2830_v31 = vld [vmem:[%s6054_s1 + $0x718] sm:$0xff] }
  0x67   : > { %777 = vmatpush1.msra.mxu0 %v2763_v32  ;;  %854 = vmatpush1.msra.mxu1 %v2765_v33  ;;  %v2827_v32 = vld [vmem:[%s6054_s1 + $0x700] sm:$0xff]  ;;  %v2829_v33 = vld [vmem:[%s6054_s1 + $0x710] sm:$0xff] }
  0x68   : > { %778 = vmatprep.subr.mxu0 %v2760_v34  ;;  %855 = vmatprep.subr.mxu1 %v2762_v35  ;;  %v2824_v34 = vld [vmem:[%s6054_s1 + $0x6e8] sm:$0xff]  ;;  %v2826_v35 = vld [vmem:[%s6054_s1 + $0x6f8] sm:$0xff] }
  0x69   : > { %779 = vmatpush1.msra.mxu0 %v2759_v36  ;;  %856 = vmatpush1.msra.mxu1 %v2761_v37  ;;  %v2823_v36 = vld [vmem:[%s6054_s1 + $0x6e0] sm:$0xff]  ;;  %v2825_v37 = vld [vmem:[%s6054_s1 + $0x6f0] sm:$0xff] }
  0x6a   : > { %780 = vmatprep.subr.mxu0 %v2756_v38  ;;  %857 = vmatprep.subr.mxu1 %v2758_v39  ;;  %v2820_v38 = vld [vmem:[%s6054_s1 + $0x6c8] sm:$0xff]  ;;  %v2822_v39 = vld [vmem:[%s6054_s1 + $0x6d8] sm:$0xff] }
  0x6b   : > { %781 = vmatpush1.msra.mxu0 %v2755_v40  ;;  %858 = vmatpush1.msra.mxu1 %v2757_v41  ;;  %v2819_v40 = vld [vmem:[%s6054_s1 + $0x6c0] sm:$0xff]  ;;  %v2821_v41 = vld [vmem:[%s6054_s1 + $0x6d0] sm:$0xff] }
  0x6c   : > { %782 = vmatprep.subr.mxu0 %v2752_v42  ;;  %859 = vmatprep.subr.mxu1 %v2754_v43  ;;  %v2816_v42 = vld [vmem:[%s6054_s1 + $0x6a8] sm:$0xff]  ;;  %v2818_v43 = vld [vmem:[%s6054_s1 + $0x6b8] sm:$0xff] }
  0x6d   : > { %783 = vmatpush1.msra.mxu0 %v2751_v44  ;;  %860 = vmatpush1.msra.mxu1 %v2753_v45  ;;  %v2815_v44 = vld [vmem:[%s6054_s1 + $0x6a0] sm:$0xff]  ;;  %v2817_v45 = vld [vmem:[%s6054_s1 + $0x6b0] sm:$0xff] }
  0x6e   : > { %784 = vmatprep.subr.mxu0 %v2748_v46  ;;  %861 = vmatprep.subr.mxu1 %v2750_v47  ;;  %v2812_v46 = vld [vmem:[%s6054_s1 + $0x688] sm:$0xff]  ;;  %v2814_v47 = vld [vmem:[%s6054_s1 + $0x698] sm:$0xff] }
  0x6f   : > { %785 = vmatpush1.msra.mxu0 %v2747_v48  ;;  %862 = vmatpush1.msra.mxu1 %v2749_v49  ;;  %v2811_v48 = vld [vmem:[%s6054_s1 + $0x680] sm:$0xff]  ;;  %v2813_v49 = vld [vmem:[%s6054_s1 + $0x690] sm:$0xff] }
  0x70   : > { %786 = vmatprep.subr.mxu0 %v2744_v50  ;;  %863 = vmatprep.subr.mxu1 %v2746_v51  ;;  %v2808_v50 = vld [vmem:[%s6054_s1 + $0x668] sm:$0xff]  ;;  %v2810_v51 = vld [vmem:[%s6054_s1 + $0x678] sm:$0xff] }
  0x71   : > { %787 = vmatpush1.msra.mxu0 %v2743_v52  ;;  %864 = vmatpush1.msra.mxu1 %v2745_v53  ;;  %v2807_v52 = vld [vmem:[%s6054_s1 + $0x660] sm:$0xff]  ;;  %v2809_v53 = vld [vmem:[%s6054_s1 + $0x670] sm:$0xff] }
  0x72   : > { %788 = vmatprep.subr.mxu0 %v2740_v54  ;;  %865 = vmatprep.subr.mxu1 %v2742_v55  ;;  %v4328_v54 = vld [vmem:[%s3951_s24 + $0x18] sm:$0xff]  ;;  %v593_v55 = vld [vmem:[%s3951_s24 + $0x8] sm:$0xf8] }
  0x73   : > { %789 = vmatpush1.msra.mxu0 %v2739_v56  ;;  %866 = vmatpush1.msra.mxu1 %v2741_v57  ;;  %v2804_v56 = vld [vmem:[%s6054_s1 + $0x648] sm:$0xff]  ;;  %v2806_v57 = vld [vmem:[%s6054_s1 + $0x658] sm:$0xff] }
  0x74   : > { %790 = vmatprep.subr.mxu0 %v2736_v58  ;;  %867 = vmatprep.subr.mxu1 %v2738_v59  ;;  %v4338_v58 = vld [vmem:[%s3951_s24 + $0x10] sm:$0xff]  ;;  %v592_v59 = vld [vmem:[%s3951_s24] sm:$0xf8] }
  0x75   : > { %791 = vmatpush1.msra.mxu0 %v2735_v60  ;;  %868 = vmatpush1.msra.mxu1 %v2737_v61  ;;  %v2803_v60 = vld [vmem:[%s6054_s1 + $0x640] sm:$0xff]  ;;  %v2805_v61 = vld [vmem:[%s6054_s1 + $0x650] sm:$0xff] }
  0x76   : > { %792 = vmatprep.subr.mxu0 %v2732_v62  ;;  %869 = vmatprep.subr.mxu1 %v2734_v63  ;;  %v737_v62 = vrot.slane %v593_v55, 3  ;;  %v738_v63 = vrot.slane %v4328_v54, 3  ;;  %v2892_v55 = vld [vmem:[%s6054_s1 + $0x8c8] sm:$0xff] }
  0x77   : > { %793 = vmatpush1.msra.mxu0 %v2731_v0  ;;  %870 = vmatpush1.msra.mxu1 %v2733_v1  ;;  %v2800_v0 = vld [vmem:[%s6054_s1 + $0x628] sm:$0xff]  ;;  %v2802_v1 = vld [vmem:[%s6054_s1 + $0x638] sm:$0xff] }
  0x78   : > { %2859 = vmatprep.subr.msk.mxu0 %vm417_vm0, %v2856_v2  ;;  %2863 = vmatprep.subr.msk.mxu1 %vm417_vm0, %v2858_v3  ;;  %v2799_v2 = vld [vmem:[%s6054_s1 + $0x620] sm:$0xff]  ;;  %v2801_v3 = vld [vmem:[%s6054_s1 + $0x630] sm:$0xff] }
  0x79   : > { %2860 = vmatpush2.msk.msra.mxu0 %vm417_vm0, %v2855_v4  ;;  %2864 = vmatpush2.msk.msra.mxu1 %vm417_vm0, %v2857_v5  ;;  %v734_v4 = vrot.slane %v592_v59, 3  ;;  %v735_v5 = vrot.slane %v4338_v58, 3  ;;  %v2893_v59 = vld [vmem:[%s6054_s1 + $0x8d0] sm:$0xff] }
  0x7a   : > { %796 = vmatprep.subr.mxu0 %v2852_v6  ;;  %873 = vmatprep.subr.mxu1 %v2854_v7  ;;  %v2796_v6 = vld [vmem:[%s6054_s1 + $0x608] sm:$0xff]  ;;  %v2798_v7 = vld [vmem:[%s6054_s1 + $0x618] sm:$0xff] }
  0x7b   : > { %797 = vmatpush2.msra.mxu0 %v2851_v8  ;;  %874 = vmatpush2.msra.mxu1 %v2853_v9  ;;  %v597_v8 = vld [vmem:[%s3951_s24 + $0x28] sm:$0x7]  ;;  %v2795_v9 = vld [vmem:[%s6054_s1 + $0x600] sm:$0xff] }
  0x7c   : > { %798 = vmatprep.subr.mxu0 %v2848_v10  ;;  %875 = vmatprep.subr.mxu1 %v2850_v11  ;;  %v739_v10 = vsel %vm733_vm2, %v737_v62, %v738_v63  ;;  %v2797_v11 = vld [vmem:[%s6054_s1 + $0x610] sm:$0xff]  ;;  %v2887_v62 = vld [vmem:[%s6054_s1 + $0x8a0] sm:$0xff] }
  0x7d   : > { %799 = vmatpush2.msra.mxu0 %v2847_v12  ;;  %876 = vmatpush2.msra.mxu1 %v2849_v13  ;;  %v596_v12 = vld [vmem:[%s3951_s24 + $0x20] sm:$0x7]  ;;  %v736_v13 = vsel %vm733_vm2, %v734_v4, %v735_v5  ;;  %v2880_v4 = vld [vmem:[%s6054_s1 + $0x868] sm:$0xff] }
  0x7e   : > { %800 = vmatprep.subr.mxu0 %v2844_v14  ;;  %877 = vmatprep.subr.mxu1 %v2846_v15  ;;  %v742_v14 = vrot.slane %v597_v8, 3  ;;  %v2928_v15 = vld [vmem:[%s6054_s1 + $0x9e8] sm:$0xff] }
  0x7f   : > { %801 = vmatpush2.msra.mxu0 %v2843_v16  ;;  %878 = vmatpush2.msra.mxu1 %v2845_v17  ;;  %v2930_v16 = vld [vmem:[%s6054_s1 + $0x9f8] sm:$0xff]  ;;  %v2927_v17 = vld [vmem:[%s6054_s1 + $0x9e0] sm:$0xff]  ;;  %v2876_v8 = vld [vmem:[%s6054_s1 + $0x848] sm:$0xff] }
  0x80   : > { %802 = vmatprep.subr.mxu0 %v2840_v18  ;;  %879 = vmatprep.subr.mxu1 %v2842_v19  ;;  %v2929_v18 = vld [vmem:[%s6054_s1 + $0x9f0] sm:$0xff]  ;;  %v740_v19 = vrot.slane %v596_v12, 3  ;;  %v2872_v12 = vld [vmem:[%s6054_s1 + $0x828] sm:$0xff] }
  0x81   : > { %803 = vmatpush2.msra.mxu0 %v2839_v20  ;;  %880 = vmatpush2.msra.mxu1 %v2841_v21  ;;  %v2924_v20 = vld [vmem:[%s6054_s1 + $0x9c8] sm:$0xff]  ;;  %v2926_v21 = vld [vmem:[%s6054_s1 + $0x9d8] sm:$0xff] }
  0x82   : > { %804 = vmatprep.subr.mxu0 %v2836_v22  ;;  %881 = vmatprep.subr.mxu1 %v2838_v23  ;;  %v743_v22 = vsel %vm733_vm2, %v738_v63, %v742_v14  ;;  %v2923_v23 = vld [vmem:[%s6054_s1 + $0x9c0] sm:$0xff]  ;;  %v2889_v63 = vld [vmem:[%s6054_s1 + $0x8b0] sm:$0xff] }
  0x83   : > { %805 = vmatpush2.msra.mxu0 %v2835_v24  ;;  %882 = vmatpush2.msra.mxu1 %v2837_v25  ;;  %v2925_v24 = vld [vmem:[%s6054_s1 + $0x9d0] sm:$0xff]  ;;  %v741_v25 = vsel %vm733_vm2, %v735_v5, %v740_v19  ;;  %v2882_v5 = vld [vmem:[%s6054_s1 + $0x878] sm:$0xff]  ;;  %v2871_v14 = vld [vmem:[%s6054_s1 + $0x820] sm:$0xff] }
  0x84   : > { %806 = vmatprep.subr.mxu0 %v2832_v26  ;;  %883 = vmatprep.subr.mxu1 %v2834_v27  ;;  %v2920_v26 = vld [vmem:[%s6054_s1 + $0x9a8] sm:$0xff]  ;;  %v2922_v27 = vld [vmem:[%s6054_s1 + $0x9b8] sm:$0xff]  ;;  %v2869_v19 = vld [vmem:[%s6054_s1 + $0x810] sm:$0xff] }
  0x85   : > { %807 = vmatpush2.msra.mxu0 %v2831_v28  ;;  %884 = vmatpush2.msra.mxu1 %v2833_v29  ;;  %v2919_v28 = vld [vmem:[%s6054_s1 + $0x9a0] sm:$0xff]  ;;  %v2921_v29 = vld [vmem:[%s6054_s1 + $0x9b0] sm:$0xff] }
  0x86   : > { %808 = vmatprep.subr.mxu0 %v2828_v30  ;;  %885 = vmatprep.subr.mxu1 %v2830_v31  ;;  %v2916_v30 = vld [vmem:[%s6054_s1 + $0x988] sm:$0xff]  ;;  %v2918_v31 = vld [vmem:[%s6054_s1 + $0x998] sm:$0xff] }
  0x87   : > { %809 = vmatpush2.msra.mxu0 %v2827_v32  ;;  %886 = vmatpush2.msra.mxu1 %v2829_v33  ;;  %v2915_v32 = vld [vmem:[%s6054_s1 + $0x980] sm:$0xff]  ;;  %v2917_v33 = vld [vmem:[%s6054_s1 + $0x990] sm:$0xff] }
  0x88   : > { %810 = vmatprep.subr.mxu0 %v2824_v34  ;;  %887 = vmatprep.subr.mxu1 %v2826_v35  ;;  %v2912_v34 = vld [vmem:[%s6054_s1 + $0x968] sm:$0xff]  ;;  %v2914_v35 = vld [vmem:[%s6054_s1 + $0x978] sm:$0xff] }
  0x89   : > { %811 = vmatpush2.msra.mxu0 %v2823_v36  ;;  %888 = vmatpush2.msra.mxu1 %v2825_v37  ;;  %v2911_v36 = vld [vmem:[%s6054_s1 + $0x960] sm:$0xff]  ;;  %v2913_v37 = vld [vmem:[%s6054_s1 + $0x970] sm:$0xff] }
  0x8a   : > { %812 = vmatprep.subr.mxu0 %v2820_v38  ;;  %889 = vmatprep.subr.mxu1 %v2822_v39  ;;  %v2908_v38 = vld [vmem:[%s6054_s1 + $0x948] sm:$0xff]  ;;  %v2910_v39 = vld [vmem:[%s6054_s1 + $0x958] sm:$0xff] }
  0x8b   : > { %813 = vmatpush2.msra.mxu0 %v2819_v40  ;;  %890 = vmatpush2.msra.mxu1 %v2821_v41  ;;  %v2907_v40 = vld [vmem:[%s6054_s1 + $0x940] sm:$0xff]  ;;  %v2909_v41 = vld [vmem:[%s6054_s1 + $0x950] sm:$0xff] }
  0x8c   : > { %814 = vmatprep.subr.mxu0 %v2816_v42  ;;  %891 = vmatprep.subr.mxu1 %v2818_v43  ;;  %v2904_v42 = vld [vmem:[%s6054_s1 + $0x928] sm:$0xff]  ;;  %v2906_v43 = vld [vmem:[%s6054_s1 + $0x938] sm:$0xff] }
  0x8d   : > { %815 = vmatpush2.msra.mxu0 %v2815_v44  ;;  %892 = vmatpush2.msra.mxu1 %v2817_v45  ;;  %v2903_v44 = vld [vmem:[%s6054_s1 + $0x920] sm:$0xff]  ;;  %v2905_v45 = vld [vmem:[%s6054_s1 + $0x930] sm:$0xff] }
  0x8e   : > { %816 = vmatprep.subr.mxu0 %v2812_v46  ;;  %893 = vmatprep.subr.mxu1 %v2814_v47  ;;  %v2900_v46 = vld [vmem:[%s6054_s1 + $0x908] sm:$0xff]  ;;  %v2902_v47 = vld [vmem:[%s6054_s1 + $0x918] sm:$0xff] }
  0x8f   : > { %817 = vmatpush2.msra.mxu0 %v2811_v48  ;;  %894 = vmatpush2.msra.mxu1 %v2813_v49  ;;  %v2899_v48 = vld [vmem:[%s6054_s1 + $0x900] sm:$0xff]  ;;  %v2901_v49 = vld [vmem:[%s6054_s1 + $0x910] sm:$0xff] }
  0x90   : > { %818 = vmatprep.subr.mxu0 %v2808_v50  ;;  %895 = vmatprep.subr.mxu1 %v2810_v51  ;;  %v2896_v50 = vld [vmem:[%s6054_s1 + $0x8e8] sm:$0xff]  ;;  %v2898_v51 = vld [vmem:[%s6054_s1 + $0x8f8] sm:$0xff] }
  0x91   : > { %819 = vmatpush2.msra.mxu0 %v2807_v52  ;;  %896 = vmatpush2.msra.mxu1 %v2809_v53  ;;  %v2895_v52 = vld [vmem:[%s6054_s1 + $0x8e0] sm:$0xff]  ;;  %v2897_v53 = vld [vmem:[%s6054_s1 + $0x8f0] sm:$0xff] }
  0x92   : > { %2726 = vmatprep.mubr.msk.f32.mxu0 %vm410_vm1, %v4328_v54  ;;  %2730 = vmatprep.mubr.msk.f32.mxu1 %vm410_vm1, %v4328_v54 }
  0x93   : > { %820 = vmatprep.subr.mxu0 %v2804_v56  ;;  %897 = vmatprep.subr.mxu1 %v2806_v57  ;;  %v2894_v56 = vld [vmem:[%s6054_s1 + $0x8d8] sm:$0xff]  ;;  %v2891_v57 = vld [vmem:[%s6054_s1 + $0x8c0] sm:$0xff] }
  0x94   : > { %501 = vmatmul.mubr.f32.gmra.mxu0 %v4338_v58  ;;  %578 = vmatmul.mubr.f32.gmra.mxu1 %v4338_v58 }
  0x95   : > { %821 = vmatpush2.msra.mxu0 %v2803_v60  ;;  %898 = vmatpush2.msra.mxu1 %v2805_v61  ;;  %v2888_v60 = vld [vmem:[%s6054_s1 + $0x8a8] sm:$0xff]  ;;  %v2890_v61 = vld [vmem:[%s6054_s1 + $0x8b8] sm:$0xff] }
  0x96   : > { %822 = vmatprep.subr.mxu0 %v2800_v0  ;;  %899 = vmatprep.subr.mxu1 %v2802_v1  ;;  %v2884_v0 = vld [vmem:[%s6054_s1 + $0x888] sm:$0xff]  ;;  %v2886_v1 = vld [vmem:[%s6054_s1 + $0x898] sm:$0xff] }
  0x97   : > { %823 = vmatpush2.msra.mxu0 %v2799_v2  ;;  %900 = vmatpush2.msra.mxu1 %v2801_v3  ;;  %v2883_v2 = vld [vmem:[%s6054_s1 + $0x880] sm:$0xff]  ;;  %v2885_v3 = vld [vmem:[%s6054_s1 + $0x890] sm:$0xff] }
  0x98   : > { %824 = vmatprep.subr.mxu0 %v2796_v6  ;;  %901 = vmatprep.subr.mxu1 %v2798_v7  ;;  %v2879_v6 = vld [vmem:[%s6054_s1 + $0x860] sm:$0xff]  ;;  %v2881_v7 = vld [vmem:[%s6054_s1 + $0x870] sm:$0xff] }
  0x99   : > { %825 = vmatpush2.msra.mxu0 %v2795_v9  ;;  %2861 = vmatprep.mubr.msk.f32.mxu0 %vm410_vm1, %v739_v10  ;;  %v2878_v9 = vld [vmem:[%s6054_s1 + $0x858] sm:$0xff] }
  0x9a   : > { %902 = vmatpush2.msra.mxu1 %v2797_v11  ;;  %2865 = vmatprep.mubr.msk.f32.mxu1 %vm410_vm1, %v739_v10  ;;  %v2875_v10 = vld [vmem:[%s6054_s1 + $0x840] sm:$0xff]  ;;  %v2877_v11 = vld [vmem:[%s6054_s1 + $0x850] sm:$0xff] }
  0x9b   : > { %827 = vmatmul.mubr.f32.vlgmr.msra.gmra.mxu0 %v736_v13  ;;  %904 = vmatmul.mubr.f32.vlgmr.msra.gmra.mxu1 %v736_v13  ;;  %v2874_v13 = vld [vmem:[%s6054_s1 + $0x838] sm:$0xff] }
  0x9c   : > { %1110 = vmatprep.subr.mxu0 %v2928_v15  ;;  %1187 = vmatprep.subr.mxu1 %v2930_v16  ;;  %v2873_v15 = vld [vmem:[%s6054_s1 + $0x830] sm:$0xff]  ;;  %v2868_v16 = vld [vmem:[%s6054_s1 + $0x808] sm:$0xff] }
  0x9d   : > { %1111 = vmatpush1.msra.mxu0 %v2927_v17  ;;  %1188 = vmatpush1.msra.mxu1 %v2929_v18  ;;  %v2870_v17 = vld [vmem:[%s6054_s1 + $0x818] sm:$0xff]  ;;  %v2867_v18 = vld [vmem:[%s6054_s1 + $0x800] sm:$0xff] }
  0x9e   : > { %1112 = vmatprep.subr.mxu0 %v2924_v20  ;;  %1189 = vmatprep.subr.mxu1 %v2926_v21  ;;  %v2992_v20 = vld [vmem:[%s6054_s1 + $0xbe8] sm:$0xf]  ;;  %v2994_v21 = vld [vmem:[%s6054_s1 + $0xbf8] sm:$0xf] }
  0x9f   : > { %2862 = vmatprep.mubr.msk.f32.mxu0 %vm410_vm1, %v743_v22  ;;  %2866 = vmatprep.mubr.msk.f32.mxu1 %vm410_vm1, %v743_v22  ;;  %v2991_v22 = vld [vmem:[%s6054_s1 + $0xbe0] sm:$0xf] }
  0xa0   : > { %1113 = vmatpush1.msra.mxu0 %v2923_v23  ;;  %1190 = vmatpush1.msra.mxu1 %v2925_v24  ;;  %v2993_v23 = vld [vmem:[%s6054_s1 + $0xbf0] sm:$0xf]  ;;  %v2988_v24 = vld [vmem:[%s6054_s1 + $0xbc8] sm:$0xff] }
  0xa1   : > { %833 = vmatmul.mubr.f32.gmra.mxu0 %v741_v25  ;;  %910 = vmatmul.mubr.f32.gmra.mxu1 %v741_v25  ;;  %v2990_v25 = vld [vmem:[%s6054_s1 + $0xbd8] sm:$0xff] }
  0xa2   : > { %1114 = vmatprep.subr.mxu0 %v2920_v26  ;;  %1191 = vmatprep.subr.mxu1 %v2922_v27  ;;  %v2987_v26 = vld [vmem:[%s6054_s1 + $0xbc0] sm:$0xff]  ;;  %v2989_v27 = vld [vmem:[%s6054_s1 + $0xbd0] sm:$0xff] }
  0xa3   : > { %1115 = vmatpush1.msra.mxu0 %v2919_v28  ;;  %1192 = vmatpush1.msra.mxu1 %v2921_v29  ;;  %v2984_v28 = vld [vmem:[%s6054_s1 + $0xba8] sm:$0xff]  ;;  %v2986_v29 = vld [vmem:[%s6054_s1 + $0xbb8] sm:$0xff] }
  0xa4   : > { %1116 = vmatprep.subr.mxu0 %v2916_v30  ;;  %1193 = vmatprep.subr.mxu1 %v2918_v31  ;;  %v2983_v30 = vld [vmem:[%s6054_s1 + $0xba0] sm:$0xff]  ;;  %v2985_v31 = vld [vmem:[%s6054_s1 + $0xbb0] sm:$0xff] }
  0xa5   : > { %1117 = vmatpush1.msra.mxu0 %v2915_v32  ;;  %1194 = vmatpush1.msra.mxu1 %v2917_v33  ;;  %v2980_v32 = vld [vmem:[%s6054_s1 + $0xb88] sm:$0xff]  ;;  %v2982_v33 = vld [vmem:[%s6054_s1 + $0xb98] sm:$0xff] }
  0xa6   : > { %1118 = vmatprep.subr.mxu0 %v2912_v34  ;;  %1195 = vmatprep.subr.mxu1 %v2914_v35  ;;  %v2979_v34 = vld [vmem:[%s6054_s1 + $0xb80] sm:$0xff]  ;;  %v2981_v35 = vld [vmem:[%s6054_s1 + $0xb90] sm:$0xff] }
  0xa7   : > { %1119 = vmatpush1.msra.mxu0 %v2911_v36  ;;  %1196 = vmatpush1.msra.mxu1 %v2913_v37  ;;  %v2976_v36 = vld [vmem:[%s6054_s1 + $0xb68] sm:$0xff]  ;;  %v2978_v37 = vld [vmem:[%s6054_s1 + $0xb78] sm:$0xff] }
  0xa8   : > { %1120 = vmatprep.subr.mxu0 %v2908_v38  ;;  %1197 = vmatprep.subr.mxu1 %v2910_v39  ;;  %v2975_v38 = vld [vmem:[%s6054_s1 + $0xb60] sm:$0xff]  ;;  %v2977_v39 = vld [vmem:[%s6054_s1 + $0xb70] sm:$0xff] }
  0xa9   : > { %1121 = vmatpush1.msra.mxu0 %v2907_v40  ;;  %1198 = vmatpush1.msra.mxu1 %v2909_v41  ;;  %v2972_v40 = vld [vmem:[%s6054_s1 + $0xb48] sm:$0xff]  ;;  %v2974_v41 = vld [vmem:[%s6054_s1 + $0xb58] sm:$0xff] }
  0xaa   : > { %1122 = vmatprep.subr.mxu0 %v2904_v42  ;;  %1199 = vmatprep.subr.mxu1 %v2906_v43  ;;  %v2971_v42 = vld [vmem:[%s6054_s1 + $0xb40] sm:$0xff]  ;;  %v2973_v43 = vld [vmem:[%s6054_s1 + $0xb50] sm:$0xff] }
  0xab   : > { %1123 = vmatpush1.msra.mxu0 %v2903_v44  ;;  %1200 = vmatpush1.msra.mxu1 %v2905_v45  ;;  %v2968_v44 = vld [vmem:[%s6054_s1 + $0xb28] sm:$0xff]  ;;  %v2970_v45 = vld [vmem:[%s6054_s1 + $0xb38] sm:$0xff] }
  0xac   : > { %1124 = vmatprep.subr.mxu0 %v2900_v46  ;;  %1201 = vmatprep.subr.mxu1 %v2902_v47  ;;  %v2967_v46 = vld [vmem:[%s6054_s1 + $0xb20] sm:$0xff]  ;;  %v2969_v47 = vld [vmem:[%s6054_s1 + $0xb30] sm:$0xff] }
  0xad   : > { %1125 = vmatpush1.msra.mxu0 %v2899_v48  ;;  %1202 = vmatpush1.msra.mxu1 %v2901_v49  ;;  %v2964_v48 = vld [vmem:[%s6054_s1 + $0xb08] sm:$0xff]  ;;  %v2966_v49 = vld [vmem:[%s6054_s1 + $0xb18] sm:$0xff] }
  0xae   : > { %1126 = vmatprep.subr.mxu0 %v2896_v50  ;;  %1203 = vmatprep.subr.mxu1 %v2898_v51  ;;  %v2963_v50 = vld [vmem:[%s6054_s1 + $0xb00] sm:$0xff]  ;;  %v2965_v51 = vld [vmem:[%s6054_s1 + $0xb10] sm:$0xff] }
  0xaf   : > { %1127 = vmatpush1.msra.mxu0 %v2895_v52  ;;  %1204 = vmatpush1.msra.mxu1 %v2897_v53  ;;  %v2960_v52 = vld [vmem:[%s6054_s1 + $0xae8] sm:$0xff]  ;;  %v2962_v53 = vld [vmem:[%s6054_s1 + $0xaf8] sm:$0xff] }
  0xb0   : > { %1128 = vmatprep.subr.mxu0 %v2892_v55  ;;  %1205 = vmatprep.subr.mxu1 %v2894_v56  ;;  %v2959_v55 = vld [vmem:[%s6054_s1 + $0xae0] sm:$0xff]  ;;  %v2961_v56 = vld [vmem:[%s6054_s1 + $0xaf0] sm:$0xff] }
  0xb1   : > { %1129 = vmatpush1.msra.mxu0 %v2891_v57  ;;  %1206 = vmatpush1.msra.mxu1 %v2893_v59  ;;  %v2956_v57 = vld [vmem:[%s6054_s1 + $0xac8] sm:$0xff]  ;;  %v2958_v59 = vld [vmem:[%s6054_s1 + $0xad8] sm:$0xff] }
  0xb2   : > { %1130 = vmatprep.subr.mxu0 %v2888_v60  ;;  %1207 = vmatprep.subr.mxu1 %v2890_v61  ;;  %v2955_v60 = vld [vmem:[%s6054_s1 + $0xac0] sm:$0xff]  ;;  %v2957_v61 = vld [vmem:[%s6054_s1 + $0xad0] sm:$0xff] }
  0xb3   : > { %1131 = vmatpush1.msra.mxu0 %v2887_v62  ;;  %1208 = vmatpush1.msra.mxu1 %v2889_v63  ;;  %v2952_v62 = vld [vmem:[%s6054_s1 + $0xaa8] sm:$0xff]  ;;  %v2954_v63 = vld [vmem:[%s6054_s1 + $0xab8] sm:$0xff] }
  0xb4   : > { %1132 = vmatprep.subr.mxu0 %v2884_v0  ;;  %1209 = vmatprep.subr.mxu1 %v2886_v1  ;;  %v2951_v0 = vld [vmem:[%s6054_s1 + $0xaa0] sm:$0xff]  ;;  %v2953_v1 = vld [vmem:[%s6054_s1 + $0xab0] sm:$0xff] }
  0xb5   : > { %1133 = vmatpush1.msra.mxu0 %v2883_v2  ;;  %1210 = vmatpush1.msra.mxu1 %v2885_v3  ;;  %v2948_v2 = vld [vmem:[%s6054_s1 + $0xa88] sm:$0xff]  ;;  %v2950_v3 = vld [vmem:[%s6054_s1 + $0xa98] sm:$0xff] }
  0xb6   : > { %1134 = vmatprep.subr.mxu0 %v2880_v4  ;;  %1211 = vmatprep.subr.mxu1 %v2882_v5  ;;  %v2947_v4 = vld [vmem:[%s6054_s1 + $0xa80] sm:$0xff]  ;;  %v2949_v5 = vld [vmem:[%s6054_s1 + $0xa90] sm:$0xff] }
  0xb7   : > { %1135 = vmatpush1.msra.mxu0 %v2879_v6  ;;  %1212 = vmatpush1.msra.mxu1 %v2881_v7  ;;  %v2944_v6 = vld [vmem:[%s6054_s1 + $0xa68] sm:$0xff]  ;;  %v2946_v7 = vld [vmem:[%s6054_s1 + $0xa78] sm:$0xff] }
  0xb8   : > { %1136 = vmatprep.subr.mxu0 %v2876_v8  ;;  %1213 = vmatprep.subr.mxu1 %v2878_v9  ;;  %v941_v8 = vld [vmem:[%s3951_s24 + $0x8] sm:$0xc0]  ;;  %v2943_v9 = vld [vmem:[%s6054_s1 + $0xa60] sm:$0xff] }
  0xb9   : > { %1137 = vmatpush1.msra.mxu0 %v2875_v10  ;;  %1214 = vmatpush1.msra.mxu1 %v2877_v11  ;;  %v2945_v10 = vld [vmem:[%s6054_s1 + $0xa70] sm:$0xff]  ;;  %v2940_v11 = vld [vmem:[%s6054_s1 + $0xa48] sm:$0xff] }
  0xba   : > { %1138 = vmatprep.subr.mxu0 %v2872_v12  ;;  %1215 = vmatprep.subr.mxu1 %v2874_v13  ;;  %v2942_v12 = vld [vmem:[%s6054_s1 + $0xa58] sm:$0xff]  ;;  %v940_v13 = vld [vmem:[%s3951_s24] sm:$0xc0] }
  0xbb   : > { %1139 = vmatpush1.msra.mxu0 %v2871_v14  ;;  %1216 = vmatpush1.msra.mxu1 %v2873_v15  ;;  %v2939_v14 = vld [vmem:[%s6054_s1 + $0xa40] sm:$0xff]  ;;  %v2941_v15 = vld [vmem:[%s6054_s1 + $0xa50] sm:$0xff] }
  0xbc   : > { %1140 = vmatprep.subr.mxu0 %v2868_v16  ;;  %1217 = vmatprep.subr.mxu1 %v2870_v17  ;;  %v1085_v16 = vrot.slane %v941_v8, 6  ;;  %v1086_v17 = vrot.slane %v4328_v54, 6  ;;  %v2937_v54 = vld [vmem:[%s6054_s1 + $0xa30] sm:$0xff]  ;;  %v3028_v8 = vld [vmem:[%s6054_s1 + $0xcc8] sm:$0xff] }
  0xbd   : > { %1141 = vmatpush1.msra.mxu0 %v2867_v18  ;;  %1218 = vmatpush1.msra.mxu1 %v2869_v19  ;;  %v2936_v18 = vld [vmem:[%s6054_s1 + $0xa28] sm:$0xff]  ;;  %v2938_v19 = vld [vmem:[%s6054_s1 + $0xa38] sm:$0xff] }
  0xbe   : > { %2995 = vmatprep.subr.msk.mxu0 %vm417_vm0, %v2992_v20  ;;  %2999 = vmatprep.subr.msk.mxu1 %vm417_vm0, %v2994_v21  ;;  %v2935_v20 = vld [vmem:[%s6054_s1 + $0xa20] sm:$0xff]  ;;  %v1082_v21 = vrot.slane %v940_v13, 6  ;;  %v3026_v13 = vld [vmem:[%s6054_s1 + $0xcb8] sm:$0xff] }
  0xbf   : > { %2996 = vmatpush2.msk.msra.mxu0 %vm417_vm0, %v2991_v22  ;;  %3000 = vmatpush2.msk.msra.mxu1 %vm417_vm0, %v2993_v23  ;;  %v1083_v22 = vrot.slane %v4338_v58, 6  ;;  %v2932_v23 = vld [vmem:[%s6054_s1 + $0xa08] sm:$0xff]  ;;  %v2933_v58 = vld [vmem:[%s6054_s1 + $0xa10] sm:$0xff] }
  0xc0   : > { %1144 = vmatprep.subr.mxu0 %v2988_v24  ;;  %1221 = vmatprep.subr.mxu1 %v2990_v25  ;;  %v2934_v24 = vld [vmem:[%s6054_s1 + $0xa18] sm:$0xff]  ;;  %v945_v25 = vld [vmem:[%s3951_s24 + $0x28] sm:$0x3f] }
  0xc1   : > { %1145 = vmatpush2.msra.mxu0 %v2987_v26  ;;  %1222 = vmatpush2.msra.mxu1 %v2989_v27  ;;  %v2931_v26 = vld [vmem:[%s6054_s1 + $0xa00] sm:$0xff]  ;;  %v1087_v27 = vsel %vm1081_vm3, %v1085_v16, %v1086_v17  ;;  %v3020_v16 = vld [vmem:[%s6054_s1 + $0xc88] sm:$0xff] }
  0xc2   : > { %1146 = vmatprep.subr.mxu0 %v2984_v28  ;;  %1223 = vmatprep.subr.mxu1 %v2986_v29  ;;  %v944_v28 = vld [vmem:[%s3951_s24 + $0x20] sm:$0x3f]  ;;  %v1084_v29 = vsel %vm1081_vm3, %v1082_v21, %v1083_v22 }
  0xc3   : > { %1147 = vmatpush2.msra.mxu0 %v2983_v30  ;;  %1224 = vmatpush2.msra.mxu1 %v2985_v31  ;;  %v1090_v30 = vrot.slane %v945_v25, 6  ;;  %v3064_v31 = vld [vmem:[%s6054_s1 + $0xde8] sm:$0xff]  ;;  %v3015_v21 = vld [vmem:[%s6054_s1 + $0xc60] sm:$0xff] }
  0xc4   : > { %1148 = vmatprep.subr.mxu0 %v2980_v32  ;;  %1225 = vmatprep.subr.mxu1 %v2982_v33  ;;  %v3066_v32 = vld [vmem:[%s6054_s1 + $0xdf8] sm:$0xff]  ;;  %v3063_v33 = vld [vmem:[%s6054_s1 + $0xde0] sm:$0xff] }
  0xc5   : > { %1149 = vmatpush2.msra.mxu0 %v2979_v34  ;;  %1226 = vmatpush2.msra.mxu1 %v2981_v35  ;;  %v3065_v34 = vld [vmem:[%s6054_s1 + $0xdf0] sm:$0xff]  ;;  %v1088_v35 = vrot.slane %v944_v28, 6  ;;  %v3011_v25 = vld [vmem:[%s6054_s1 + $0xc40] sm:$0xff] }
  0xc6   : > { %1150 = vmatprep.subr.mxu0 %v2976_v36  ;;  %1227 = vmatprep.subr.mxu1 %v2978_v37  ;;  %v3060_v36 = vld [vmem:[%s6054_s1 + $0xdc8] sm:$0xff]  ;;  %v3062_v37 = vld [vmem:[%s6054_s1 + $0xdd8] sm:$0xff]  ;;  %v3007_v28 = vld [vmem:[%s6054_s1 + $0xc20] sm:$0xff] }
  0xc7   : > { %1151 = vmatpush2.msra.mxu0 %v2975_v38  ;;  %1228 = vmatpush2.msra.mxu1 %v2977_v39  ;;  %v1091_v38 = vsel %vm1081_vm3, %v1086_v17, %v1090_v30  ;;  %v3059_v39 = vld [vmem:[%s6054_s1 + $0xdc0] sm:$0xff]  ;;  %v3022_v17 = vld [vmem:[%s6054_s1 + $0xc98] sm:$0xff]  ;;  %v3004_v30 = vld [vmem:[%s6054_s1 + $0xc08] sm:$0xff] }
  0xc8   : > { %1152 = vmatprep.subr.mxu0 %v2972_v40  ;;  %1229 = vmatprep.subr.mxu1 %v2974_v41  ;;  %v3061_v40 = vld [vmem:[%s6054_s1 + $0xdd0] sm:$0xff]  ;;  %v1089_v41 = vsel %vm1081_vm3, %v1083_v22, %v1088_v35  ;;  %v3130_v35 = vld [vmem:[%s6054_s1 + $0xff8] sm:$0xf] }
  0xc9   : > { %1153 = vmatpush2.msra.mxu0 %v2971_v42  ;;  %1230 = vmatpush2.msra.mxu1 %v2973_v43  ;;  %v3056_v42 = vld [vmem:[%s6054_s1 + $0xda8] sm:$0xff]  ;;  %v3058_v43 = vld [vmem:[%s6054_s1 + $0xdb8] sm:$0xff]  ;;  %v3017_v22 = vld [vmem:[%s6054_s1 + $0xc70] sm:$0xff] }
  0xca   : > { %1154 = vmatprep.subr.mxu0 %v2968_v44  ;;  %1231 = vmatprep.subr.mxu1 %v2970_v45  ;;  %v3055_v44 = vld [vmem:[%s6054_s1 + $0xda0] sm:$0xff]  ;;  %v3057_v45 = vld [vmem:[%s6054_s1 + $0xdb0] sm:$0xff] }
  0xcb   : > { %1155 = vmatpush2.msra.mxu0 %v2967_v46  ;;  %1232 = vmatpush2.msra.mxu1 %v2969_v47  ;;  %v3052_v46 = vld [vmem:[%s6054_s1 + $0xd88] sm:$0xff]  ;;  %v3054_v47 = vld [vmem:[%s6054_s1 + $0xd98] sm:$0xff] }
  0xcc   : > { %1156 = vmatprep.subr.mxu0 %v2964_v48  ;;  %1233 = vmatprep.subr.mxu1 %v2966_v49  ;;  %v3051_v48 = vld [vmem:[%s6054_s1 + $0xd80] sm:$0xff]  ;;  %v3053_v49 = vld [vmem:[%s6054_s1 + $0xd90] sm:$0xff] }
  0xcd   : > { %1157 = vmatpush2.msra.mxu0 %v2963_v50  ;;  %1234 = vmatpush2.msra.mxu1 %v2965_v51  ;;  %v3048_v50 = vld [vmem:[%s6054_s1 + $0xd68] sm:$0xff]  ;;  %v3050_v51 = vld [vmem:[%s6054_s1 + $0xd78] sm:$0xff] }
  0xce   : > { %1158 = vmatprep.subr.mxu0 %v2960_v52  ;;  %1235 = vmatprep.subr.mxu1 %v2962_v53  ;;  %v3047_v52 = vld [vmem:[%s6054_s1 + $0xd60] sm:$0xff]  ;;  %v3049_v53 = vld [vmem:[%s6054_s1 + $0xd70] sm:$0xff] }
  0xcf   : > { %1159 = vmatpush2.msra.mxu0 %v2959_v55  ;;  %1236 = vmatpush2.msra.mxu1 %v2961_v56  ;;  %v3044_v55 = vld [vmem:[%s6054_s1 + $0xd48] sm:$0xff]  ;;  %v3046_v56 = vld [vmem:[%s6054_s1 + $0xd58] sm:$0xff] }
  0xd0   : > { %1160 = vmatprep.subr.mxu0 %v2956_v57  ;;  %1237 = vmatprep.subr.mxu1 %v2958_v59  ;;  %v3043_v57 = vld [vmem:[%s6054_s1 + $0xd40] sm:$0xff]  ;;  %v3045_v59 = vld [vmem:[%s6054_s1 + $0xd50] sm:$0xff] }
  0xd1   : > { %1161 = vmatpush2.msra.mxu0 %v2955_v60  ;;  %1238 = vmatpush2.msra.mxu1 %v2957_v61  ;;  %v3040_v60 = vld [vmem:[%s6054_s1 + $0xd28] sm:$0xff]  ;;  %v3042_v61 = vld [vmem:[%s6054_s1 + $0xd38] sm:$0xff] }
  0xd2   : > { %1162 = vmatprep.subr.mxu0 %v2952_v62  ;;  %1239 = vmatprep.subr.mxu1 %v2954_v63  ;;  %v3039_v62 = vld [vmem:[%s6054_s1 + $0xd20] sm:$0xff]  ;;  %v3041_v63 = vld [vmem:[%s6054_s1 + $0xd30] sm:$0xff] }
  0xd3   : > { %1163 = vmatpush2.msra.mxu0 %v2951_v0  ;;  %1240 = vmatpush2.msra.mxu1 %v2953_v1  ;;  %v3036_v0 = vld [vmem:[%s6054_s1 + $0xd08] sm:$0xff]  ;;  %v3038_v1 = vld [vmem:[%s6054_s1 + $0xd18] sm:$0xff] }
  0xd4   : > { %1164 = vmatprep.subr.mxu0 %v2948_v2  ;;  %1241 = vmatprep.subr.mxu1 %v2950_v3  ;;  %v3035_v2 = vld [vmem:[%s6054_s1 + $0xd00] sm:$0xff]  ;;  %v3037_v3 = vld [vmem:[%s6054_s1 + $0xd10] sm:$0xff] }
  0xd5   : > { %1165 = vmatpush2.msra.mxu0 %v2947_v4  ;;  %1242 = vmatpush2.msra.mxu1 %v2949_v5  ;;  %v3032_v4 = vld [vmem:[%s6054_s1 + $0xce8] sm:$0xff]  ;;  %v3034_v5 = vld [vmem:[%s6054_s1 + $0xcf8] sm:$0xff] }
  0xd6   : > { %1166 = vmatprep.subr.mxu0 %v2944_v6  ;;  %1243 = vmatprep.subr.mxu1 %v2946_v7  ;;  %v3031_v6 = vld [vmem:[%s6054_s1 + $0xce0] sm:$0xff]  ;;  %v3033_v7 = vld [vmem:[%s6054_s1 + $0xcf0] sm:$0xff] }
  0xd7   : > { %1167 = vmatpush2.msra.mxu0 %v2943_v9  ;;  %1244 = vmatpush2.msra.mxu1 %v2945_v10  ;;  %v3030_v9 = vld [vmem:[%s6054_s1 + $0xcd8] sm:$0xff]  ;;  %v3027_v10 = vld [vmem:[%s6054_s1 + $0xcc0] sm:$0xff] }
  0xd8   : > { %1168 = vmatprep.subr.mxu0 %v2940_v11  ;;  %1245 = vmatprep.subr.mxu1 %v2942_v12  ;;  %v3029_v11 = vld [vmem:[%s6054_s1 + $0xcd0] sm:$0xff]  ;;  %v3024_v12 = vld [vmem:[%s6054_s1 + $0xca8] sm:$0xff] }
  0xd9   : > { %1169 = vmatpush2.msra.mxu0 %v2939_v14  ;;  %1246 = vmatpush2.msra.mxu1 %v2941_v15  ;;  %v3023_v14 = vld [vmem:[%s6054_s1 + $0xca0] sm:$0xff]  ;;  %v3025_v15 = vld [vmem:[%s6054_s1 + $0xcb0] sm:$0xff] }
  0xda   : > { %1170 = vmatprep.subr.mxu0 %v2936_v18  ;;  %1247 = vmatprep.subr.mxu1 %v2938_v19  ;;  %v3019_v18 = vld [vmem:[%s6054_s1 + $0xc80] sm:$0xff]  ;;  %v3021_v19 = vld [vmem:[%s6054_s1 + $0xc90] sm:$0xff] }
  0xdb   : > { %1171 = vmatpush2.msra.mxu0 %v2935_v20  ;;  %1248 = vmatpush2.msra.mxu1 %v2937_v54  ;;  %v3016_v20 = vld [vmem:[%s6054_s1 + $0xc68] sm:$0xff]  ;;  %v3018_v54 = vld [vmem:[%s6054_s1 + $0xc78] sm:$0xff] }
  0xdc   : > { %1172 = vmatprep.subr.mxu0 %v2932_v23  ;;  %1249 = vmatprep.subr.mxu1 %v2934_v24  ;;  %v3012_v23 = vld [vmem:[%s6054_s1 + $0xc48] sm:$0xff]  ;;  %v3014_v24 = vld [vmem:[%s6054_s1 + $0xc58] sm:$0xff] }
  0xdd   : > { %1173 = vmatpush2.msra.mxu0 %v2931_v26  ;;  %2997 = vmatprep.mubr.msk.f32.mxu0 %vm410_vm1, %v1087_v27  ;;  %v3013_v26 = vld [vmem:[%s6054_s1 + $0xc50] sm:$0xff] }
  0xde   : > { %1250 = vmatpush2.msra.mxu1 %v2933_v58  ;;  %3001 = vmatprep.mubr.msk.f32.mxu1 %vm410_vm1, %v1087_v27  ;;  %v3008_v27 = vld [vmem:[%s6054_s1 + $0xc28] sm:$0xff]  ;;  %v3010_v58 = vld [vmem:[%s6054_s1 + $0xc38] sm:$0xff] }
  0xdf   : > { %1175 = vmatmul.mubr.f32.vlgmr.msra.gmra.mxu0 %v1084_v29  ;;  %1252 = vmatmul.mubr.f32.vlgmr.msra.gmra.mxu1 %v1084_v29  ;;  %v3009_v29 = vld [vmem:[%s6054_s1 + $0xc30] sm:$0xff] }
  0xe0   : > { %1458 = vmatprep.subr.mxu0 %v3064_v31  ;;  %1535 = vmatprep.subr.mxu1 %v3066_v32  ;;  %v3006_v31 = vld [vmem:[%s6054_s1 + $0xc18] sm:$0xff]  ;;  %v3003_v32 = vld [vmem:[%s6054_s1 + $0xc00] sm:$0xff] }
  0xe1   : > { %1459 = vmatpush1.msra.mxu0 %v3063_v33  ;;  %1536 = vmatpush1.msra.mxu1 %v3065_v34  ;;  %v3005_v33 = vld [vmem:[%s6054_s1 + $0xc10] sm:$0xff]  ;;  %v3128_v34 = vld [vmem:[%s6054_s1 + $0xfe8] sm:$0xf] }
  0xe2   : > { %1460 = vmatprep.subr.mxu0 %v3060_v36  ;;  %1537 = vmatprep.subr.mxu1 %v3062_v37  ;;  %v3127_v36 = vld [vmem:[%s6054_s1 + $0xfe0] sm:$0xf]  ;;  %v3129_v37 = vld [vmem:[%s6054_s1 + $0xff0] sm:$0xf] }
  0xe3   : > { %2998 = vmatprep.mubr.msk.f32.mxu0 %vm410_vm1, %v1091_v38  ;;  %3002 = vmatprep.mubr.msk.f32.mxu1 %vm410_vm1, %v1091_v38  ;;  %v3124_v38 = vld [vmem:[%s6054_s1 + $0xfc8] sm:$0xff] }
  0xe4   : > { %1461 = vmatpush1.msra.mxu0 %v3059_v39  ;;  %1538 = vmatpush1.msra.mxu1 %v3061_v40  ;;  %v3126_v39 = vld [vmem:[%s6054_s1 + $0xfd8] sm:$0xff]  ;;  %v3123_v40 = vld [vmem:[%s6054_s1 + $0xfc0] sm:$0xff] }
  0xe5   : > { %1181 = vmatmul.mubr.f32.gmra.mxu0 %v1089_v41  ;;  %1258 = vmatmul.mubr.f32.gmra.mxu1 %v1089_v41  ;;  %v3125_v41 = vld [vmem:[%s6054_s1 + $0xfd0] sm:$0xff] }
  0xe6   : > { %1462 = vmatprep.subr.mxu0 %v3056_v42  ;;  %1539 = vmatprep.subr.mxu1 %v3058_v43  ;;  %v3120_v42 = vld [vmem:[%s6054_s1 + $0xfa8] sm:$0xff]  ;;  %v3122_v43 = vld [vmem:[%s6054_s1 + $0xfb8] sm:$0xff] }
  0xe7   : > { %1463 = vmatpush1.msra.mxu0 %v3055_v44  ;;  %1540 = vmatpush1.msra.mxu1 %v3057_v45  ;;  %v3119_v44 = vld [vmem:[%s6054_s1 + $0xfa0] sm:$0xff]  ;;  %v3121_v45 = vld [vmem:[%s6054_s1 + $0xfb0] sm:$0xff] }
  0xe8   : > { %1464 = vmatprep.subr.mxu0 %v3052_v46  ;;  %1541 = vmatprep.subr.mxu1 %v3054_v47  ;;  %v3116_v46 = vld [vmem:[%s6054_s1 + $0xf88] sm:$0xff]  ;;  %v3118_v47 = vld [vmem:[%s6054_s1 + $0xf98] sm:$0xff] }
  0xe9   : > { %1465 = vmatpush1.msra.mxu0 %v3051_v48  ;;  %1542 = vmatpush1.msra.mxu1 %v3053_v49  ;;  %v3115_v48 = vld [vmem:[%s6054_s1 + $0xf80] sm:$0xff]  ;;  %v3117_v49 = vld [vmem:[%s6054_s1 + $0xf90] sm:$0xff] }
  0xea   : > { %1466 = vmatprep.subr.mxu0 %v3048_v50  ;;  %1543 = vmatprep.subr.mxu1 %v3050_v51  ;;  %v3112_v50 = vld [vmem:[%s6054_s1 + $0xf68] sm:$0xff]  ;;  %v3114_v51 = vld [vmem:[%s6054_s1 + $0xf78] sm:$0xff] }
  0xeb   : > { %1467 = vmatpush1.msra.mxu0 %v3047_v52  ;;  %1544 = vmatpush1.msra.mxu1 %v3049_v53  ;;  %v3111_v52 = vld [vmem:[%s6054_s1 + $0xf60] sm:$0xff]  ;;  %v3113_v53 = vld [vmem:[%s6054_s1 + $0xf70] sm:$0xff] }
  0xec   : > { %1468 = vmatprep.subr.mxu0 %v3044_v55  ;;  %1545 = vmatprep.subr.mxu1 %v3046_v56  ;;  %v3108_v55 = vld [vmem:[%s6054_s1 + $0xf48] sm:$0xff]  ;;  %v3110_v56 = vld [vmem:[%s6054_s1 + $0xf58] sm:$0xff] }
  0xed   : > { %1469 = vmatpush1.msra.mxu0 %v3043_v57  ;;  %1546 = vmatpush1.msra.mxu1 %v3045_v59  ;;  %v3107_v57 = vld [vmem:[%s6054_s1 + $0xf40] sm:$0xff]  ;;  %v3109_v59 = vld [vmem:[%s6054_s1 + $0xf50] sm:$0xff] }
  0xee   : > { %1470 = vmatprep.subr.mxu0 %v3040_v60  ;;  %1547 = vmatprep.subr.mxu1 %v3042_v61  ;;  %v3104_v60 = vld [vmem:[%s6054_s1 + $0xf28] sm:$0xff]  ;;  %v3106_v61 = vld [vmem:[%s6054_s1 + $0xf38] sm:$0xff] }
  0xef   : > { %1471 = vmatpush1.msra.mxu0 %v3039_v62  ;;  %1548 = vmatpush1.msra.mxu1 %v3041_v63  ;;  %v3103_v62 = vld [vmem:[%s6054_s1 + $0xf20] sm:$0xff]  ;;  %v3105_v63 = vld [vmem:[%s6054_s1 + $0xf30] sm:$0xff] }
  0xf0   : > { %1472 = vmatprep.subr.mxu0 %v3036_v0  ;;  %1549 = vmatprep.subr.mxu1 %v3038_v1  ;;  %v3100_v0 = vld [vmem:[%s6054_s1 + $0xf08] sm:$0xff]  ;;  %v3102_v1 = vld [vmem:[%s6054_s1 + $0xf18] sm:$0xff] }
  0xf1   : > { %1473 = vmatpush1.msra.mxu0 %v3035_v2  ;;  %1550 = vmatpush1.msra.mxu1 %v3037_v3  ;;  %v3099_v2 = vld [vmem:[%s6054_s1 + $0xf00] sm:$0xff]  ;;  %v3101_v3 = vld [vmem:[%s6054_s1 + $0xf10] sm:$0xff] }
  0xf2   : > { %1474 = vmatprep.subr.mxu0 %v3032_v4  ;;  %1551 = vmatprep.subr.mxu1 %v3034_v5  ;;  %v3096_v4 = vld [vmem:[%s6054_s1 + $0xee8] sm:$0xff]  ;;  %v3098_v5 = vld [vmem:[%s6054_s1 + $0xef8] sm:$0xff] }
  0xf3   : > { %1475 = vmatpush1.msra.mxu0 %v3031_v6  ;;  %1552 = vmatpush1.msra.mxu1 %v3033_v7  ;;  %v3095_v6 = vld [vmem:[%s6054_s1 + $0xee0] sm:$0xff]  ;;  %v3097_v7 = vld [vmem:[%s6054_s1 + $0xef0] sm:$0xff] }
  0xf4   : > { %1476 = vmatprep.subr.mxu0 %v3028_v8  ;;  %1553 = vmatprep.subr.mxu1 %v3030_v9  ;;  %v3092_v8 = vld [vmem:[%s6054_s1 + $0xec8] sm:$0xff]  ;;  %v3094_v9 = vld [vmem:[%s6054_s1 + $0xed8] sm:$0xff] }
  0xf5   : > { %1477 = vmatpush1.msra.mxu0 %v3027_v10  ;;  %1554 = vmatpush1.msra.mxu1 %v3029_v11  ;;  %v3091_v10 = vld [vmem:[%s6054_s1 + $0xec0] sm:$0xff]  ;;  %v3093_v11 = vld [vmem:[%s6054_s1 + $0xed0] sm:$0xff] }
  0xf6   : > { %1478 = vmatprep.subr.mxu0 %v3024_v12  ;;  %1555 = vmatprep.subr.mxu1 %v3026_v13  ;;  %v3088_v12 = vld [vmem:[%s6054_s1 + $0xea8] sm:$0xff]  ;;  %v3090_v13 = vld [vmem:[%s6054_s1 + $0xeb8] sm:$0xff] }
  0xf7   : > { %1479 = vmatpush1.msra.mxu0 %v3023_v14  ;;  %1556 = vmatpush1.msra.mxu1 %v3025_v15  ;;  %v3087_v14 = vld [vmem:[%s6054_s1 + $0xea0] sm:$0xff]  ;;  %v3089_v15 = vld [vmem:[%s6054_s1 + $0xeb0] sm:$0xff] }
  0xf8   : > { %1480 = vmatprep.subr.mxu0 %v3020_v16  ;;  %1557 = vmatprep.subr.mxu1 %v3022_v17  ;;  %v3084_v16 = vld [vmem:[%s6054_s1 + $0xe88] sm:$0xff]  ;;  %v3086_v17 = vld [vmem:[%s6054_s1 + $0xe98] sm:$0xff] }
  0xf9   : > { %1481 = vmatpush1.msra.mxu0 %v3019_v18  ;;  %1558 = vmatpush1.msra.mxu1 %v3021_v19  ;;  %v3083_v18 = vld [vmem:[%s6054_s1 + $0xe80] sm:$0xff]  ;;  %v3085_v19 = vld [vmem:[%s6054_s1 + $0xe90] sm:$0xff] }
  0xfa   : > { %1482 = vmatprep.subr.mxu0 %v3016_v20  ;;  %1559 = vmatprep.subr.mxu1 %v3018_v54  ;;  %v3080_v20 = vld [vmem:[%s6054_s1 + $0xe68] sm:$0xff]  ;;  %v3082_v54 = vld [vmem:[%s6054_s1 + $0xe78] sm:$0xff] }
  0xfb   : > { %1483 = vmatpush1.msra.mxu0 %v3015_v21  ;;  %1560 = vmatpush1.msra.mxu1 %v3017_v22  ;;  %v1289_v21 = vld [vmem:[%s3951_s24 + $0x18] sm:$0xfe]  ;;  %v5139_v22 = vld [vmem:[%s3951_s24 + $0x28] sm:$0xff] }
  0xfc   : > { %1484 = vmatprep.subr.mxu0 %v3012_v23  ;;  %1561 = vmatprep.subr.mxu1 %v3014_v24  ;;  %v3079_v23 = vld [vmem:[%s6054_s1 + $0xe60] sm:$0xff]  ;;  %v3081_v24 = vld [vmem:[%s6054_s1 + $0xe70] sm:$0xff] }
  0xfd   : > { %1485 = vmatpush1.msra.mxu0 %v3011_v25  ;;  %1562 = vmatpush1.msra.mxu1 %v3013_v26  ;;  %v3076_v25 = vld [vmem:[%s6054_s1 + $0xe48] sm:$0xff]  ;;  %v3078_v26 = vld [vmem:[%s6054_s1 + $0xe58] sm:$0xff] }
  0xfe   : > { %1486 = vmatprep.subr.mxu0 %v3008_v27  ;;  %1563 = vmatprep.subr.mxu1 %v3010_v58  ;;  %v1288_v27 = vld [vmem:[%s3951_s24 + $0x10] sm:$0xfe]  ;;  %v5155_v58 = vld [vmem:[%s3951_s24 + $0x20] sm:$0xff] }
  0xff   : > { %1487 = vmatpush1.msra.mxu0 %v3007_v28  ;;  %1564 = vmatpush1.msra.mxu1 %v3009_v29  ;;  %v3075_v28 = vld [vmem:[%s6054_s1 + $0xe40] sm:$0xff]  ;;  %v3077_v29 = vld [vmem:[%s6054_s1 + $0xe50] sm:$0xff] }
 0x100   : > { %1488 = vmatprep.subr.mxu0 %v3004_v30  ;;  %1565 = vmatprep.subr.mxu1 %v3006_v31  ;;  %v1433_v30 = vrot.slane %v1289_v21, 1  ;;  %v1434_v31 = vrot.slane %v5139_v22, 1  ;;  %v3167_v21 = vld [vmem:[%s6054_s1 + $0x10e0] sm:$0xff] }
 0x101   : > { %1489 = vmatpush1.msra.mxu0 %v3003_v32  ;;  %1566 = vmatpush1.msra.mxu1 %v3005_v33  ;;  %v3072_v32 = vld [vmem:[%s6054_s1 + $0xe28] sm:$0xff]  ;;  %v3074_v33 = vld [vmem:[%s6054_s1 + $0xe38] sm:$0xff] }
 0x102   : > { %3131 = vmatprep.subr.msk.mxu0 %vm417_vm0, %v3128_v34  ;;  %3135 = vmatprep.subr.msk.mxu1 %vm417_vm0, %v3130_v35  ;;  %v3071_v34 = vld [vmem:[%s6054_s1 + $0xe20] sm:$0xff]  ;;  %v3073_v35 = vld [vmem:[%s6054_s1 + $0xe30] sm:$0xff] }
 0x103   : > { %3132 = vmatpush2.msk.msra.mxu0 %vm417_vm0, %v3127_v36  ;;  %3136 = vmatpush2.msk.msra.mxu1 %vm417_vm0, %v3129_v37  ;;  %v1430_v36 = vrot.slane %v1288_v27, 1  ;;  %v1431_v37 = vrot.slane %v5155_v58, 1  ;;  %v3165_v27 = vld [vmem:[%s6054_s1 + $0x10d0] sm:$0xff] }
 0x104   : > { %1492 = vmatprep.subr.mxu0 %v3124_v38  ;;  %1569 = vmatprep.subr.mxu1 %v3126_v39  ;;  %v3068_v38 = vld [vmem:[%s6054_s1 + $0xe08] sm:$0xff]  ;;  %v3070_v39 = vld [vmem:[%s6054_s1 + $0xe18] sm:$0xff] }
 0x105   : > { %1493 = vmatpush2.msra.mxu0 %v3123_v40  ;;  %1570 = vmatpush2.msra.mxu1 %v3125_v41  ;;  %v1293_v40 = vld [vmem:[%s3951_s24 + $0x38] sm:$0x1]  ;;  %v3067_v41 = vld [vmem:[%s6054_s1 + $0xe00] sm:$0xff] }
 0x106   : > { %1494 = vmatprep.subr.mxu0 %v3120_v42  ;;  %1571 = vmatprep.subr.mxu1 %v3122_v43  ;;  %v1435_v42 = vsel %vm1429_vm4, %v1433_v30, %v1434_v31  ;;  %v3069_v43 = vld [vmem:[%s6054_s1 + $0xe10] sm:$0xff]  ;;  %v3159_v30 = vld [vmem:[%s6054_s1 + $0x10a0] sm:$0xff] }
 0x107   : > { %1495 = vmatpush2.msra.mxu0 %v3119_v44  ;;  %1572 = vmatpush2.msra.mxu1 %v3121_v45  ;;  %v1292_v44 = vld [vmem:[%s3951_s24 + $0x30] sm:$0x1]  ;;  %v1432_v45 = vsel %vm1429_vm4, %v1430_v36, %v1431_v37  ;;  %v3152_v36 = vld [vmem:[%s6054_s1 + $0x1068] sm:$0xff] }
 0x108   : > { %1496 = vmatprep.subr.mxu0 %v3116_v46  ;;  %1573 = vmatprep.subr.mxu1 %v3118_v47  ;;  %v1438_v46 = vrot.slane %v1293_v40, 1  ;;  %v3200_v47 = vld [vmem:[%s6054_s1 + $0x11e8] sm:$0xff] }
 0x109   : > { %1497 = vmatpush2.msra.mxu0 %v3115_v48  ;;  %1574 = vmatpush2.msra.mxu1 %v3117_v49  ;;  %v3202_v48 = vld [vmem:[%s6054_s1 + $0x11f8] sm:$0xff]  ;;  %v3199_v49 = vld [vmem:[%s6054_s1 + $0x11e0] sm:$0xff]  ;;  %v3148_v40 = vld [vmem:[%s6054_s1 + $0x1048] sm:$0xff] }
 0x10a   : > { %1498 = vmatprep.subr.mxu0 %v3112_v50  ;;  %1575 = vmatprep.subr.mxu1 %v3114_v51  ;;  %v3201_v50 = vld [vmem:[%s6054_s1 + $0x11f0] sm:$0xff]  ;;  %v1436_v51 = vrot.slane %v1292_v44, 1  ;;  %v3144_v44 = vld [vmem:[%s6054_s1 + $0x1028] sm:$0xff] }
 0x10b   : > { %1499 = vmatpush2.msra.mxu0 %v3111_v52  ;;  %1576 = vmatpush2.msra.mxu1 %v3113_v53  ;;  %v3196_v52 = vld [vmem:[%s6054_s1 + $0x11c8] sm:$0xff]  ;;  %v3198_v53 = vld [vmem:[%s6054_s1 + $0x11d8] sm:$0xff] }
 0x10c   : > { %1500 = vmatprep.subr.mxu0 %v3108_v55  ;;  %1577 = vmatprep.subr.mxu1 %v3110_v56  ;;  %v1439_v55 = vsel %vm1429_vm4, %v1434_v31, %v1438_v46  ;;  %v3195_v56 = vld [vmem:[%s6054_s1 + $0x11c0] sm:$0xff]  ;;  %v3161_v31 = vld [vmem:[%s6054_s1 + $0x10b0] sm:$0xff] }
 0x10d   : > { %1501 = vmatpush2.msra.mxu0 %v3107_v57  ;;  %1578 = vmatpush2.msra.mxu1 %v3109_v59  ;;  %v3197_v57 = vld [vmem:[%s6054_s1 + $0x11d0] sm:$0xff]  ;;  %v1437_v59 = vsel %vm1429_vm4, %v1431_v37, %v1436_v51  ;;  %v3154_v37 = vld [vmem:[%s6054_s1 + $0x1078] sm:$0xff]  ;;  %v3143_v46 = vld [vmem:[%s6054_s1 + $0x1020] sm:$0xff] }
 0x10e   : > { %1502 = vmatprep.subr.mxu0 %v3104_v60  ;;  %1579 = vmatprep.subr.mxu1 %v3106_v61  ;;  %v3192_v60 = vld [vmem:[%s6054_s1 + $0x11a8] sm:$0xff]  ;;  %v3194_v61 = vld [vmem:[%s6054_s1 + $0x11b8] sm:$0xff]  ;;  %v3141_v51 = vld [vmem:[%s6054_s1 + $0x1010] sm:$0xff] }
 0x10f   : > { %1503 = vmatpush2.msra.mxu0 %v3103_v62  ;;  %1580 = vmatpush2.msra.mxu1 %v3105_v63  ;;  %v3191_v62 = vld [vmem:[%s6054_s1 + $0x11a0] sm:$0xff]  ;;  %v3193_v63 = vld [vmem:[%s6054_s1 + $0x11b0] sm:$0xff] }
 0x110   : > { %1504 = vmatprep.subr.mxu0 %v3100_v0  ;;  %1581 = vmatprep.subr.mxu1 %v3102_v1  ;;  %v3188_v0 = vld [vmem:[%s6054_s1 + $0x1188] sm:$0xff]  ;;  %v3190_v1 = vld [vmem:[%s6054_s1 + $0x1198] sm:$0xff] }
 0x111   : > { %1505 = vmatpush2.msra.mxu0 %v3099_v2  ;;  %1582 = vmatpush2.msra.mxu1 %v3101_v3  ;;  %v3187_v2 = vld [vmem:[%s6054_s1 + $0x1180] sm:$0xff]  ;;  %v3189_v3 = vld [vmem:[%s6054_s1 + $0x1190] sm:$0xff] }
 0x112   : > { %1506 = vmatprep.subr.mxu0 %v3096_v4  ;;  %1583 = vmatprep.subr.mxu1 %v3098_v5  ;;  %v3184_v4 = vld [vmem:[%s6054_s1 + $0x1168] sm:$0xff]  ;;  %v3186_v5 = vld [vmem:[%s6054_s1 + $0x1178] sm:$0xff] }
 0x113   : > { %1507 = vmatpush2.msra.mxu0 %v3095_v6  ;;  %1584 = vmatpush2.msra.mxu1 %v3097_v7  ;;  %v3183_v6 = vld [vmem:[%s6054_s1 + $0x1160] sm:$0xff]  ;;  %v3185_v7 = vld [vmem:[%s6054_s1 + $0x1170] sm:$0xff] }
 0x114   : > { %1508 = vmatprep.subr.mxu0 %v3092_v8  ;;  %1585 = vmatprep.subr.mxu1 %v3094_v9  ;;  %v3180_v8 = vld [vmem:[%s6054_s1 + $0x1148] sm:$0xff]  ;;  %v3182_v9 = vld [vmem:[%s6054_s1 + $0x1158] sm:$0xff] }
 0x115   : > { %1509 = vmatpush2.msra.mxu0 %v3091_v10  ;;  %1586 = vmatpush2.msra.mxu1 %v3093_v11  ;;  %v3179_v10 = vld [vmem:[%s6054_s1 + $0x1140] sm:$0xff]  ;;  %v3181_v11 = vld [vmem:[%s6054_s1 + $0x1150] sm:$0xff] }
 0x116   : > { %1510 = vmatprep.subr.mxu0 %v3088_v12  ;;  %1587 = vmatprep.subr.mxu1 %v3090_v13  ;;  %v3176_v12 = vld [vmem:[%s6054_s1 + $0x1128] sm:$0xff]  ;;  %v3178_v13 = vld [vmem:[%s6054_s1 + $0x1138] sm:$0xff] }
 0x117   : > { %1511 = vmatpush2.msra.mxu0 %v3087_v14  ;;  %1588 = vmatpush2.msra.mxu1 %v3089_v15  ;;  %v3175_v14 = vld [vmem:[%s6054_s1 + $0x1120] sm:$0xff]  ;;  %v3177_v15 = vld [vmem:[%s6054_s1 + $0x1130] sm:$0xff] }
 0x118   : > { %1512 = vmatprep.subr.mxu0 %v3084_v16  ;;  %1589 = vmatprep.subr.mxu1 %v3086_v17  ;;  %v3172_v16 = vld [vmem:[%s6054_s1 + $0x1108] sm:$0xff]  ;;  %v3174_v17 = vld [vmem:[%s6054_s1 + $0x1118] sm:$0xff] }
 0x119   : > { %1513 = vmatpush2.msra.mxu0 %v3083_v18  ;;  %1590 = vmatpush2.msra.mxu1 %v3085_v19  ;;  %v3171_v18 = vld [vmem:[%s6054_s1 + $0x1100] sm:$0xff]  ;;  %v3173_v19 = vld [vmem:[%s6054_s1 + $0x1110] sm:$0xff] }
 0x11a   : > { %1514 = vmatprep.subr.mxu0 %v3080_v20  ;;  %1591 = vmatprep.subr.mxu1 %v3082_v54  ;;  %v3168_v20 = vld [vmem:[%s6054_s1 + $0x10e8] sm:$0xff]  ;;  %v3170_v54 = vld [vmem:[%s6054_s1 + $0x10f8] sm:$0xff] }
 0x11b   : > { %1515 = vmatpush2.msra.mxu0 %v3079_v23  ;;  %1592 = vmatpush2.msra.mxu1 %v3081_v24  ;;  %v3169_v23 = vld [vmem:[%s6054_s1 + $0x10f0] sm:$0xff]  ;;  %v3164_v24 = vld [vmem:[%s6054_s1 + $0x10c8] sm:$0xff] }
 0x11c   : > { %1516 = vmatprep.subr.mxu0 %v3076_v25  ;;  %1593 = vmatprep.subr.mxu1 %v3078_v26  ;;  %v3166_v25 = vld [vmem:[%s6054_s1 + $0x10d8] sm:$0xff]  ;;  %v3163_v26 = vld [vmem:[%s6054_s1 + $0x10c0] sm:$0xff] }
 0x11d   : > { %1517 = vmatpush2.msra.mxu0 %v3075_v28  ;;  %1594 = vmatpush2.msra.mxu1 %v3077_v29  ;;  %v3160_v28 = vld [vmem:[%s6054_s1 + $0x10a8] sm:$0xff]  ;;  %v3162_v29 = vld [vmem:[%s6054_s1 + $0x10b8] sm:$0xff] }
 0x11e   : > { %1518 = vmatprep.subr.mxu0 %v3072_v32  ;;  %1595 = vmatprep.subr.mxu1 %v3074_v33  ;;  %v3156_v32 = vld [vmem:[%s6054_s1 + $0x1088] sm:$0xff]  ;;  %v3158_v33 = vld [vmem:[%s6054_s1 + $0x1098] sm:$0xff] }
 0x11f   : > { %1519 = vmatpush2.msra.mxu0 %v3071_v34  ;;  %1596 = vmatpush2.msra.mxu1 %v3073_v35  ;;  %v3155_v34 = vld [vmem:[%s6054_s1 + $0x1080] sm:$0xff]  ;;  %v3157_v35 = vld [vmem:[%s6054_s1 + $0x1090] sm:$0xff] }
 0x120   : > { %1520 = vmatprep.subr.mxu0 %v3068_v38  ;;  %1597 = vmatprep.subr.mxu1 %v3070_v39  ;;  %v3151_v38 = vld [vmem:[%s6054_s1 + $0x1060] sm:$0xff]  ;;  %v3153_v39 = vld [vmem:[%s6054_s1 + $0x1070] sm:$0xff] }
 0x121   : > { %1521 = vmatpush2.msra.mxu0 %v3067_v41  ;;  %3133 = vmatprep.mubr.msk.f32.mxu0 %vm410_vm1, %v1435_v42  ;;  %v3150_v41 = vld [vmem:[%s6054_s1 + $0x1058] sm:$0xff] }
 0x122   : > { %1598 = vmatpush2.msra.mxu1 %v3069_v43  ;;  %3137 = vmatprep.mubr.msk.f32.mxu1 %vm410_vm1, %v1435_v42  ;;  %v3147_v42 = vld [vmem:[%s6054_s1 + $0x1040] sm:$0xff]  ;;  %v3149_v43 = vld [vmem:[%s6054_s1 + $0x1050] sm:$0xff] }
 0x123   : > { %1523 = vmatmul.mubr.f32.vlgmr.msra.gmra.mxu0 %v1432_v45  ;;  %1600 = vmatmul.mubr.f32.vlgmr.msra.gmra.mxu1 %v1432_v45  ;;  %v3146_v45 = vld [vmem:[%s6054_s1 + $0x1038] sm:$0xff] }
 0x124   : > { %1805 = vmatprep.subr.mxu0 %v3200_v47  ;;  %1882 = vmatprep.subr.mxu1 %v3202_v48  ;;  %v3145_v47 = vld [vmem:[%s6054_s1 + $0x1030] sm:$0xff]  ;;  %v3140_v48 = vld [vmem:[%s6054_s1 + $0x1008] sm:$0xff] }
 0x125   : > { %1806 = vmatpush1.msra.mxu0 %v3199_v49  ;;  %1883 = vmatpush1.msra.mxu1 %v3201_v50  ;;  %v3142_v49 = vld [vmem:[%s6054_s1 + $0x1018] sm:$0xff]  ;;  %v3139_v50 = vld [vmem:[%s6054_s1 + $0x1000] sm:$0xff] }
 0x126   : > { %1807 = vmatprep.subr.mxu0 %v3196_v52  ;;  %1884 = vmatprep.subr.mxu1 %v3198_v53  ;;  %v3264_v52 = vld [vmem:[%s6054_s1 + $0x13e8] sm:$0xf]  ;;  %v3266_v53 = vld [vmem:[%s6054_s1 + $0x13f8] sm:$0xf] }
 0x127   : > { %3134 = vmatprep.mubr.msk.f32.mxu0 %vm410_vm1, %v1439_v55  ;;  %3138 = vmatprep.mubr.msk.f32.mxu1 %vm410_vm1, %v1439_v55  ;;  %v3263_v55 = vld [vmem:[%s6054_s1 + $0x13e0] sm:$0xf] }
 0x128   : > { %1808 = vmatpush1.msra.mxu0 %v3195_v56  ;;  %1885 = vmatpush1.msra.mxu1 %v3197_v57  ;;  %v3265_v56 = vld [vmem:[%s6054_s1 + $0x13f0] sm:$0xf]  ;;  %v3260_v57 = vld [vmem:[%s6054_s1 + $0x13c8] sm:$0xff] }
 0x129   : > { %1529 = vmatmul.mubr.f32.gmra.mxu0 %v1437_v59  ;;  %1606 = vmatmul.mubr.f32.gmra.mxu1 %v1437_v59  ;;  %v3262_v59 = vld [vmem:[%s6054_s1 + $0x13d8] sm:$0xff] }
 0x12a   : > { %1809 = vmatprep.subr.mxu0 %v3192_v60  ;;  %1886 = vmatprep.subr.mxu1 %v3194_v61  ;;  %v3259_v60 = vld [vmem:[%s6054_s1 + $0x13c0] sm:$0xff]  ;;  %v3261_v61 = vld [vmem:[%s6054_s1 + $0x13d0] sm:$0xff] }
 0x12b   : > { %1810 = vmatpush1.msra.mxu0 %v3191_v62  ;;  %1887 = vmatpush1.msra.mxu1 %v3193_v63  ;;  %v3256_v62 = vld [vmem:[%s6054_s1 + $0x13a8] sm:$0xff]  ;;  %v3258_v63 = vld [vmem:[%s6054_s1 + $0x13b8] sm:$0xff] }
 0x12c   : > { %1811 = vmatprep.subr.mxu0 %v3188_v0  ;;  %1888 = vmatprep.subr.mxu1 %v3190_v1  ;;  %v3255_v0 = vld [vmem:[%s6054_s1 + $0x13a0] sm:$0xff]  ;;  %v3257_v1 = vld [vmem:[%s6054_s1 + $0x13b0] sm:$0xff] }
 0x12d   : > { %1812 = vmatpush1.msra.mxu0 %v3187_v2  ;;  %1889 = vmatpush1.msra.mxu1 %v3189_v3  ;;  %v3252_v2 = vld [vmem:[%s6054_s1 + $0x1388] sm:$0xff]  ;;  %v3254_v3 = vld [vmem:[%s6054_s1 + $0x1398] sm:$0xff] }
 0x12e   : > { %1813 = vmatprep.subr.mxu0 %v3184_v4  ;;  %1890 = vmatprep.subr.mxu1 %v3186_v5  ;;  %v3251_v4 = vld [vmem:[%s6054_s1 + $0x1380] sm:$0xff]  ;;  %v3253_v5 = vld [vmem:[%s6054_s1 + $0x1390] sm:$0xff] }
 0x12f   : > { %1814 = vmatpush1.msra.mxu0 %v3183_v6  ;;  %1891 = vmatpush1.msra.mxu1 %v3185_v7  ;;  %v3248_v6 = vld [vmem:[%s6054_s1 + $0x1368] sm:$0xff]  ;;  %v3250_v7 = vld [vmem:[%s6054_s1 + $0x1378] sm:$0xff] }
 0x130   : > { %1815 = vmatprep.subr.mxu0 %v3180_v8  ;;  %1892 = vmatprep.subr.mxu1 %v3182_v9  ;;  %v3247_v8 = vld [vmem:[%s6054_s1 + $0x1360] sm:$0xff]  ;;  %v3249_v9 = vld [vmem:[%s6054_s1 + $0x1370] sm:$0xff] }
 0x131   : > { %1816 = vmatpush1.msra.mxu0 %v3179_v10  ;;  %1893 = vmatpush1.msra.mxu1 %v3181_v11  ;;  %v3244_v10 = vld [vmem:[%s6054_s1 + $0x1348] sm:$0xff]  ;;  %v3246_v11 = vld [vmem:[%s6054_s1 + $0x1358] sm:$0xff] }
 0x132   : > { %1817 = vmatprep.subr.mxu0 %v3176_v12  ;;  %1894 = vmatprep.subr.mxu1 %v3178_v13  ;;  %v3243_v12 = vld [vmem:[%s6054_s1 + $0x1340] sm:$0xff]  ;;  %v3245_v13 = vld [vmem:[%s6054_s1 + $0x1350] sm:$0xff] }
 0x133   : > { %1818 = vmatpush1.msra.mxu0 %v3175_v14  ;;  %1895 = vmatpush1.msra.mxu1 %v3177_v15  ;;  %v3240_v14 = vld [vmem:[%s6054_s1 + $0x1328] sm:$0xff]  ;;  %v3242_v15 = vld [vmem:[%s6054_s1 + $0x1338] sm:$0xff] }
 0x134   : > { %1819 = vmatprep.subr.mxu0 %v3172_v16  ;;  %1896 = vmatprep.subr.mxu1 %v3174_v17  ;;  %v3239_v16 = vld [vmem:[%s6054_s1 + $0x1320] sm:$0xff]  ;;  %v3241_v17 = vld [vmem:[%s6054_s1 + $0x1330] sm:$0xff] }
 0x135   : > { %1820 = vmatpush1.msra.mxu0 %v3171_v18  ;;  %1897 = vmatpush1.msra.mxu1 %v3173_v19  ;;  %v3236_v18 = vld [vmem:[%s6054_s1 + $0x1308] sm:$0xff]  ;;  %v3238_v19 = vld [vmem:[%s6054_s1 + $0x1318] sm:$0xff] }
 0x136   : > { %1821 = vmatprep.subr.mxu0 %v3168_v20  ;;  %1898 = vmatprep.subr.mxu1 %v3170_v54  ;;  %v3235_v20 = vld [vmem:[%s6054_s1 + $0x1300] sm:$0xff]  ;;  %v3237_v54 = vld [vmem:[%s6054_s1 + $0x1310] sm:$0xff] }
 0x137   : > { %1822 = vmatpush1.msra.mxu0 %v3167_v21  ;;  %1899 = vmatpush1.msra.mxu1 %v3169_v23  ;;  %v3232_v21 = vld [vmem:[%s6054_s1 + $0x12e8] sm:$0xff]  ;;  %v3234_v23 = vld [vmem:[%s6054_s1 + $0x12f8] sm:$0xff] }
 0x138   : > { %1823 = vmatprep.subr.mxu0 %v3164_v24  ;;  %1900 = vmatprep.subr.mxu1 %v3166_v25  ;;  %v3231_v24 = vld [vmem:[%s6054_s1 + $0x12e0] sm:$0xff]  ;;  %v3233_v25 = vld [vmem:[%s6054_s1 + $0x12f0] sm:$0xff] }
 0x139   : > { %1824 = vmatpush1.msra.mxu0 %v3163_v26  ;;  %1901 = vmatpush1.msra.mxu1 %v3165_v27  ;;  %v3228_v26 = vld [vmem:[%s6054_s1 + $0x12c8] sm:$0xff]  ;;  %v3230_v27 = vld [vmem:[%s6054_s1 + $0x12d8] sm:$0xff] }
 0x13a   : > { %1825 = vmatprep.subr.mxu0 %v3160_v28  ;;  %1902 = vmatprep.subr.mxu1 %v3162_v29  ;;  %v3227_v28 = vld [vmem:[%s6054_s1 + $0x12c0] sm:$0xff]  ;;  %v3229_v29 = vld [vmem:[%s6054_s1 + $0x12d0] sm:$0xff] }
 0x13b   : > { %1826 = vmatpush1.msra.mxu0 %v3159_v30  ;;  %1903 = vmatpush1.msra.mxu1 %v3161_v31  ;;  %v3224_v30 = vld [vmem:[%s6054_s1 + $0x12a8] sm:$0xff]  ;;  %v3226_v31 = vld [vmem:[%s6054_s1 + $0x12b8] sm:$0xff] }
 0x13c   : > { %1827 = vmatprep.subr.mxu0 %v3156_v32  ;;  %1904 = vmatprep.subr.mxu1 %v3158_v33  ;;  %v3223_v32 = vld [vmem:[%s6054_s1 + $0x12a0] sm:$0xff]  ;;  %v3225_v33 = vld [vmem:[%s6054_s1 + $0x12b0] sm:$0xff] }
 0x13d   : > { %1828 = vmatpush1.msra.mxu0 %v3155_v34  ;;  %1905 = vmatpush1.msra.mxu1 %v3157_v35  ;;  %v3220_v34 = vld [vmem:[%s6054_s1 + $0x1288] sm:$0xff]  ;;  %v3222_v35 = vld [vmem:[%s6054_s1 + $0x1298] sm:$0xff] }
 0x13e   : > { %1829 = vmatprep.subr.mxu0 %v3152_v36  ;;  %1906 = vmatprep.subr.mxu1 %v3154_v37  ;;  %v3219_v36 = vld [vmem:[%s6054_s1 + $0x1280] sm:$0xff]  ;;  %v3221_v37 = vld [vmem:[%s6054_s1 + $0x1290] sm:$0xff] }
 0x13f   : > { %1830 = vmatpush1.msra.mxu0 %v3151_v38  ;;  %1907 = vmatpush1.msra.mxu1 %v3153_v39  ;;  %v3216_v38 = vld [vmem:[%s6054_s1 + $0x1268] sm:$0xff]  ;;  %v3218_v39 = vld [vmem:[%s6054_s1 + $0x1278] sm:$0xff] }
 0x140   : > { %1831 = vmatprep.subr.mxu0 %v3148_v40  ;;  %1908 = vmatprep.subr.mxu1 %v3150_v41  ;;  %v1637_v40 = vld [vmem:[%s3951_s24 + $0x18] sm:$0xf0]  ;;  %v3215_v41 = vld [vmem:[%s6054_s1 + $0x1260] sm:$0xff] }
 0x141   : > { %1832 = vmatpush1.msra.mxu0 %v3147_v42  ;;  %1909 = vmatpush1.msra.mxu1 %v3149_v43  ;;  %v3217_v42 = vld [vmem:[%s6054_s1 + $0x1270] sm:$0xff]  ;;  %v3212_v43 = vld [vmem:[%s6054_s1 + $0x1248] sm:$0xff] }
 0x142   : > { %1833 = vmatprep.subr.mxu0 %v3144_v44  ;;  %1910 = vmatprep.subr.mxu1 %v3146_v45  ;;  %v3214_v44 = vld [vmem:[%s6054_s1 + $0x1258] sm:$0xff]  ;;  %v1636_v45 = vld [vmem:[%s3951_s24 + $0x10] sm:$0xf0] }
 0x143   : > { %1834 = vmatpush1.msra.mxu0 %v3143_v46  ;;  %1911 = vmatpush1.msra.mxu1 %v3145_v47  ;;  %v3211_v46 = vld [vmem:[%s6054_s1 + $0x1240] sm:$0xff]  ;;  %v3213_v47 = vld [vmem:[%s6054_s1 + $0x1250] sm:$0xff] }
 0x144   : > { %1835 = vmatprep.subr.mxu0 %v3140_v48  ;;  %1912 = vmatprep.subr.mxu1 %v3142_v49  ;;  %v1780_v48 = vrot.slane %v1637_v40, 4  ;;  %v1781_v49 = vrot.slane %v5139_v22, 4  ;;  %v3209_v22 = vld [vmem:[%s6054_s1 + $0x1230] sm:$0xff]  ;;  %v2100_v40 = vld [vmem:[%s6056_s3 + $0x1d8] sm:$0xff] }
 0x145   : > { %1836 = vmatpush1.msra.mxu0 %v3139_v50  ;;  %1913 = vmatpush1.msra.mxu1 %v3141_v51  ;;  %v1641_v50 = vld [vmem:[%s3951_s24 + $0x38] sm:$0xf]  ;;  %v3208_v51 = vld [vmem:[%s6054_s1 + $0x1228] sm:$0xff] }
 0x146   : > { %3267 = vmatprep.subr.msk.mxu0 %vm417_vm0, %v3264_v52  ;;  %3271 = vmatprep.subr.msk.mxu1 %vm417_vm0, %v3266_v53  ;;  %v3210_v52 = vld [vmem:[%s6054_s1 + $0x1238] sm:$0xff]  ;;  %v3207_v53 = vld [vmem:[%s6054_s1 + $0x1220] sm:$0xff] }
 0x147   : > { %3268 = vmatpush2.msk.msra.mxu0 %vm417_vm0, %v3263_v55  ;;  %3272 = vmatpush2.msk.msra.mxu1 %vm417_vm0, %v3265_v56  ;;  %v1777_v55 = vrot.slane %v1636_v45, 4  ;;  %v1778_v56 = vrot.slane %v5155_v58, 4  ;;  %v1782_v58 = vsel %vm417_vm0, %v1780_v48, %v1781_v49  ;;  %v2095_v45 = vld [vmem:[%s6056_s3 + $0x1b0] sm:$0xff]  ;;  %v2092_v48 = vld [vmem:[%s6056_s3 + $0x198] sm:$0xff] }
 0x148   : > { %1839 = vmatprep.subr.mxu0 %v3260_v57  ;;  %1916 = vmatprep.subr.mxu1 %v3262_v59  ;;  %v3204_v57 = vld [vmem:[%s6054_s1 + $0x1208] sm:$0xff]  ;;  %v3206_v59 = vld [vmem:[%s6054_s1 + $0x1218] sm:$0xff] }
 0x149   : > { %1840 = vmatpush2.msra.mxu0 %v3259_v60  ;;  %1917 = vmatpush2.msra.mxu1 %v3261_v61  ;;  %v1785_v60 = vrot.slane %v1641_v50, 4  ;;  %v1640_v61 = vld [vmem:[%s3951_s24 + $0x30] sm:$0xf]  ;;  %v2090_v50 = vld [vmem:[%s6056_s3 + $0x188] sm:$0xff] }
 0x14a   : > { %1841 = vmatprep.subr.mxu0 %v3256_v62  ;;  %1918 = vmatprep.subr.mxu1 %v3258_v63  ;;  %v3203_v62 = vld [vmem:[%s6054_s1 + $0x1200] sm:$0xff]  ;;  %v3205_v63 = vld [vmem:[%s6054_s1 + $0x1210] sm:$0xff] }
 0x14b   : > { %1842 = vmatpush2.msra.mxu0 %v3255_v0  ;;  %1919 = vmatpush2.msra.mxu1 %v3257_v1  ;;  %v1779_v0 = vsel %vm417_vm0, %v1777_v55, %v1778_v56  ;;  %v1783_v1 = vrot.slane %v1640_v61, 4  ;;  %v2085_v55 = vld [vmem:[%s6056_s3 + $0x160] sm:$0xff]  ;;  %v2080_v61 = vld [vmem:[%s6056_s3 + $0x138] sm:$0xff] }
 0x14c   : > { %1843 = vmatprep.subr.mxu0 %v3252_v2  ;;  %1920 = vmatprep.subr.mxu1 %v3254_v3  ;;  %v1786_v2 = vsel %vm417_vm0, %v1781_v49, %v1785_v60  ;;  %v2091_v49 = vld [vmem:[%s6056_s3 + $0x190] sm:$0xff]  ;;  %v2081_v60 = vld [vmem:[%s6056_s3 + $0x140] sm:$0xff] }
 0x14d   : > { %1844 = vmatpush2.msra.mxu0 %v3251_v4  ;;  %1921 = vmatpush2.msra.mxu1 %v3253_v5  ;;  %v1784_v3 = vsel %vm417_vm0, %v1778_v56, %v1783_v1  ;;  %v2072_v4 = vld [vmem:[%s6056_s3 + $0xf8] sm:$0xff]  ;;  %v2071_v5 = vld [vmem:[%s6056_s3 + $0xf0] sm:$0xff] }
 0x14e   : > { %1845 = vmatprep.subr.mxu0 %v3248_v6  ;;  %1922 = vmatprep.subr.mxu1 %v3250_v7  ;;  %v2070_v6 = vld [vmem:[%s6056_s3 + $0xe8] sm:$0xff]  ;;  %v2069_v7 = vld [vmem:[%s6056_s3 + $0xe0] sm:$0xff]  ;;  %v2084_v56 = vld [vmem:[%s6056_s3 + $0x158] sm:$0xff] }
 0x14f   : > { %1846 = vmatpush2.msra.mxu0 %v3247_v8  ;;  %1923 = vmatpush2.msra.mxu1 %v3249_v9  ;;  %v2068_v8 = vld [vmem:[%s6056_s3 + $0xd8] sm:$0xff]  ;;  %v2067_v9 = vld [vmem:[%s6056_s3 + $0xd0] sm:$0xff] }
 0x150   : > { %1847 = vmatprep.subr.mxu0 %v3244_v10  ;;  %1924 = vmatprep.subr.mxu1 %v3246_v11  ;;  %v2066_v10 = vld [vmem:[%s6056_s3 + $0xc8] sm:$0xff]  ;;  %v2065_v11 = vld [vmem:[%s6056_s3 + $0xc0] sm:$0xff]  ;;  %v2075_v1 = vld [vmem:[%s6056_s3 + $0x110] sm:$0xff] }
 0x151   : > { %1848 = vmatpush2.msra.mxu0 %v3243_v12  ;;  %1925 = vmatpush2.msra.mxu1 %v3245_v13  ;;  %v2064_v12 = vld [vmem:[%s6056_s3 + $0xb8] sm:$0xff]  ;;  %v2063_v13 = vld [vmem:[%s6056_s3 + $0xb0] sm:$0xff] }
 0x152   : > { %1849 = vmatprep.subr.mxu0 %v3240_v14  ;;  %1926 = vmatprep.subr.mxu1 %v3242_v15  ;;  %v2062_v14 = vld [vmem:[%s6056_s3 + $0xa8] sm:$0xff]  ;;  %v2061_v15 = vld [vmem:[%s6056_s3 + $0xa0] sm:$0xff] }
 0x153   : > { %1850 = vmatpush2.msra.mxu0 %v3239_v16  ;;  %1927 = vmatpush2.msra.mxu1 %v3241_v17  ;;  %v2060_v16 = vld [vmem:[%s6056_s3 + $0x98] sm:$0xff]  ;;  %v2059_v17 = vld [vmem:[%s6056_s3 + $0x90] sm:$0xff] }
 0x154   : > { %1851 = vmatprep.subr.mxu0 %v3236_v18  ;;  %1928 = vmatprep.subr.mxu1 %v3238_v19  ;;  %v2058_v18 = vld [vmem:[%s6056_s3 + $0x88] sm:$0xff]  ;;  %v2057_v19 = vld [vmem:[%s6056_s3 + $0x80] sm:$0xff] }
 0x155   : > { %1852 = vmatpush2.msra.mxu0 %v3235_v20  ;;  %1929 = vmatpush2.msra.mxu1 %v3237_v54  ;;  %v2056_v20 = vld [vmem:[%s6056_s3 + $0x78] sm:$0xff]  ;;  %v2055_v54 = vld [vmem:[%s6056_s3 + $0x70] sm:$0xff] }
 0x156   : > { %1853 = vmatprep.subr.mxu0 %v3232_v21  ;;  %1930 = vmatprep.subr.mxu1 %v3234_v23  ;;  %v2054_v21 = vld [vmem:[%s6056_s3 + $0x68] sm:$0xff]  ;;  %v2053_v23 = vld [vmem:[%s6056_s3 + $0x60] sm:$0xff] }
 0x157   : > { %1854 = vmatpush2.msra.mxu0 %v3231_v24  ;;  %1931 = vmatpush2.msra.mxu1 %v3233_v25  ;;  %v2052_v24 = vld [vmem:[%s6056_s3 + $0x58] sm:$0xff]  ;;  %v2051_v25 = vld [vmem:[%s6056_s3 + $0x50] sm:$0xff] }
 0x158   : > { %1855 = vmatprep.subr.mxu0 %v3228_v26  ;;  %1932 = vmatprep.subr.mxu1 %v3230_v27  ;;  %v2050_v26 = vld [vmem:[%s6056_s3 + $0x48] sm:$0xff]  ;;  %v2049_v27 = vld [vmem:[%s6056_s3 + $0x40] sm:$0xff] }
 0x159   : > { %1856 = vmatpush2.msra.mxu0 %v3227_v28  ;;  %1933 = vmatpush2.msra.mxu1 %v3229_v29  ;;  %v2048_v28 = vld [vmem:[%s6056_s3 + $0x38] sm:$0xff]  ;;  %v2047_v29 = vld [vmem:[%s6056_s3 + $0x30] sm:$0xff] }
 0x15a   : > { %1857 = vmatprep.subr.mxu0 %v3224_v30  ;;  %1934 = vmatprep.subr.mxu1 %v3226_v31  ;;  %v2046_v30 = vld [vmem:[%s6056_s3 + $0x28] sm:$0xff]  ;;  %v2045_v31 = vld [vmem:[%s6056_s3 + $0x20] sm:$0xff] }
 0x15b   : > { %1858 = vmatpush2.msra.mxu0 %v3223_v32  ;;  %1935 = vmatpush2.msra.mxu1 %v3225_v33  ;;  %v2044_v32 = vld [vmem:[%s6056_s3 + $0x18] sm:$0xff]  ;;  %v2043_v33 = vld [vmem:[%s6056_s3 + $0x10] sm:$0xff] }
 0x15c   : > { %1859 = vmatprep.subr.mxu0 %v3220_v34  ;;  %1936 = vmatprep.subr.mxu1 %v3222_v35  ;;  %v2042_v34 = vld [vmem:[%s6056_s3 + $0x8] sm:$0xff]  ;;  %v2041_v35 = vld [vmem:[%s6056_s3] sm:$0xff] }
 0x15d   : > { %1860 = vmatpush2.msra.mxu0 %v3219_v36  ;;  %1937 = vmatpush2.msra.mxu1 %v3221_v37  ;;  %v2104_v36 = vld [vmem:[%s6056_s3 + $0x1f8] sm:$0xff]  ;;  %v2103_v37 = vld [vmem:[%s6056_s3 + $0x1f0] sm:$0xff] }
 0x15e   : > { %1861 = vmatprep.subr.mxu0 %v3216_v38  ;;  %1938 = vmatprep.subr.mxu1 %v3218_v39  ;;  %v2102_v38 = vld [vmem:[%s6056_s3 + $0x1e8] sm:$0xff]  ;;  %v2101_v39 = vld [vmem:[%s6056_s3 + $0x1e0] sm:$0xff] }
 0x15f   : > { %1862 = vmatpush2.msra.mxu0 %v3215_v41  ;;  %1939 = vmatpush2.msra.mxu1 %v3217_v42  ;;  %v2099_v41 = vld [vmem:[%s6056_s3 + $0x1d0] sm:$0xff]  ;;  %v2098_v42 = vld [vmem:[%s6056_s3 + $0x1c8] sm:$0xff] }
 0x160   : > { %1863 = vmatprep.subr.mxu0 %v3212_v43  ;;  %1940 = vmatprep.subr.mxu1 %v3214_v44  ;;  %v2097_v43 = vld [vmem:[%s6056_s3 + $0x1c0] sm:$0xff]  ;;  %v2096_v44 = vld [vmem:[%s6056_s3 + $0x1b8] sm:$0xff] }
 0x161   : > { %1864 = vmatpush2.msra.mxu0 %v3211_v46  ;;  %1941 = vmatpush2.msra.mxu1 %v3213_v47  ;;  %v2094_v46 = vld [vmem:[%s6056_s3 + $0x1a8] sm:$0xff]  ;;  %v2093_v47 = vld [vmem:[%s6056_s3 + $0x1a0] sm:$0xff] }
 0x162   : > { %1865 = vmatprep.subr.mxu0 %v3208_v51  ;;  %1942 = vmatprep.subr.mxu1 %v3210_v52  ;;  %v2089_v51 = vld [vmem:[%s6056_s3 + $0x180] sm:$0xff]  ;;  %v2088_v52 = vld [vmem:[%s6056_s3 + $0x178] sm:$0xff] }
 0x163   : > { %1866 = vmatpush2.msra.mxu0 %v3207_v53  ;;  %1943 = vmatpush2.msra.mxu1 %v3209_v22  ;;  %v2087_v53 = vld [vmem:[%s6056_s3 + $0x170] sm:$0xff]  ;;  %v2086_v22 = vld [vmem:[%s6056_s3 + $0x168] sm:$0xff] }
 0x164   : > { %1867 = vmatprep.subr.mxu0 %v3204_v57  ;;  %1944 = vmatprep.subr.mxu1 %v3206_v59  ;;  %v2083_v57 = vld [vmem:[%s6056_s3 + $0x150] sm:$0xff]  ;;  %v2082_v59 = vld [vmem:[%s6056_s3 + $0x148] sm:$0xff] }
 0x165   : > { %1868 = vmatpush2.msra.mxu0 %v3203_v62  ;;  %3269 = vmatprep.mubr.msk.f32.mxu0 %vm410_vm1, %v1782_v58  ;;  %v2079_v62 = vld [vmem:[%s6056_s3 + $0x130] sm:$0xff] }
 0x166   : > { %1945 = vmatpush2.msra.mxu1 %v3205_v63  ;;  %3273 = vmatprep.mubr.msk.f32.mxu1 %vm410_vm1, %v1782_v58  ;;  %v2078_v58 = vld [vmem:[%s6056_s3 + $0x128] sm:$0xff]  ;;  %v2077_v63 = vld [vmem:[%s6056_s3 + $0x120] sm:$0xff] }
 0x167   : > { %1870 = vmatmul.mubr.f32.vlgmr.msra.gmra.mxu0 %v1779_v0  ;;  %1947 = vmatmul.mubr.f32.vlgmr.msra.gmra.mxu1 %v1779_v0  ;;  %v2076_v0 = vld [vmem:[%s6056_s3 + $0x118] sm:$0xff] }
 0x168   : > { %3270 = vmatprep.mubr.msk.f32.mxu0 %vm410_vm1, %v1786_v2  ;;  %3274 = vmatprep.mubr.msk.f32.mxu1 %vm410_vm1, %v1786_v2  ;;  %v2074_v2 = vld [vmem:[%s6056_s3 + $0x108] sm:$0xff] }
 0x169   : > { %2117 = vmatprep.subr.mxu0 %v2072_v4  ;;  %2282 = vmatprep.subr.mxu1 %v2072_v4  ;;  %v2406_v4 = vld [vmem:[%s6058_s5 + $0xf8] sm:$0xff] }
 0x16a   : > { %2118 = vmatpush1.msra.mxu0 %v2071_v5  ;;  %2283 = vmatpush1.msra.mxu1 %v2071_v5  ;;  %v2438_v5 = vld [vmem:[%s6058_s5 + $0x1f8] sm:$0xff] }
 0x16b   : > { %1876 = vmatmul.mubr.f32.gmra.mxu0 %v1784_v3  ;;  %1953 = vmatmul.mubr.f32.gmra.mxu1 %v1784_v3  ;;  %v2073_v3 = vld [vmem:[%s6056_s3 + $0x100] sm:$0xff] }
 0x16c   : > { %2119 = vmatprep.subr.mxu0 %v2070_v6  ;;  %2284 = vmatprep.subr.mxu1 %v2070_v6  ;;  %v496_v6 = vpop.f32.mrf.mxu0 }
 0x16d   : > { %2120 = vmatpush1.msra.mxu0 %v2069_v7  ;;  %2285 = vmatpush1.msra.mxu1 %v2069_v7  ;;  %v573_v7 = vpop.f32.mrf.mxu1 }
 0x16e   : > { %2121 = vmatprep.subr.mxu0 %v2068_v8  ;;  %2286 = vmatprep.subr.mxu1 %v2068_v8  ;;  %v498_v8 = vpop.f32.mrf.mxu0 }
 0x16f   : > { %2122 = vmatpush1.msra.mxu0 %v2067_v9  ;;  %2287 = vmatpush1.msra.mxu1 %v2067_v9  ;;  %v575_v9 = vpop.f32.mrf.mxu1 }
 0x170   : > { %2123 = vmatprep.subr.mxu0 %v2066_v10  ;;  %2288 = vmatprep.subr.mxu1 %v2066_v10  ;;  %v502_v10 = vpop.f32.mrf.mxu0 }
 0x171   : > { %2124 = vmatpush1.msra.mxu0 %v2065_v11  ;;  %2289 = vmatpush1.msra.mxu1 %v2065_v11  ;;  %v579_v11 = vpop.f32.mrf.mxu1 }
 0x172   : > { %2125 = vmatprep.subr.mxu0 %v2064_v12  ;;  %2290 = vmatprep.subr.mxu1 %v2064_v12  ;;  %v504_v12 = vpop.f32.mrf.mxu0 }
 0x173   : > { %2126 = vmatpush1.msra.mxu0 %v2063_v13  ;;  %2291 = vmatpush1.msra.mxu1 %v2063_v13  ;;  %v581_v13 = vpop.f32.mrf.mxu1 }
 0x174   : > { %2127 = vmatprep.subr.mxu0 %v2062_v14  ;;  %2292 = vmatprep.subr.mxu1 %v2062_v14  ;;  %v828_v14 = vpop.f32.mrf.mxu0 }
 0x175   : > { %2128 = vmatpush1.msra.mxu0 %v2061_v15  ;;  %2293 = vmatpush1.msra.mxu1 %v2061_v15  ;;  %v905_v15 = vpop.f32.mrf.mxu1 }
 0x176   : > { %2129 = vmatprep.subr.mxu0 %v2060_v16  ;;  %2294 = vmatprep.subr.mxu1 %v2060_v16  ;;  %v830_v16 = vpop.f32.mrf.mxu0 }
 0x177   : > { %2130 = vmatpush1.msra.mxu0 %v2059_v17  ;;  %2295 = vmatpush1.msra.mxu1 %v2059_v17  ;;  %v907_v17 = vpop.f32.mrf.mxu1 }
 0x178   : > { %2131 = vmatprep.subr.mxu0 %v2058_v18  ;;  %2296 = vmatprep.subr.mxu1 %v2058_v18  ;;  %v834_v18 = vpop.f32.mrf.mxu0 }
 0x179   : > { %2132 = vmatpush1.msra.mxu0 %v2057_v19  ;;  %2297 = vmatpush1.msra.mxu1 %v2057_v19  ;;  %v911_v19 = vpop.f32.mrf.mxu1 }
 0x17a   : > { %2133 = vmatprep.subr.mxu0 %v2056_v20  ;;  %2298 = vmatprep.subr.mxu1 %v2056_v20  ;;  %v836_v20 = vpop.f32.mrf.mxu0 }
 0x17b   : > { %2134 = vmatpush1.msra.mxu0 %v2055_v54  ;;  %2299 = vmatpush1.msra.mxu1 %v2055_v54  ;;  %v913_v54 = vpop.f32.mrf.mxu1 }
 0x17c   : > { %2135 = vmatprep.subr.mxu0 %v2054_v21  ;;  %2300 = vmatprep.subr.mxu1 %v2054_v21 }
 0x17d   : > { %2136 = vmatpush1.msra.mxu0 %v2053_v23  ;;  %2301 = vmatpush1.msra.mxu1 %v2053_v23 }
 0x17e   : > { %2137 = vmatprep.subr.mxu0 %v2052_v24  ;;  %2302 = vmatprep.subr.mxu1 %v2052_v24 }
 0x17f   : > { %2138 = vmatpush1.msra.mxu0 %v2051_v25  ;;  %2303 = vmatpush1.msra.mxu1 %v2051_v25 }
 0x180   : > { %2139 = vmatprep.subr.mxu0 %v2050_v26  ;;  %2304 = vmatprep.subr.mxu1 %v2050_v26 }
 0x181   : > { %2140 = vmatpush1.msra.mxu0 %v2049_v27  ;;  %2305 = vmatpush1.msra.mxu1 %v2049_v27 }
 0x182   : > { %2141 = vmatprep.subr.mxu0 %v2048_v28  ;;  %2306 = vmatprep.subr.mxu1 %v2048_v28 }
 0x183   : > { %2142 = vmatpush1.msra.mxu0 %v2047_v29  ;;  %2307 = vmatpush1.msra.mxu1 %v2047_v29 }
 0x184   : > { %2143 = vmatprep.subr.mxu0 %v2046_v30  ;;  %2308 = vmatprep.subr.mxu1 %v2046_v30 }
 0x185   : > { %2144 = vmatpush1.msra.mxu0 %v2045_v31  ;;  %2309 = vmatpush1.msra.mxu1 %v2045_v31 }
 0x186   : > { %2145 = vmatprep.subr.mxu0 %v2044_v32  ;;  %2310 = vmatprep.subr.mxu1 %v2044_v32  ;;  %v1993_v32 = vlaneseq }
 0x187   : > { %2146 = vmatpush1.msra.mxu0 %v2043_v33  ;;  %2311 = vmatpush1.msra.mxu1 %v2043_v33 }
 0x188   : > { %2147 = vmatprep.subr.mxu0 %v2042_v34  ;;  %2312 = vmatprep.subr.mxu1 %v2042_v34 }
 0x189   : > { %2148 = vmatpush1.msra.mxu0 %v2041_v35  ;;  %2313 = vmatpush1.msra.mxu1 %v2041_v35  ;;  %v1994_v35 = vshrl.u32 %v1993_v32, 7 }
 0x18a   : > { %2149 = vmatprep.subr.mxu0 %v2104_v36  ;;  %2314 = vmatprep.subr.mxu1 %v2104_v36 }
 0x18b   : > { %2150 = vmatpush2.msra.mxu0 %v2103_v37  ;;  %2315 = vmatpush2.msra.mxu1 %v2103_v37 }
 0x18c   : > { %2151 = vmatprep.subr.mxu0 %v2102_v38  ;;  %2316 = vmatprep.subr.mxu1 %v2102_v38  ;;  %v924_v38 = vadd.f32 %v828_v14, %v496_v6 }
 0x18d   : > { %2152 = vmatpush2.msra.mxu0 %v2101_v39  ;;  %2317 = vmatpush2.msra.mxu1 %v2101_v39  ;;  %v926_v39 = vadd.f32 %v905_v15, %v573_v7 }
 0x18e   : > { %2153 = vmatprep.subr.mxu0 %v2100_v40  ;;  %2318 = vmatprep.subr.mxu1 %v2100_v40  ;;  %v5799_v40 = vsub.s32 0, %v1994_v35 }
 0x18f   : > { %2154 = vmatpush2.msra.mxu0 %v2099_v41  ;;  %2319 = vmatpush2.msra.mxu1 %v2099_v41  ;;  %v2003_v41 = vsub.s32 2, %v1994_v35 }
 0x190   : > { %2155 = vmatprep.subr.mxu0 %v2098_v42  ;;  %2320 = vmatprep.subr.mxu1 %v2098_v42  ;;  %v5801_v42 = vsub.s32 1, %v1994_v35 }
 0x191   : > { %2156 = vmatpush2.msra.mxu0 %v2097_v43  ;;  %2321 = vmatpush2.msra.mxu1 %v2097_v43  ;;  %v2007_v43 = vsub.s32 3, %v1994_v35  ;;  %v2390_v35 = vld [vmem:[%s6058_s5 + $0x78] sm:$0xff] }
 0x192   : > { %2157 = vmatprep.subr.mxu0 %v2096_v44  ;;  %2322 = vmatprep.subr.mxu1 %v2096_v44  ;;  %v925_v44 = vadd.f32 %v830_v16, %v498_v8 }
 0x193   : > { %2158 = vmatpush2.msra.mxu0 %v2095_v45  ;;  %2323 = vmatpush2.msra.mxu1 %v2095_v45  ;;  %v927_v45 = vadd.f32 %v907_v17, %v575_v9 }
 0x194   : > { %2159 = vmatprep.subr.mxu0 %v2094_v46  ;;  %2324 = vmatprep.subr.mxu1 %v2094_v46 }
 0x195   : > { %2160 = vmatpush2.msra.mxu0 %v2093_v47  ;;  %2325 = vmatpush2.msra.mxu1 %v2093_v47 }
 0x196   : > { %2161 = vmatprep.subr.mxu0 %v2092_v48  ;;  %2326 = vmatprep.subr.mxu1 %v2092_v48  ;;  %v1991_v48 = vld [vmem:[%s6055_s2] sm:$0xf] }
 0x197   : > { %2162 = vmatpush2.msra.mxu0 %v2091_v49  ;;  %2327 = vmatpush2.msra.mxu1 %v2091_v49  ;;  %v928_v49 = vadd.f32 %v834_v18, %v502_v10 }
 0x198   : > { %2163 = vmatprep.subr.mxu0 %v2090_v50  ;;  %2328 = vmatprep.subr.mxu1 %v2090_v50  ;;  %v930_v50 = vadd.f32 %v911_v19, %v579_v11 }
 0x199   : > { %2164 = vmatpush2.msra.mxu0 %v2089_v51  ;;  %2329 = vmatpush2.msra.mxu1 %v2089_v51  ;;  %v929_v51 = vadd.f32 %v836_v20, %v504_v12 }
 0x19a   : > { %2165 = vmatprep.subr.mxu0 %v2088_v52  ;;  %2330 = vmatprep.subr.mxu1 %v2088_v52  ;;  %v931_v52 = vadd.f32 %v913_v54, %v581_v13 }
 0x19b   : > { %2166 = vmatpush2.msra.mxu0 %v2087_v53  ;;  %2331 = vmatpush2.msra.mxu1 %v2087_v53 }
 0x19c   : > { %2167 = vmatprep.subr.mxu0 %v2086_v22  ;;  %2332 = vmatprep.subr.mxu1 %v2086_v22 }
 0x19d   : > { %2168 = vmatpush2.msra.mxu0 %v2085_v55  ;;  %2333 = vmatpush2.msra.mxu1 %v2085_v55 }
 0x19e   : > { %2169 = vmatprep.subr.mxu0 %v2084_v56  ;;  %2334 = vmatprep.subr.mxu1 %v2084_v56 }
 0x19f   : > { %2170 = vmatpush2.msra.mxu0 %v2083_v57  ;;  %2335 = vmatpush2.msra.mxu1 %v2083_v57  ;;  %v1176_v21 = vpop.f32.mrf.mxu0  ;;  %v1253_v23 = vpop.f32.mrf.mxu1 }
 0x1a0   : > { %2171 = vmatprep.subr.mxu0 %v2082_v59  ;;  %2336 = vmatprep.subr.mxu1 %v2082_v59  ;;  %v1272_v46 = vadd.f32 %v1176_v21, %v924_v38  ;;  %v1274_v47 = vadd.f32 %v1253_v23, %v926_v39  ;;  %v2405_v39 = vld [vmem:[%s6058_s5 + $0xf0] sm:$0xff] }
 0x1a1   : > { %2172 = vmatpush2.msra.mxu0 %v2081_v60  ;;  %2337 = vmatpush2.msra.mxu1 %v2081_v60  ;;  %v1178_v24 = vpop.f32.mrf.mxu0  ;;  %v1255_v25 = vpop.f32.mrf.mxu1 }
 0x1a2   : > { %2173 = vmatprep.subr.mxu0 %v2080_v61  ;;  %2338 = vmatprep.subr.mxu1 %v2080_v61  ;;  %v1273_v55 = vadd.f32 %v1178_v24, %v925_v44  ;;  %v1275_v56 = vadd.f32 %v1255_v25, %v927_v45  ;;  %v1996_v61 = vrot.slane %v1991_v48, %v5799_v40 }
 0x1a3   : > { %2174 = vmatpush2.msra.mxu0 %v2079_v62  ;;  %2339 = vmatpush2.msra.mxu1 %v2079_v62 }
 0x1a4   : > { %2175 = vmatprep.subr.mxu0 %v2078_v58  ;;  %2340 = vmatprep.subr.mxu1 %v2078_v58  ;;  %v2004_v58 = vrot.slane %v1991_v48, %v2003_v41  ;;  %v2437_v41 = vld [vmem:[%s6058_s5 + $0x1f0] sm:$0xff] }
 0x1a5   : > { %2176 = vmatpush2.msra.mxu0 %v2077_v63  ;;  %2341 = vmatpush2.msra.mxu1 %v2077_v63  ;;  %v1182_v26 = vpop.f32.mrf.mxu0  ;;  %v1259_v27 = vpop.f32.mrf.mxu1  ;;  %v2000_v63 = vrot.slane %v1991_v48, %v5801_v42 }
 0x1a6   : > { %2177 = vmatprep.subr.mxu0 %v2076_v0  ;;  %2342 = vmatprep.subr.mxu1 %v2076_v0  ;;  %v2008_v0 = vrot.slane %v1991_v48, %v2007_v43  ;;  %v1278_v6 = vadd.f32 %v1259_v27, %v930_v50  ;;  %v2421_v48 = vld [vmem:[%s6058_s5 + $0x170] sm:$0xff]  ;;  %v2436_v50 = vld [vmem:[%s6058_s5 + $0x1e8] sm:$0xff] }
 0x1a7   : > { %2178 = vmatpush2.msra.mxu0 %v2075_v1  ;;  %2343 = vmatpush2.msra.mxu1 %v2075_v1  ;;  %v1184_v28 = vpop.f32.mrf.mxu0  ;;  %v1261_v29 = vpop.f32.mrf.mxu1 }
 0x1a8   : > { %2179 = vmatprep.subr.mxu0 %v2074_v2  ;;  %2344 = vmatprep.subr.mxu1 %v2074_v2  ;;  %v1277_v9 = vadd.f32 %v1184_v28, %v929_v51  ;;  %v1279_v10 = vadd.f32 %v1261_v29, %v931_v52  ;;  %v2388_v51 = vld [vmem:[%s6058_s5 + $0x68] sm:$0xff] }
 0x1a9   : > { %2180 = vmatpush2.msra.mxu0 %v2073_v3  ;;  %2345 = vmatpush2.msra.mxu1 %v2073_v3  ;;  %v2420_v52 = vld [vmem:[%s6058_s5 + $0x168] sm:$0xff] }
 0x1aa   : > { %3284 = vmatprep.subr.mxu0 %v2406_v4  ;;  %3322 = vmatprep.subr.mxu1 %v2438_v5  ;;  %v1276_v5 = vadd.f32 %v1182_v26, %v928_v49  ;;  %v2404_v49 = vld [vmem:[%s6058_s5 + $0xe8] sm:$0xff] }
 0x1e3   : > { %v1524_v30 = vpop.f32.mrf.mxu0  ;;  %v1601_v31 = vpop.f32.mrf.mxu1 }
 0x1e4   : > { %v1620_v57 = vadd.f32 %v1524_v30, %v1272_v46  ;;  %v1622_v59 = vadd.f32 %v1601_v31, %v1274_v47  ;;  %v2389_v47 = vld [vmem:[%s6058_s5 + $0x70] sm:$0xff] }
 0x1e5   : > { %v1526_v33 = vpop.f32.mrf.mxu0  ;;  %v1603_v34 = vpop.f32.mrf.mxu1 }
 0x1e6   : > { %v1621_v1 = vadd.f32 %v1526_v33, %v1273_v55  ;;  %v1623_v2 = vadd.f32 %v1603_v34, %v1275_v56  ;;  %v2387_v55 = vld [vmem:[%s6058_s5 + $0x60] sm:$0xff] }
 0x1e7   : > { %v2419_v56 = vld [vmem:[%s6058_s5 + $0x160] sm:$0xff] }
 0x1e9   : > { %v1530_v36 = vpop.f32.mrf.mxu0  ;;  %v1607_v37 = vpop.f32.mrf.mxu1 }
 0x1ea   : > { %v1624_v13 = vadd.f32 %v1530_v36, %v1276_v5  ;;  %v1626_v14 = vadd.f32 %v1607_v37, %v1278_v6  ;;  %v2422_v36 = vld [vmem:[%s6058_s5 + $0x178] sm:$0xff]  ;;  %v2399_v5 = vld [vmem:[%s6058_s5 + $0xc0] sm:$0xff] }
 0x1eb   : > { %v1532_v53 = vpop.f32.mrf.mxu0  ;;  %v1609_v22 = vpop.f32.mrf.mxu1  ;;  %v2431_v6 = vld [vmem:[%s6058_s5 + $0x1c0] sm:$0xff] }
 0x1ec   : > { %v1625_v19 = vadd.f32 %v1532_v53, %v1277_v9  ;;  %v1627_v20 = vadd.f32 %v1609_v22, %v1279_v10  ;;  %v2403_v53 = vld [vmem:[%s6058_s5 + $0xe0] sm:$0xff]  ;;  %v2398_v9 = vld [vmem:[%s6058_s5 + $0xb8] sm:$0xff] }
 0x1ed   : > { %v2435_v22 = vld [vmem:[%s6058_s5 + $0x1e0] sm:$0xff]  ;;  %v2430_v10 = vld [vmem:[%s6058_s5 + $0x1b8] sm:$0xff] }
 0x227   : > { %v1871_v60 = vpop.f32.mrf.mxu0  ;;  %v1948_v62 = vpop.f32.mrf.mxu1 }
 0x228   : > { %v1967_v3 = vadd.f32 %v1871_v60, %v1620_v57  ;;  %v1969_v4 = vadd.f32 %v1948_v62, %v1622_v59  ;;  %v2402_v57 = vld [vmem:[%s6058_s5 + $0xd8] sm:$0xff]  ;;  %v2401_v62 = vld [vmem:[%s6058_s5 + $0xd0] sm:$0xff] }
 0x229   : > { %v1873_v7 = vpop.f32.mrf.mxu0  ;;  %v1950_v8 = vpop.f32.mrf.mxu1  ;;  %v2434_v59 = vld [vmem:[%s6058_s5 + $0x1d8] sm:$0xff] }
 0x22a   : > { %v1968_v11 = vadd.f32 %v1873_v7, %v1621_v1  ;;  %v1970_v12 = vadd.f32 %v1950_v8, %v1623_v2  ;;  %v2013_v15 = vadd.f32 %v1996_v61, %v1967_v3  ;;  %v2015_v16 = vadd.f32 %v2004_v58, %v1969_v4  ;;  %v2386_v60 = vld [vmem:[%s6058_s5 + $0x58] sm:$0xff]  ;;  %v2400_v1 = vld [vmem:[%s6058_s5 + $0xc8] sm:$0xff]  ;;  %v2383_v7 = vld [vmem:[%s6058_s5 + $0x40] sm:$0xff] }
 0x22b   : > { %v1877_v17 = vpop.f32.mrf.mxu0  ;;  %v1954_v18 = vpop.f32.mrf.mxu1  ;;  %v2432_v2 = vld [vmem:[%s6058_s5 + $0x1c8] sm:$0xff]  ;;  %v2415_v8 = vld [vmem:[%s6058_s5 + $0x140] sm:$0xff] }
 0x22c   : > { %v2014_v54 = vadd.f32 %v2000_v63, %v1968_v11  ;;  %v2016_v21 = vadd.f32 %v2008_v0, %v1970_v12  ;;  %v1971_v23 = vadd.f32 %v1877_v17, %v1624_v13  ;;  %v1973_v24 = vadd.f32 %v1954_v18, %v1626_v14  ;;  %v2384_v3 = vld [vmem:[%s6058_s5 + $0x48] sm:$0xff]  ;;  %v2382_v11 = vld [vmem:[%s6058_s5 + $0x38] sm:$0xff]  ;;  %v2397_v13 = vld [vmem:[%s6058_s5 + $0xb0] sm:$0xff] }
 0x22d   : > { %v1879_v25 = vpop.f32.mrf.mxu0  ;;  %v1956_v26 = vpop.f32.mrf.mxu1  ;;  %v2021_v31 = vmax.f32 %v2013_v15, 0.0  ;;  %v2023_v32 = vmax.f32 %v2015_v16, 0.0  ;;  %v2416_v4 = vld [vmem:[%s6058_s5 + $0x148] sm:$0xff]  ;;  %v2414_v12 = vld [vmem:[%s6058_s5 + $0x138] sm:$0xff]  ;;  %v2429_v14 = vld [vmem:[%s6058_s5 + $0x1b0] sm:$0xff] }
 0x22e   : > { %v2022_v27 = vmax.f32 %v2014_v54, 0.0  ;;  %v2024_v30 = vmax.f32 %v2016_v21, 0.0  ;;  %v1972_v28 = vadd.f32 %v1879_v25, %v1625_v19  ;;  %v1974_v29 = vadd.f32 %v1956_v26, %v1627_v20  ;;  %v2381_v15 = vld [vmem:[%s6058_s5 + $0x30] sm:$0xff]  ;;  %v2396_v17 = vld [vmem:[%s6058_s5 + $0xa8] sm:$0xff]  ;;  %v2395_v54 = vld [vmem:[%s6058_s5 + $0xa0] sm:$0xff] }
 0x22f   : > { %v2017_v33 = vadd.f32 %v1996_v61, %v1971_v23  ;;  %v2019_v34 = vadd.f32 %v2004_v58, %v1973_v24  ;;  %v2418_v61 = vld [vmem:[%s6058_s5 + $0x158] sm:$0xff]  ;;  %v2433_v58 = vld [vmem:[%s6058_s5 + $0x1d0] sm:$0xff]  ;;  %v2428_v18 = vld [vmem:[%s6058_s5 + $0x1a8] sm:$0xff] }
 0x230   : > { %v2018_v37 = vadd.f32 %v2000_v63, %v1972_v28  ;;  %v2020_v38 = vadd.f32 %v2008_v0, %v1974_v29  ;;  %2181 = vmatprep.mubr.f32.mxu0 %v2022_v27  ;;  %2346 = vmatprep.mubr.f32.mxu1 %v2024_v30  ;;  %v2385_v63 = vld [vmem:[%s6058_s5 + $0x50] sm:$0xff]  ;;  %v2380_v19 = vld [vmem:[%s6058_s5 + $0x28] sm:$0xff]  ;;  %v2427_v21 = vld [vmem:[%s6058_s5 + $0x1a0] sm:$0xff] }
 0x231   : > { %2182 = vmatmul.mubr.f32.vlgmr.msra.gmra.mxu0 %v2021_v31  ;;  %2347 = vmatmul.mubr.f32.vlgmr.msra.gmra.mxu1 %v2023_v32  ;;  %v2025_v45 = vmax.f32 %v2017_v33, 0.0  ;;  %v2027_v46 = vmax.f32 %v2019_v34, 0.0  ;;  %v2417_v0 = vld [vmem:[%s6058_s5 + $0x150] sm:$0xff]  ;;  %v2412_v20 = vld [vmem:[%s6058_s5 + $0x128] sm:$0xff]  ;;  %v2379_v23 = vld [vmem:[%s6058_s5 + $0x20] sm:$0xff] }
 0x232   : > { %v2026_v43 = vmax.f32 %v2018_v37, 0.0  ;;  %v2028_v44 = vmax.f32 %v2020_v38, 0.0  ;;  %3285 = vmatpush3.msra.mxu0 %v2390_v35  ;;  %3323 = vmatpush3.msra.mxu1 %v2422_v36  ;;  %v2413_v16 = vld [vmem:[%s6058_s5 + $0x130] sm:$0xff]  ;;  %v2411_v24 = vld [vmem:[%s6058_s5 + $0x120] sm:$0xff]  ;;  %v2394_v25 = vld [vmem:[%s6058_s5 + $0x98] sm:$0xff] }
 0x233   : > { %3286 = vmatprep.subr.mxu0 %v2405_v39  ;;  %3324 = vmatprep.subr.mxu1 %v2437_v41  ;;  %v2426_v26 = vld [vmem:[%s6058_s5 + $0x198] sm:$0xff]  ;;  %v2393_v28 = vld [vmem:[%s6058_s5 + $0x90] sm:$0xff]  ;;  %v2392_v33 = vld [vmem:[%s6058_s5 + $0x88] sm:$0xff] }
 0x234   : > { %2187 = vmatprep.mubr.f32.mxu0 %v2026_v43  ;;  %2352 = vmatprep.mubr.f32.mxu1 %v2028_v44  ;;  %v2378_v27 = vld [vmem:[%s6058_s5 + $0x18] sm:$0xff]  ;;  %v2425_v29 = vld [vmem:[%s6058_s5 + $0x190] sm:$0xff]  ;;  %v2424_v34 = vld [vmem:[%s6058_s5 + $0x188] sm:$0xff] }
 0x235   : > { %2188 = vmatmul.mubr.f32.gmra.mxu0 %v2025_v45  ;;  %2353 = vmatmul.mubr.f32.gmra.mxu1 %v2027_v46  ;;  %v2410_v30 = vld [vmem:[%s6058_s5 + $0x118] sm:$0xff]  ;;  %v2377_v31 = vld [vmem:[%s6058_s5 + $0x10] sm:$0xff]  ;;  %v2376_v35 = vld [vmem:[%s6058_s5 + $0x8] sm:$0xff] }
 0x236   : > { %3287 = vmatpush3.msra.mxu0 %v2389_v47  ;;  %3325 = vmatpush3.msra.mxu1 %v2421_v48  ;;  %v2409_v32 = vld [vmem:[%s6058_s5 + $0x110] sm:$0xff]  ;;  %v2408_v36 = vld [vmem:[%s6058_s5 + $0x108] sm:$0xff]  ;;  %v2391_v37 = vld [vmem:[%s6058_s5 + $0x80] sm:$0xff] }
 0x237   : > { %3288 = vmatprep.subr.mxu0 %v2404_v49  ;;  %3326 = vmatprep.subr.mxu1 %v2436_v50  ;;  %v2423_v38 = vld [vmem:[%s6058_s5 + $0x180] sm:$0xff] }
 0x238   : > { %3289 = vmatpush3.msra.mxu0 %v2388_v51  ;;  %3327 = vmatpush3.msra.mxu1 %v2420_v52  ;;  %v2375_v39 = vld [vmem:[%s6058_s5] sm:$0xff] }
 0x239   : > { %3290 = vmatprep.subr.mxu0 %v2403_v53  ;;  %3328 = vmatprep.subr.mxu1 %v2435_v22  ;;  %v2407_v41 = vld [vmem:[%s6058_s5 + $0x100] sm:$0xff] }
 0x23a   : > { %3291 = vmatpush3.msra.mxu0 %v2387_v55  ;;  %3329 = vmatpush3.msra.mxu1 %v2419_v56  ;;  %v2105_v43 = vld [vmem:[%s6057_s4] sm:$0x3]  ;;  %v2270_v44 = vld [vmem:[%s6057_s4 + $0x2] sm:$0x3] }
 0x23b   : > { %3292 = vmatprep.subr.mxu0 %v2402_v57  ;;  %3330 = vmatprep.subr.mxu1 %v2434_v59  ;;  %v2110_v45 = vrot.slane %v2105_v43, %v5799_v40  ;;  %v2275_v46 = vrot.slane %v2270_v44, %v5799_v40  ;;  %v2114_v47 = vrot.slane %v2105_v43, %v5801_v42 }
 0x23c   : > { %3293 = vmatpush3.msra.mxu0 %v2386_v60  ;;  %3331 = vmatpush3.msra.mxu1 %v2418_v61  ;;  %v2279_v48 = vrot.slane %v2270_v44, %v5801_v42 }
 0x23d   : > { %3294 = vmatprep.subr.mxu0 %v2401_v62  ;;  %3332 = vmatprep.subr.mxu1 %v2433_v58 }
 0x23e   : > { %3295 = vmatpush3.msra.mxu0 %v2385_v63  ;;  %3333 = vmatpush3.msra.mxu1 %v2417_v0 }
 0x23f   : > { %3296 = vmatprep.subr.mxu0 %v2400_v1  ;;  %3334 = vmatprep.subr.mxu1 %v2432_v2 }
 0x240   : > { %3297 = vmatpush3.msra.mxu0 %v2384_v3  ;;  %3335 = vmatpush3.msra.mxu1 %v2416_v4 }
 0x241   : > { %3298 = vmatprep.subr.mxu0 %v2399_v5  ;;  %3336 = vmatprep.subr.mxu1 %v2431_v6 }
 0x242   : > { %3299 = vmatpush3.msra.mxu0 %v2383_v7  ;;  %3337 = vmatpush3.msra.mxu1 %v2415_v8  ;;  %v3474_v7 = vmov 0.0  }
 0x243   : > { %3300 = vmatprep.subr.mxu0 %v2398_v9  ;;  %3338 = vmatprep.subr.mxu1 %v2430_v10  ;;  %2591 = vst.msk [vmem:[#allocation4 + $0x11] sm:$0x1] %vm2589_vm5, %v3474_v7  ;;  %2590 = vst.msk [vmem:[#allocation4] sm:$0x1] %vm2589_vm5, %v3474_v7 }
 0x244   : > { %3301 = vmatpush3.msra.mxu0 %v2382_v11  ;;  %3339 = vmatpush3.msra.mxu1 %v2414_v12 }
 0x245   : > { %3302 = vmatprep.subr.mxu0 %v2397_v13  ;;  %3340 = vmatprep.subr.mxu1 %v2429_v14 }
 0x246   : > { %3303 = vmatpush3.msra.mxu0 %v2381_v15  ;;  %3341 = vmatpush3.msra.mxu1 %v2413_v16 }
 0x247   : > { %3304 = vmatprep.subr.mxu0 %v2396_v17  ;;  %3342 = vmatprep.subr.mxu1 %v2428_v18 }
 0x248   : > { %3305 = vmatpush3.msra.mxu0 %v2380_v19  ;;  %3343 = vmatpush3.msra.mxu1 %v2412_v20 }
 0x249   : > { %3306 = vmatprep.subr.mxu0 %v2395_v54  ;;  %3344 = vmatprep.subr.mxu1 %v2427_v21 }
 0x24a   : > { %3307 = vmatpush3.msra.mxu0 %v2379_v23  ;;  %3345 = vmatpush3.msra.mxu1 %v2411_v24 }
 0x24b   : > { %3308 = vmatprep.subr.mxu0 %v2394_v25  ;;  %3346 = vmatprep.subr.mxu1 %v2426_v26 }
 0x24c   : > { %3309 = vmatpush3.msra.mxu0 %v2378_v27  ;;  %3347 = vmatpush3.msra.mxu1 %v2410_v30 }
 0x24d   : > { %3310 = vmatprep.subr.mxu0 %v2393_v28  ;;  %3348 = vmatprep.subr.mxu1 %v2425_v29  ;;  %v2622_v28 = vstv %s2621_s20 }
 0x24e   : > { %3311 = vmatpush3.msra.mxu0 %v2377_v31  ;;  %3349 = vmatpush3.msra.mxu1 %v2409_v32 }
 0x24f   : > { %3312 = vmatprep.subr.mxu0 %v2392_v33  ;;  %3350 = vmatprep.subr.mxu1 %v2424_v34 }
 0x250   : > { %3313 = vmatpush3.msra.mxu0 %v2376_v35  ;;  %3351 = vmatpush3.msra.mxu1 %v2408_v36 }
 0x251   : > { %3314 = vmatprep.subr.mxu0 %v2391_v37  ;;  %3352 = vmatprep.subr.mxu1 %v2423_v38 }
 0x252   : > { %3315 = vmatpush3.msra.mxu0 %v2375_v39  ;;  %3353 = vmatpush3.msra.mxu1 %v2407_v41 }
 0x2f1   : > { %v2183_v49 = vpop.f32.mrf.mxu0  ;;  %v2348_v50 = vpop.f32.mrf.mxu1 }
 0x2f2   : > { %v2184_v51 = vadd.f32 %v2183_v49, %v2110_v45  ;;  %v2349_v52 = vadd.f32 %v2348_v50, %v2275_v46 }
 0x2f3   : > { %v2185_v53 = vpop.f32.mrf.mxu0  ;;  %v2350_v22 = vpop.f32.mrf.mxu1 }
 0x2f4   : > { %v2186_v55 = vadd.f32 %v2185_v53, %v2114_v47  ;;  %v2351_v56 = vadd.f32 %v2350_v22, %v2279_v48  ;;  %v2194_v62 = vmax.f32 %v2184_v51, 0.0  ;;  %v2359_v58 = vmax.f32 %v2349_v52, 0.0 }
 0x2f5   : > { %v2189_v57 = vpop.f32.mrf.mxu0  ;;  %v2354_v59 = vpop.f32.mrf.mxu1 }
 0x2f6   : > { %v2195_v60 = vmax.f32 %v2186_v55, 0.0  ;;  %v2360_v61 = vmax.f32 %v2351_v56, 0.0  ;;  %v2190_v63 = vadd.f32 %v2189_v57, %v2110_v45  ;;  %v2355_v40 = vadd.f32 %v2354_v59, %v2275_v46 }
 0x2f7   : > { %v2191_v0 = vpop.f32.mrf.mxu0  ;;  %v2356_v1 = vpop.f32.mrf.mxu1 }
 0x2f8   : > { %v2192_v2 = vadd.f32 %v2191_v0, %v2114_v47  ;;  %v2357_v42 = vadd.f32 %v2356_v1, %v2279_v48  ;;  %2503 = vmatprep.mubr.f32.mxu0 %v2195_v60  ;;  %2578 = vmatprep.mubr.f32.mxu1 %v2360_v61  ;;  %v2196_v5 = vmax.f32 %v2190_v63, 0.0  ;;  %v2361_v6 = vmax.f32 %v2355_v40, 0.0 }
 0x2f9   : > { %2504 = vmatmul.mubr.f32.vlgmr.msra.gmra.mxu0 %v2194_v62  ;;  %2579 = vmatmul.mubr.f32.vlgmr.msra.gmra.mxu1 %v2359_v58 }
 0x2fa   : > { %v2197_v3 = vmax.f32 %v2192_v2, 0.0  ;;  %v2362_v4 = vmax.f32 %v2357_v42, 0.0 }
 0x2fc   : > { %2508 = vmatprep.mubr.f32.mxu0 %v2197_v3  ;;  %2583 = vmatprep.mubr.f32.mxu1 %v2362_v4 }
 0x2fd   : > { %2509 = vmatmul.mubr.f32.gmra.mxu0 %v2196_v5  ;;  %2584 = vmatmul.mubr.f32.gmra.mxu1 %v2361_v6 }
 0x3b9   : > { %v3316_v8 = vpop.f32.mrf.mxu0  ;;  %v3354_v9 = vpop.f32.mrf.mxu1 }
 0x3bb   : > { %v3317_v10 = vpop.f32.mrf.mxu0  ;;  %v3355_v11 = vpop.f32.mrf.mxu1 }
 0x3bc   : > { %v3318_v12 = vadd.f32 %v3317_v10, %v3316_v8  ;;  %v3356_v13 = vadd.f32 %v3355_v11, %v3354_v9 }
 0x3bd   : > { %v3319_v14 = vpop.f32.mrf.mxu0  ;;  %v3357_v15 = vpop.f32.mrf.mxu1 }
 0x3be   : > { %v2581_v16 = vadd.f32 %v3356_v13, %v3318_v12 }
 0x3bf   : > { %v3320_v17 = vpop.f32.mrf.mxu0  ;;  %v3358_v18 = vpop.f32.mrf.mxu1 }
 0x3c0   : > { %2593 = vst.msk [vmem:[#allocation4 + $0x1] sm:$0xff] %vm2592_vm6, %v2581_v16  ;;  %v3321_v19 = vadd.f32 %v3320_v17, %v3319_v14  ;;  %v3359_v20 = vadd.f32 %v3358_v18, %v3357_v15 }
 0x3c2   : > { %v2586_v54 = vadd.f32 %v3359_v20, %v3321_v19 }
 0x3c4   : > { %2594 = vst.msk [vmem:[#allocation4 + $0x9] sm:$0xff] %vm2592_vm6, %v2586_v54 }
 0x3c7   : > { %v2597_v21 = vld [vmem:[#allocation4 + $0x1] sm:$0xff] }
 0x3c8   : > { %2601 = vrot.lane.b32.xlu0 %v2597_v21, %s3475_s23  ;;  %v2595_v27 = vld [vmem:[#allocation4] sm:$0xff] }
 0x3cb   : > { %v2609_v23 = vld [vmem:[#allocation4 + $0x2] sm:$0xff]  ;;  %v2610_v25 = vld [vmem:[#allocation4 + $0xa] sm:$0xff] }
 0x3cc   : > { %v2598_v24 = vld [vmem:[#allocation4 + $0x9] sm:$0xff]  ;;  %2613 = vrot.lane.b32.xlu1 %v2609_v23, %s3476_s16 }
 0x3cd   : > { %2603 = vrot.lane.b32.xlu0 %v2598_v24, %s3475_s23  ;;  %v2596_v33 = vld [vmem:[#allocation4 + $0x8] sm:$0xff] }
 0x3d0   : > { %2615 = vrot.lane.b32.xlu1 %v2610_v25, %s3476_s16 }
 0x43a   : > { %v2602_v26 = vpop.permute.xlu0 %2601 }
 0x43b   : > { %v2607_v30 = vadd.f32 %v2602_v26, %v2595_v27 }
 0x43e   : > { %v2614_v29 = vpop.permute.xlu1 %2613 }
 0x43f   : > { %v2604_v31 = vpop.permute.xlu0 %2603  ;;  %v2619_v32 = vadd.f32 %v2614_v29, %v2607_v30 }
 0x440   : > { %v2608_v35 = vadd.f32 %v2604_v31, %v2596_v33 }
 0x441   : > { %v2623_v34 = vadd.f32 %v2622_v28, %v2619_v32 }
 0x442   : > { %v2616_v36 = vpop.permute.xlu1 %2615 }
 0x443   : > { %v3275_v37 = vmul.f32 -1.442695, %v2623_v34  ;;  %v2620_v38 = vadd.f32 %v2616_v36, %v2608_v35 }
 0x445   : > { %3404 = vpow2.f32 %v3275_v37  ;;  %v2624_v39 = vadd.f32 %v2622_v28, %v2620_v38 }
 0x447   : > { %v3276_v41 = vmul.f32 -1.442695, %v2624_v39 }
 0x449   : > { %3406 = vpow2.f32 %v3276_v41 }
 0x452   : > { %v3405_v43 = vpop.eup %3404 }
 0x453   : > { %v2631_v44 = vadd.f32 1.0, %v3405_v43 }
 0x455   : > { %3408 = vrcp.f32 %v2631_v44 }
 0x456   : > { %v3407_v45 = vpop.eup %3406 }
 0x457   : > { %v2632_v46 = vadd.f32 1.0, %v3407_v45 }
 0x459   : > { %3410 = vrcp.f32 %v2632_v46 }
 0x462   : > { %v3409_v47 = vpop.eup %3408 }
 0x463   : > { %2638 = vst.msk [vmem:[%s272_s21] sm:$0xff] %vm2637_vm7, %v3409_v47 }
 0x466   : > { %v3411_v48 = vpop.eup %3410 }
 0x467   : > { %2639 = vst.msk [vmem:[%s272_s21 + $0x8] sm:$0xff] %vm2637_vm7, %v3411_v48 }
 0x468   : > { %3425 = shalt.err (!%p3422_p3)
}
 0x469   : > { %s3426_s23 = scalar_lea.hbm %s6009_s30, 256  ;;  %s3430_s17 = scalar_lea.hbm %s6060_s7, 512 }
 0x46a   : > { %p3427_p4 = scmp.ne.s32.totalorder %s6009_s30, %s3426_s23  ;;  %p3431_p9 = scmp.lt.s32.totalorder %s6009_s30, %s6060_s7 }
 0x46b   : > { %p3432_p10 = scmp.lt.s32.totalorder %s3430_s17, %s3426_s23 }
 0x46c   : > { %p3428_p7 = pnand %p3427_p4, %p3561_p5 }
 0x46d   : > { %p3433_p11 = por %p3432_p10, %p3431_p9 }
 0x46e   : > { %p3429_p8 = pneg %p3428_p7 }
 0x470   : > { %p3434_p12 = pnand %p3433_p11, %p3429_p8 }
 0x472   : > { %3437 = shalt.err (!%p3434_p12)
}
 0x473   : > { %s3478_s21 = smov 128   ;;  %s3479_s24 = smov 8  }
 0x474   : > { %3360 = dma.vmem_to_hbm [thread:$0]  (%p3561_p5), %s6011_s22, 256, %s6009_s30, %s6013_s9, %s3478_s21, %s3478_s21, %s3479_s24  }
 0x475 PF: > { %p3366_p13 = scmp.ge.s32.totalorder %s3472_s29, 2  ;;  %s2669_s25 = sand.u32 1, %s3460_s26  }
 0x476   : > { %s2670_s10 = scalar_lea.sflag [#allocation7], %s2669_s25 }
 0x477   : > { %p3363_p0 = pnand %p3366_p13, %p3565_p6 }
 0x479   : > { %p3364_p1 = pneg %p3363_p0 }
 0x47b   : > { %3455 = dma.done.wait (%p3364_p1), %s2670_s10, 256  }
 0x47c   : > { %3457 = vsyncadd (%p3364_p1), %s2670_s10, 4294967040  ;;  %p18_p2 = scmp.ge.s32.totalorder %s3548_s8, 4   ;;  %s6063_s26 = smov %s3464_s27 }
 0x47d   : > { %s6064_s27 = smov %s3468_s28  ;;  %s6065_s28 = smov %s3559_s11 }
 0x47e   : > { %s6066_s29 = smov %s3548_s8  ;;  %20 = sbr.rel (!%p18_p2) target bundleno = 5 (0x5), region = 87 }
 0x483   :  { %2675 = vsyncpa [#allocation7], 1 }
 0x484   :  { %2677 = vsyncpa [#allocation7 + $0x1], 1 }

</bundles_post_ra>
